<compile_context>
chip_gen: v7x
topology: tpu7x:2x2x1
jax: 0.10.0
libtpu: 0.0.40
codegen_flags: <defaults>
</compile_context>

<pallas_src>
import jax
import jax.numpy as jnp
from jax.experimental import pallas as pl
from jax.experimental.pallas import tpu as pltpu

# Logical (PyTorch) channel dims.
C_IN, C1, C2, C3, C_OUT = 512, 400, 350, 300, 256
# Lane-padded channel dims used inside the kernel.  Exactness is preserved:
# padded weight columns, padded bias entries and the padded K-rows of the
# next layer's weight are all zero, and ReLU(0) = 0.
C1P, C2P, C3P = 512, 384, 384


def _cdiv(a, b):
    return -(-a // b)


def _round_up(n, m):
    return _cdiv(n, m) * m


def x2e_kernel(inv_ref,                # scalar prefetch (SMEM): (1,) f32 = 1/||x||_F
               x_ref,                  # (TB, 512) f32   batch tile
               w1_ref, b1_ref,         # (512, 512) cdt, (1, 512) f32
               w2_ref, b2_ref,         # (512, 384) cdt, (1, 384) f32
               w3_ref, b3_ref,         # (384, 384) cdt, (1, 384) f32
               wf_ref, bf_ref,         # (384, 256) cdt, (1, 256) f32
               o_ref):                 # (TB, 256) f32   un-normalized output
    cdt = w1_ref.dtype                 # MXU operand dtype (bf16 fast / f32 exact)

    # Input normalization folded in as a cheap VPU multiply; the global
    # reduction itself lives in the wrapper so the batch stays tileable.
    x = (x_ref[...] * inv_ref[0]).astype(cdt)

    # 1x1 Conv1d layers == matmuls on the MXU (f32 accumulation), ReLU on VPU.
    h = jnp.dot(x, w1_ref[...], preferred_element_type=jnp.float32) + b1_ref[...]
    h = jnp.maximum(h, 0.0).astype(cdt)
    h = jnp.dot(h, w2_ref[...], preferred_element_type=jnp.float32) + b2_ref[...]
    h = jnp.maximum(h, 0.0).astype(cdt)
    h = jnp.dot(h, w3_ref[...], preferred_element_type=jnp.float32) + b3_ref[...]
    h = jnp.maximum(h, 0.0).astype(cdt)

    # fc: Linear(300 -> 256)   (padded K rows of wf are zero => exact)
    o_ref[...] = jnp.dot(h, wf_ref[...], preferred_element_type=jnp.float32) + bf_ref[...]


def _pad_params(params, w_dtype):
    """Zero-pad weights/biases to lane-aligned shapes; weights cast to the
    MXU operand dtype, biases kept f32 (added to the f32 accumulator)."""
    w1, b1, w2, b2, w3, b3, wf, bf = params
    w1p = jnp.pad(w1, ((0, 0), (0, C1P - C1))).astype(w_dtype)
    b1p = jnp.pad(b1, ((0, 0), (0, C1P - C1))).astype(jnp.float32)
    w2p = jnp.pad(w2, ((0, C1P - C1), (0, C2P - C2))).astype(w_dtype)
    b2p = jnp.pad(b2, ((0, 0), (0, C2P - C2))).astype(jnp.float32)
    w3p = jnp.pad(w3, ((0, C2P - C2), (0, C3P - C3))).astype(w_dtype)
    b3p = jnp.pad(b3, ((0, 0), (0, C3P - C3))).astype(jnp.float32)
    wfp = jnp.pad(wf, ((0, C3P - C3), (0, 0))).astype(w_dtype)
    bfp = bf.astype(jnp.float32)
    return w1p, b1p, w2p, b2p, w3p, b3p, wfp, bfp


def _choose_tiling(B, tb):
    """Balanced batch tiles: <= 7 padded rows per tile, and >= 2 grid steps
    when B is large enough so both v7x TensorCores get work."""
    num_tiles = max(1, _cdiv(B, tb))
    if num_tiles == 1 and B >= 16:
        num_tiles = 2
    tb_eff = _round_up(_cdiv(B, num_tiles), 8)   # f32 sublane multiple
    b_pad = num_tiles * tb_eff
    return num_tiles, tb_eff, b_pad


def x2e_forward(x_bcl, params, *, tb=512, compute_dtype=jnp.bfloat16):
    """x_bcl: (B, 512, 1) float32, matching the PyTorch NCL input."""
    assert x_bcl.shape[1] == C_IN and x_bcl.shape[2] == 1
    x2d = x_bcl[:, :, 0].astype(jnp.float32)          # (B, 512)
    B = x2d.shape[0]

    # Global input norm (couples all rows) -> computed outside the kernel,
    # passed in as a single SMEM scalar so the batch can be tiled.
    inv_in = jax.lax.rsqrt(jnp.sum(x2d * x2d))
    inv_in = jnp.reshape(inv_in, (1,)).astype(jnp.float32)

    num_tiles, tb_eff, b_pad = _choose_tiling(B, tb)
    x2d_p = jnp.pad(x2d, ((0, b_pad - B), (0, 0))) if b_pad != B else x2d

    padded = _pad_params(params, compute_dtype)

    macs = C_IN * C1P + C1P * C2P + C2P * C3P + C3P * C_OUT
    w_bytes = macs * jnp.dtype(compute_dtype).itemsize
    cost = pl.CostEstimate(
        flops=2 * b_pad * macs,
        transcendentals=0,
        bytes_accessed=4 * b_pad * (C_IN + C_OUT) + w_bytes,
    )

    def _run(single_buffer_weights):
        # Constant-index weight/bias blocks are DMA'd once; single-buffer
        # them to halve their VMEM footprint.
        wkw = dict(pipeline_mode=pl.Buffered(1)) if single_buffer_weights else {}
        const = lambda i, inv: (0, 0)
        grid_spec = pltpu.PrefetchScalarGridSpec(
            num_scalar_prefetch=1,
            grid=(num_tiles,),
            in_specs=[
                pl.BlockSpec((tb_eff, C_IN), lambda i, inv: (i, 0)),   # x tile
                pl.BlockSpec((C_IN, C1P),  const, **wkw),              # w1 (resident)
                pl.BlockSpec((1, C1P),     const, **wkw),              # b1
                pl.BlockSpec((C1P, C2P),   const, **wkw),              # w2
                pl.BlockSpec((1, C2P),     const, **wkw),              # b2
                pl.BlockSpec((C2P, C3P),   const, **wkw),              # w3
                pl.BlockSpec((1, C3P),     const, **wkw),              # b3
                pl.BlockSpec((C3P, C_OUT), const, **wkw),              # wf
                pl.BlockSpec((1, C_OUT),   const, **wkw),              # bf
            ],
            out_specs=pl.BlockSpec((tb_eff, C_OUT), lambda i, inv: (i, 0)),
        )
        return pl.pallas_call(
            x2e_kernel,
            out_shape=jax.ShapeDtypeStruct((b_pad, C_OUT), jnp.float32),
            grid_spec=grid_spec,
            compiler_params=pltpu.CompilerParams(
                dimension_semantics=("parallel",),     # megacore sharding on v7x
                vmem_limit_bytes=32 * 1024 * 1024,     # headroom on v7x's 64 MiB
            ),
            cost_estimate=cost,
        )(inv_in, x2d_p, *padded)

    try:
        y_pad = _run(single_buffer_weights=True)
    except Exception:
        # Fallback for JAX versions where single-buffered constant blocks
        # (pl.Buffered(1)) are not supported by the Mosaic pipeline.
        y_pad = _run(single_buffer_weights=False)

    # Drop padded batch rows (they hold ReLU(bias) garbage) BEFORE the global
    # output norm, then normalize.
    y = y_pad[:B]
    inv_out = jax.lax.rsqrt(jnp.sum(y * y))
    return y * inv_out


def init_params(key):
    """PyTorch-default-like init: U(-1/sqrt(fan_in), +1/sqrt(fan_in)).
    Weights stored transposed as (C_in, C_out); biases as (1, C_out)."""
    dims = [(C_IN, C1), (C1, C2), (C2, C3), (C3, C_OUT)]
    params = []
    for cin, cout in dims:
        key, kw, kb = jax.random.split(key, 3)
        bound = 1.0 / jnp.sqrt(float(cin))
        w = jax.random.uniform(kw, (cin, cout), jnp.float32, -bound, bound)
        b = jax.random.uniform(kb, (1, cout), jnp.float32, -bound, bound)
        params += [w, b]
    return tuple(params)


def x2e_reference(x_bcl, params):
    """Pure-JAX f32 reference for correctness checking (unpadded shapes)."""
    w1, b1, w2, b2, w3, b3, wf, bf = params
    x = x_bcl[:, :, 0]
    x = x / jnp.sqrt(jnp.sum(x * x))
    x = jnp.maximum(x @ w1 + b1, 0.0)
    x = jnp.maximum(x @ w2 + b2, 0.0)
    x = jnp.maximum(x @ w3 + b3, 0.0)
    y = x @ wf + bf
    return y / jnp.sqrt(jnp.sum(y * y))


if __name__ == "__main__":
    key = jax.random.PRNGKey(0)
    key, kx, kp = jax.random.split(key, 3)

    B = 2
    x = jax.random.normal(kx, (B, C_IN, 1), jnp.float32)   # PyTorch NCL input
    params = init_params(kp)

    ref = x2e_reference(x, params)

    # Exact path (f32 MXU operands) must match the pure-JAX reference tightly.
    out_f32 = jax.block_until_ready(
        x2e_forward(x, params, compute_dtype=jnp.float32))
    assert out_f32.shape == (B, C_OUT)
    assert jnp.allclose(out_f32, ref, rtol=1e-5, atol=1e-5), "f32 path mismatch"

    # Fast path (bf16 MXU operands, f32 accumulation): bf16-level tolerance,
    # as flagged in the perf review when enabling the bf16 matmul lever.
    out = jax.block_until_ready(x2e_forward(x, params))
    out = jnp.asarray(out)
    assert out.shape == (B, C_OUT)
    assert jnp.allclose(out, ref, rtol=5e-2, atol=5e-3), "bf16 path mismatch"

    print("KERNEL_OK")
</pallas_src>

<mosaic_0001>
module attributes {stable_mosaic.version = 11 : i64} {
  func.func @x2e_kernel(%arg0: i32, %arg1: memref<1xf32, #tpu.memory_space<smem>>, %arg2: memref<8x512xf32, #tpu.memory_space<vmem>>, %arg3: memref<512x512xf32, #tpu.memory_space<vmem>>, %arg4: memref<1x512xf32, #tpu.memory_space<vmem>>, %arg5: memref<512x384xf32, #tpu.memory_space<vmem>>, %arg6: memref<1x384xf32, #tpu.memory_space<vmem>>, %arg7: memref<384x384xf32, #tpu.memory_space<vmem>>, %arg8: memref<1x384xf32, #tpu.memory_space<vmem>>, %arg9: memref<384x256xf32, #tpu.memory_space<vmem>>, %arg10: memref<1x256xf32, #tpu.memory_space<vmem>>, %arg11: memref<8x256xf32, #tpu.memory_space<vmem>>) attributes {dimension_semantics = [#tpu.dimension_semantics<parallel>], iteration_bounds = array<i64: 1>, scalar_prefetch = 1 : i64, scratch_operands = 0 : i64, tpu.core_type = #tpu.core_type<tc>, window_params = [{transform_indices = @transform_0, window_bounds = array<i64: 8, 512>}, {pipeline_mode = #tpu.pipeline_mode<synchronous>, transform_indices = @transform_1, window_bounds = array<i64: 512, 512>}, {pipeline_mode = #tpu.pipeline_mode<synchronous>, transform_indices = @transform_2, window_bounds = array<i64: 1, 512>}, {pipeline_mode = #tpu.pipeline_mode<synchronous>, transform_indices = @transform_3, window_bounds = array<i64: 512, 384>}, {pipeline_mode = #tpu.pipeline_mode<synchronous>, transform_indices = @transform_4, window_bounds = array<i64: 1, 384>}, {pipeline_mode = #tpu.pipeline_mode<synchronous>, transform_indices = @transform_5, window_bounds = array<i64: 384, 384>}, {pipeline_mode = #tpu.pipeline_mode<synchronous>, transform_indices = @transform_6, window_bounds = array<i64: 1, 384>}, {pipeline_mode = #tpu.pipeline_mode<synchronous>, transform_indices = @transform_7, window_bounds = array<i64: 384, 256>}, {pipeline_mode = #tpu.pipeline_mode<synchronous>, transform_indices = @transform_8, window_bounds = array<i64: 1, 256>}, {transform_indices = @transform_9, window_bounds = array<i64: 8, 256>}]} {
    %c0 = arith.constant 0 : index
    %c0_0 = arith.constant 0 : index
    %0 = vector.load %arg2[%c0, %c0_0] : memref<8x512xf32, #tpu.memory_space<vmem>>, vector<8x512xf32>
    %c0_1 = arith.constant 0 : index
    %1 = memref.load %arg1[%c0_1] : memref<1xf32, #tpu.memory_space<smem>>
    %2 = vector.broadcast %1 : f32 to vector<8x512xf32>
    %3 = arith.mulf %0, %2 : vector<8x512xf32>
    %c0_2 = arith.constant 0 : index
    %c0_3 = arith.constant 0 : index
    %4 = vector.load %arg3[%c0_2, %c0_3] : memref<512x512xf32, #tpu.memory_space<vmem>>, vector<512x512xf32>
    %cst = arith.constant dense<0.000000e+00> : vector<8x512xf32>
    %5 = tpu.matmul %3, %4, %cst {dimension_numbers = #tpu.dot_dimension_numbers<[1], [0], [0], [1], [0, 0, 1, 1], [], []>} : vector<8x512xf32>, vector<512x512xf32>, vector<8x512xf32> -> vector<8x512xf32>
    %c0_4 = arith.constant 0 : index
    %c0_5 = arith.constant 0 : index
    %6 = vector.load %arg4[%c0_4, %c0_5] : memref<1x512xf32, #tpu.memory_space<vmem>>, vector<1x512xf32>
    %7 = vector.broadcast %6 : vector<1x512xf32> to vector<8x512xf32>
    %8 = arith.addf %5, %7 : vector<8x512xf32>
    %cst_6 = arith.constant 0.000000e+00 : f32
    %9 = vector.broadcast %cst_6 : f32 to vector<8x512xf32>
    %10 = arith.maximumf %8, %9 : vector<8x512xf32>
    %c0_7 = arith.constant 0 : index
    %c0_8 = arith.constant 0 : index
    %11 = vector.load %arg5[%c0_7, %c0_8] : memref<512x384xf32, #tpu.memory_space<vmem>>, vector<512x384xf32>
    %cst_9 = arith.constant dense<0.000000e+00> : vector<8x384xf32>
    %12 = tpu.matmul %10, %11, %cst_9 {dimension_numbers = #tpu.dot_dimension_numbers<[1], [0], [0], [1], [0, 0, 1, 1], [], []>} : vector<8x512xf32>, vector<512x384xf32>, vector<8x384xf32> -> vector<8x384xf32>
    %c0_10 = arith.constant 0 : index
    %c0_11 = arith.constant 0 : index
    %13 = vector.load %arg6[%c0_10, %c0_11] : memref<1x384xf32, #tpu.memory_space<vmem>>, vector<1x384xf32>
    %14 = vector.broadcast %13 : vector<1x384xf32> to vector<8x384xf32>
    %15 = arith.addf %12, %14 : vector<8x384xf32>
    %cst_12 = arith.constant 0.000000e+00 : f32
    %16 = vector.broadcast %cst_12 : f32 to vector<8x384xf32>
    %17 = arith.maximumf %15, %16 : vector<8x384xf32>
    %c0_13 = arith.constant 0 : index
    %c0_14 = arith.constant 0 : index
    %18 = vector.load %arg7[%c0_13, %c0_14] : memref<384x384xf32, #tpu.memory_space<vmem>>, vector<384x384xf32>
    %cst_15 = arith.constant dense<0.000000e+00> : vector<8x384xf32>
    %19 = tpu.matmul %17, %18, %cst_15 {dimension_numbers = #tpu.dot_dimension_numbers<[1], [0], [0], [1], [0, 0, 1, 1], [], []>} : vector<8x384xf32>, vector<384x384xf32>, vector<8x384xf32> -> vector<8x384xf32>
    %c0_16 = arith.constant 0 : index
    %c0_17 = arith.constant 0 : index
    %20 = vector.load %arg8[%c0_16, %c0_17] : memref<1x384xf32, #tpu.memory_space<vmem>>, vector<1x384xf32>
    %21 = vector.broadcast %20 : vector<1x384xf32> to vector<8x384xf32>
    %22 = arith.addf %19, %21 : vector<8x384xf32>
    %cst_18 = arith.constant 0.000000e+00 : f32
    %23 = vector.broadcast %cst_18 : f32 to vector<8x384xf32>
    %24 = arith.maximumf %22, %23 : vector<8x384xf32>
    %c0_19 = arith.constant 0 : index
    %c0_20 = arith.constant 0 : index
    %25 = vector.load %arg9[%c0_19, %c0_20] : memref<384x256xf32, #tpu.memory_space<vmem>>, vector<384x256xf32>
    %cst_21 = arith.constant dense<0.000000e+00> : vector<8x256xf32>
    %26 = tpu.matmul %24, %25, %cst_21 {dimension_numbers = #tpu.dot_dimension_numbers<[1], [0], [0], [1], [0, 0, 1, 1], [], []>} : vector<8x384xf32>, vector<384x256xf32>, vector<8x256xf32> -> vector<8x256xf32>
    %c0_22 = arith.constant 0 : index
    %c0_23 = arith.constant 0 : index
    %27 = vector.load %arg10[%c0_22, %c0_23] : memref<1x256xf32, #tpu.memory_space<vmem>>, vector<1x256xf32>
    %28 = vector.broadcast %27 : vector<1x256xf32> to vector<8x256xf32>
    %29 = arith.addf %26, %28 : vector<8x256xf32>
    %c0_24 = arith.constant 0 : index
    %c0_25 = arith.constant 0 : index
    %30 = vector.load %arg11[%c0_24, %c0_25] : memref<8x256xf32, #tpu.memory_space<vmem>>, vector<8x256xf32>
    tpu.vector_store %arg11[%c0_24, %c0_25], %29 {strides = array<i32>} : memref<8x256xf32, #tpu.memory_space<vmem>>, vector<8x256xf32>,
    return
  }
  func.func @transform_0(%arg0: i32, %arg1: memref<1xf32, #tpu.memory_space<smem>>) -> (i32, i32) {
    %c0_i32 = arith.constant 0 : i32
    %c0_i32_0 = arith.constant 0 : i32
    return %arg0, %c0_i32 : i32, i32
  }
  func.func @transform_1(%arg0: i32, %arg1: memref<1xf32, #tpu.memory_space<smem>>) -> (i32, i32) {
    %c0_i32 = arith.constant 0 : i32
    %c0_i32_0 = arith.constant 0 : i32
    %c0_i32_1 = arith.constant 0 : i32
    return %c0_i32, %c0_i32_0 : i32, i32
  }
  func.func @transform_2(%arg0: i32, %arg1: memref<1xf32, #tpu.memory_space<smem>>) -> (i32, i32) {
    %c0_i32 = arith.constant 0 : i32
    %c0_i32_0 = arith.constant 0 : i32
    %c0_i32_1 = arith.constant 0 : i32
    return %c0_i32, %c0_i32_0 : i32, i32
  }
  func.func @transform_3(%arg0: i32, %arg1: memref<1xf32, #tpu.memory_space<smem>>) -> (i32, i32) {
    %c0_i32 = arith.constant 0 : i32
    %c0_i32_0 = arith.constant 0 : i32
    %c0_i32_1 = arith.constant 0 : i32
    return %c0_i32, %c0_i32_0 : i32, i32
  }
  func.func @transform_4(%arg0: i32, %arg1: memref<1xf32, #tpu.memory_space<smem>>) -> (i32, i32) {
    %c0_i32 = arith.constant 0 : i32
    %c0_i32_0 = arith.constant 0 : i32
    %c0_i32_1 = arith.constant 0 : i32
    return %c0_i32, %c0_i32_0 : i32, i32
  }
  func.func @transform_5(%arg0: i32, %arg1: memref<1xf32, #tpu.memory_space<smem>>) -> (i32, i32) {
    %c0_i32 = arith.constant 0 : i32
    %c0_i32_0 = arith.constant 0 : i32
    %c0_i32_1 = arith.constant 0 : i32
    return %c0_i32, %c0_i32_0 : i32, i32
  }
  func.func @transform_6(%arg0: i32, %arg1: memref<1xf32, #tpu.memory_space<smem>>) -> (i32, i32) {
    %c0_i32 = arith.constant 0 : i32
    %c0_i32_0 = arith.constant 0 : i32
    %c0_i32_1 = arith.constant 0 : i32
    return %c0_i32, %c0_i32_0 : i32, i32
  }
  func.func @transform_7(%arg0: i32, %arg1: memref<1xf32, #tpu.memory_space<smem>>) -> (i32, i32) {
    %c0_i32 = arith.constant 0 : i32
    %c0_i32_0 = arith.constant 0 : i32
    %c0_i32_1 = arith.constant 0 : i32
    return %c0_i32, %c0_i32_0 : i32, i32
  }
  func.func @transform_8(%arg0: i32, %arg1: memref<1xf32, #tpu.memory_space<smem>>) -> (i32, i32) {
    %c0_i32 = arith.constant 0 : i32
    %c0_i32_0 = arith.constant 0 : i32
    %c0_i32_1 = arith.constant 0 : i32
    return %c0_i32, %c0_i32_0 : i32, i32
  }
  func.func @transform_9(%arg0: i32, %arg1: memref<1xf32, #tpu.memory_space<smem>>) -> (i32, i32) {
    %c0_i32 = arith.constant 0 : i32
    %c0_i32_0 = arith.constant 0 : i32
    return %arg0, %c0_i32 : i32, i32
  }
}

module attributes {stable_mosaic.version = 11 : i64} {
  func.func @x2e_kernel(%arg0: i32, %arg1: memref<1xf32, #tpu.memory_space<smem>>, %arg2: memref<8x512xf32, #tpu.memory_space<vmem>>, %arg3: memref<512x512xf32, #tpu.memory_space<vmem>>, %arg4: memref<1x512xf32, #tpu.memory_space<vmem>>, %arg5: memref<512x384xf32, #tpu.memory_space<vmem>>, %arg6: memref<1x384xf32, #tpu.memory_space<vmem>>, %arg7: memref<384x384xf32, #tpu.memory_space<vmem>>, %arg8: memref<1x384xf32, #tpu.memory_space<vmem>>, %arg9: memref<384x256xf32, #tpu.memory_space<vmem>>, %arg10: memref<1x256xf32, #tpu.memory_space<vmem>>, %arg11: memref<8x256xf32, #tpu.memory_space<vmem>>) attributes {dimension_semantics = [#tpu.dimension_semantics<parallel>], iteration_bounds = array<i64: 1>, scalar_prefetch = 1 : i64, scratch_operands = 0 : i64, tpu.core_type = #tpu.core_type<tc>, window_params = [{transform_indices = @transform_0, window_bounds = array<i64: 8, 512>}, {pipeline_mode = #tpu.pipeline_mode<synchronous>, transform_indices = @transform_1, window_bounds = array<i64: 512, 512>}, {pipeline_mode = #tpu.pipeline_mode<synchronous>, transform_indices = @transform_2, window_bounds = array<i64: 1, 512>}, {pipeline_mode = #tpu.pipeline_mode<synchronous>, transform_indices = @transform_3, window_bounds = array<i64: 512, 384>}, {pipeline_mode = #tpu.pipeline_mode<synchronous>, transform_indices = @transform_4, window_bounds = array<i64: 1, 384>}, {pipeline_mode = #tpu.pipeline_mode<synchronous>, transform_indices = @transform_5, window_bounds = array<i64: 384, 384>}, {pipeline_mode = #tpu.pipeline_mode<synchronous>, transform_indices = @transform_6, window_bounds = array<i64: 1, 384>}, {pipeline_mode = #tpu.pipeline_mode<synchronous>, transform_indices = @transform_7, window_bounds = array<i64: 384, 256>}, {pipeline_mode = #tpu.pipeline_mode<synchronous>, transform_indices = @transform_8, window_bounds = array<i64: 1, 256>}, {transform_indices = @transform_9, window_bounds = array<i64: 8, 256>}]} {
    %c0 = arith.constant 0 : index
    %c0_0 = arith.constant 0 : index
    %0 = vector.load %arg2[%c0, %c0_0] : memref<8x512xf32, #tpu.memory_space<vmem>>, vector<8x512xf32>
    %c0_1 = arith.constant 0 : index
    %1 = memref.load %arg1[%c0_1] : memref<1xf32, #tpu.memory_space<smem>>
    %2 = vector.broadcast %1 : f32 to vector<8x512xf32>
    %3 = arith.mulf %0, %2 : vector<8x512xf32>
    %c0_2 = arith.constant 0 : index
    %c0_3 = arith.constant 0 : index
    %4 = vector.load %arg3[%c0_2, %c0_3] : memref<512x512xf32, #tpu.memory_space<vmem>>, vector<512x512xf32>
    %cst = arith.constant dense<0.000000e+00> : vector<8x512xf32>
    %5 = tpu.matmul %3, %4, %cst {dimension_numbers = #tpu.dot_dimension_numbers<[1], [0], [0], [1], [0, 0, 1, 1], [], []>} : vector<8x512xf32>, vector<512x512xf32>, vector<8x512xf32> -> vector<8x512xf32>
    %c0_4 = arith.constant 0 : index
    %c0_5 = arith.constant 0 : index
    %6 = vector.load %arg4[%c0_4, %c0_5] : memref<1x512xf32, #tpu.memory_space<vmem>>, vector<1x512xf32>
    %7 = vector.broadcast %6 : vector<1x512xf32> to vector<8x512xf32>
    %8 = arith.addf %5, %7 : vector<8x512xf32>
    %cst_6 = arith.constant 0.000000e+00 : f32
    %9 = vector.broadcast %cst_6 : f32 to vector<8x512xf32>
    %10 = arith.maximumf %8, %9 : vector<8x512xf32>
    %c0_7 = arith.constant 0 : index
    %c0_8 = arith.constant 0 : index
    %11 = vector.load %arg5[%c0_7, %c0_8] : memref<512x384xf32, #tpu.memory_space<vmem>>, vector<512x384xf32>
    %cst_9 = arith.constant dense<0.000000e+00> : vector<8x384xf32>
    %12 = tpu.matmul %10, %11, %cst_9 {dimension_numbers = #tpu.dot_dimension_numbers<[1], [0], [0], [1], [0, 0, 1, 1], [], []>} : vector<8x512xf32>, vector<512x384xf32>, vector<8x384xf32> -> vector<8x384xf32>
    %c0_10 = arith.constant 0 : index
    %c0_11 = arith.constant 0 : index
    %13 = vector.load %arg6[%c0_10, %c0_11] : memref<1x384xf32, #tpu.memory_space<vmem>>, vector<1x384xf32>
    %14 = vector.broadcast %13 : vector<1x384xf32> to vector<8x384xf32>
    %15 = arith.addf %12, %14 : vector<8x384xf32>
    %cst_12 = arith.constant 0.000000e+00 : f32
    %16 = vector.broadcast %cst_12 : f32 to vector<8x384xf32>
    %17 = arith.maximumf %15, %16 : vector<8x384xf32>
    %c0_13 = arith.constant 0 : index
    %c0_14 = arith.constant 0 : index
    %18 = vector.load %arg7[%c0_13, %c0_14] : memref<384x384xf32, #tpu.memory_space<vmem>>, vector<384x384xf32>
    %cst_15 = arith.constant dense<0.000000e+00> : vector<8x384xf32>
    %19 = tpu.matmul %17, %18, %cst_15 {dimension_numbers = #tpu.dot_dimension_numbers<[1], [0], [0], [1], [0, 0, 1, 1], [], []>} : vector<8x384xf32>, vector<384x384xf32>, vector<8x384xf32> -> vector<8x384xf32>
    %c0_16 = arith.constant 0 : index
    %c0_17 = arith.constant 0 : index
    %20 = vector.load %arg8[%c0_16, %c0_17] : memref<1x384xf32, #tpu.memory_space<vmem>>, vector<1x384xf32>
    %21 = vector.broadcast %20 : vector<1x384xf32> to vector<8x384xf32>
    %22 = arith.addf %19, %21 : vector<8x384xf32>
    %cst_18 = arith.constant 0.000000e+00 : f32
    %23 = vector.broadcast %cst_18 : f32 to vector<8x384xf32>
    %24 = arith.maximumf %22, %23 : vector<8x384xf32>
    %c0_19 = arith.constant 0 : index
    %c0_20 = arith.constant 0 : index
    %25 = vector.load %arg9[%c0_19, %c0_20] : memref<384x256xf32, #tpu.memory_space<vmem>>, vector<384x256xf32>
    %cst_21 = arith.constant dense<0.000000e+00> : vector<8x256xf32>
    %26 = tpu.matmul %24, %25, %cst_21 {dimension_numbers = #tpu.dot_dimension_numbers<[1], [0], [0], [1], [0, 0, 1, 1], [], []>} : vector<8x384xf32>, vector<384x256xf32>, vector<8x256xf32> -> vector<8x256xf32>
    %c0_22 = arith.constant 0 : index
    %c0_23 = arith.constant 0 : index
    %27 = vector.load %arg10[%c0_22, %c0_23] : memref<1x256xf32, #tpu.memory_space<vmem>>, vector<1x256xf32>
    %28 = vector.broadcast %27 : vector<1x256xf32> to vector<8x256xf32>
    %29 = arith.addf %26, %28 : vector<8x256xf32>
    %c0_24 = arith.constant 0 : index
    %c0_25 = arith.constant 0 : index
    %30 = vector.load %arg11[%c0_24, %c0_25] : memref<8x256xf32, #tpu.memory_space<vmem>>, vector<8x256xf32>
    tpu.vector_store %arg11[%c0_24, %c0_25], %29 {strides = array<i32>} : memref<8x256xf32, #tpu.memory_space<vmem>>, vector<8x256xf32>,
    return
  }
  func.func @transform_0(%arg0: i32, %arg1: memref<1xf32, #tpu.memory_space<smem>>) -> (i32, i32) {
    %c0_i32 = arith.constant 0 : i32
    %c0_i32_0 = arith.constant 0 : i32
    return %arg0, %c0_i32 : i32, i32
  }
  func.func @transform_1(%arg0: i32, %arg1: memref<1xf32, #tpu.memory_space<smem>>) -> (i32, i32) {
    %c0_i32 = arith.constant 0 : i32
    %c0_i32_0 = arith.constant 0 : i32
    %c0_i32_1 = arith.constant 0 : i32
    return %c0_i32, %c0_i32_0 : i32, i32
  }
  func.func @transform_2(%arg0: i32, %arg1: memref<1xf32, #tpu.memory_space<smem>>) -> (i32, i32) {
    %c0_i32 = arith.constant 0 : i32
    %c0_i32_0 = arith.constant 0 : i32
    %c0_i32_1 = arith.constant 0 : i32
    return %c0_i32, %c0_i32_0 : i32, i32
  }
  func.func @transform_3(%arg0: i32, %arg1: memref<1xf32, #tpu.memory_space<smem>>) -> (i32, i32) {
    %c0_i32 = arith.constant 0 : i32
    %c0_i32_0 = arith.constant 0 : i32
    %c0_i32_1 = arith.constant 0 : i32
    return %c0_i32, %c0_i32_0 : i32, i32
  }
  func.func @transform_4(%arg0: i32, %arg1: memref<1xf32, #tpu.memory_space<smem>>) -> (i32, i32) {
    %c0_i32 = arith.constant 0 : i32
    %c0_i32_0 = arith.constant 0 : i32
    %c0_i32_1 = arith.constant 0 : i32
    return %c0_i32, %c0_i32_0 : i32, i32
  }
  func.func @transform_5(%arg0: i32, %arg1: memref<1xf32, #tpu.memory_space<smem>>) -> (i32, i32) {
    %c0_i32 = arith.constant 0 : i32
    %c0_i32_0 = arith.constant 0 : i32
    %c0_i32_1 = arith.constant 0 : i32
    return %c0_i32, %c0_i32_0 : i32, i32
  }
  func.func @transform_6(%arg0: i32, %arg1: memref<1xf32, #tpu.memory_space<smem>>) -> (i32, i32) {
    %c0_i32 = arith.constant 0 : i32
    %c0_i32_0 = arith.constant 0 : i32
    %c0_i32_1 = arith.constant 0 : i32
    return %c0_i32, %c0_i32_0 : i32, i32
  }
  func.func @transform_7(%arg0: i32, %arg1: memref<1xf32, #tpu.memory_space<smem>>) -> (i32, i32) {
    %c0_i32 = arith.constant 0 : i32
    %c0_i32_0 = arith.constant 0 : i32
    %c0_i32_1 = arith.constant 0 : i32
    return %c0_i32, %c0_i32_0 : i32, i32
  }
  func.func @transform_8(%arg0: i32, %arg1: memref<1xf32, #tpu.memory_space<smem>>) -> (i32, i32) {
    %c0_i32 = arith.constant 0 : i32
    %c0_i32_0 = arith.constant 0 : i32
    %c0_i32_1 = arith.constant 0 : i32
    return %c0_i32, %c0_i32_0 : i32, i32
  }
  func.func @transform_9(%arg0: i32, %arg1: memref<1xf32, #tpu.memory_space<smem>>) -> (i32, i32) {
    %c0_i32 = arith.constant 0 : i32
    %c0_i32_0 = arith.constant 0 : i32
    return %arg0, %c0_i32 : i32, i32
  }
}

</mosaic_0001>

<bundles_post_ra>
// kernel: tpu_custom_call.1
= control target key start
LH: loop header
LB: loop body
LE: loop exit
PB: predicated region body
PF: predicated region fallthrough
CT: control target
= control target key end

     0   :  { %16 = vsyncpa [#allocation5], 0  ;;  %s3143_s0 = inlined_call_operand.<no memory space> [shape: f32[1], index: 0, kind: input, shape index: {}]   ;;  %s3144_s1 = inlined_call_operand.hbm [shape: f32[8,512], index: 1, kind: input, shape index: {}]   ;;  %s3145_s2 = inlined_call_operand.hbm [shape: f32[512,512], index: 2, kind: input, shape index: {}]   ;;  %s3146_s3 = inlined_call_operand.vmem [shape: f32[1,512], index: 3, kind: input, shape index: {}]   ;;  %s3147_s4 = inlined_call_operand.hbm [shape: f32[512,384], index: 4, kind: input, shape index: {}]   ;;  %s3148_s5 = inlined_call_operand.vmem [shape: f32[1,384], index: 5, kind: input, shape index: {}]   ;;  %s3149_s6 = inlined_call_operand.hbm [shape: f32[384,384], index: 6, kind: input, shape index: {}]   ;;  %s3150_s7 = inlined_call_operand.vmem [shape: f32[1,384], index: 7, kind: input, shape index: {}]   ;;  %s3151_s8 = inlined_call_operand.hbm [shape: f32[384,256], index: 8, kind: input, shape index: {}]   ;;  %s3152_s9 = inlined_call_operand.vmem [shape: f32[1,256], index: 9, kind: input, shape index: {}]   ;;  %s3153_s10 = inlined_call_operand.hbm [shape: f32[8,256], index: 10, kind: output, shape index: {}]  }
   0x1   :  { %17 = vsyncpa [#allocation8], 0 }
   0x2   :  { %18 = vsyncpa [#allocation11], 0 }
   0x3   :  { %19 = vsyncpa [#allocation6], 0  ;;  %s2914_s13 = smov [#allocation7]   ;;  %s2774_s17 = scalar_lea.hbm %s3145_s2, 32768 }
   0x4   :  { %s35_s14 = sshll.u32 %s2914_s13, 4  ;;  %p2775_p0 = scmp.ne.s32.totalorder %s3145_s2, %s2774_s17  ;;  %s36_s14 = int_to_ptr.vmem [resolvable:$true] %s35_s14 }
   0x5   :  { %p2778_p1 = scmp.lt.u32.totalorder %s2774_s17, %s3145_s2 }
   0x7   :  { %p2780_p2 = pnand %p2778_p1, %p2775_p0 }
   0x9   :  { %2783 = shalt.err (!%p2780_p2)
}
   0xa   :  { %s2784_s22 = scalar_lea.vmem %s36_s14, 32768  ;;  %p2789_p4 = scmp.lt.s32.totalorder %s36_s14, %s36_s14 }
   0xb   :  { %p2785_p3 = scmp.ne.s32.totalorder %s36_s14, %s2784_s22  ;;  %p2790_p5 = scmp.lt.s32.totalorder %s2784_s22, %s2784_s22 }
   0xd   :  { %p2791_p6 = por %p2790_p5, %p2789_p4 }
   0xf   :  { %p2792_p7 = pnand %p2791_p6, %p2785_p3 }
  0x11   :  { %2795 = shalt.err (!%p2792_p7)
}
  0x12   :  { %s2915_s23 = smov 512   ;;  %s2916_s24 = smov 32  }
  0x13   :  { %41 = dma.hbm_to_vmem [thread:$0]  %s3145_s2, 32768, %s36_s14, [#allocation8], %s2915_s23, %s2915_s23, %s2916_s24  }
  0x14   :  { %s2917_s27 = smov [#allocation10]   ;;  %s2918_s29 = smov [#allocation4]  }
  0x15   :  { %s63_s28 = sshll.u32 %s2917_s27, 4  ;;  %s26_s30 = sshll.u32 %s2918_s29, 4  ;;  %s64_s28 = int_to_ptr.vmem [resolvable:$true] %s63_s28  ;;  %s27_s30 = int_to_ptr.vmem [resolvable:$true] %s26_s30 }
  0x16   :  { %s2796_s13 = scalar_lea.hbm %s3149_s6, 18432 }
  0x17   :  { %p2797_p8 = scmp.ne.s32.totalorder %s3149_s6, %s2796_s13  ;;  %p2800_p9 = scmp.lt.u32.totalorder %s2796_s13, %s3149_s6 }
  0x19   :  { %p2802_p10 = pnand %p2800_p9, %p2797_p8 }
  0x1b   :  { %2805 = shalt.err (!%p2802_p10)
}
  0x1c   :  { %s2806_s2 = scalar_lea.vmem %s64_s28, 18432  ;;  %p2811_p12 = scmp.lt.s32.totalorder %s64_s28, %s64_s28 }
  0x1d   :  { %p2807_p11 = scmp.ne.s32.totalorder %s64_s28, %s2806_s2  ;;  %p2812_p13 = scmp.lt.s32.totalorder %s2806_s2, %s2806_s2 }
  0x1f   :  { %p2813_p0 = por %p2812_p13, %p2811_p12 }
  0x21   :  { %p2814_p1 = pnand %p2813_p0, %p2807_p11 }
  0x23   :  { %2817 = shalt.err (!%p2814_p1)
}
  0x24   :  { %s2919_s14 = smov 384   ;;  %s2920_s19 = smov 24  }
  0x25   :  { %69 = dma.hbm_to_vmem [thread:$0]  %s3149_s6, 18432, %s64_s28, [#allocation11], %s2919_s14, %s2919_s14, %s2920_s19  }
  0x26   :  { %s2818_s24 = scalar_lea.hbm %s3144_s1, 512 }
  0x27   :  { %p2819_p2 = scmp.ne.s32.totalorder %s3144_s1, %s2818_s24  ;;  %p2822_p3 = scmp.lt.u32.totalorder %s2818_s24, %s3144_s1 }
  0x29   :  { %p2824_p4 = pnand %p2822_p3, %p2819_p2 }
  0x2b   :  { %2827 = shalt.err (!%p2824_p4)
}
  0x2c   :  { %s2828_s11 = scalar_lea.vmem %s27_s30, 512  ;;  %p2833_p6 = scmp.lt.s32.totalorder %s27_s30, %s27_s30 }
  0x2d   :  { %p2829_p5 = scmp.ne.s32.totalorder %s27_s30, %s2828_s11  ;;  %p2834_p7 = scmp.lt.s32.totalorder %s2828_s11, %s2828_s11 }
  0x2f   :  { %p2835_p8 = por %p2834_p7, %p2833_p6 }
  0x31   :  { %p2836_p9 = pnand %p2835_p8, %p2829_p5 }
  0x33   :  { %2839 = shalt.err (!%p2836_p9)
}
  0x34   :  { %29 = dma.hbm_to_vmem [thread:$0]  %s3144_s1, 512, %s27_s30, [#allocation5]  }
  0x35   :  { %s2921_s12 = smov [#allocation9]   ;;  %s2922_s15 = smov [#allocation12]  }
  0x36   :  { %s49_s13 = sshll.u32 %s2921_s12, 4  ;;  %s77_s16 = sshll.u32 %s2922_s15, 4  ;;  %s50_s13 = int_to_ptr.vmem [resolvable:$true] %s49_s13  ;;  %s78_s16 = int_to_ptr.vmem [resolvable:$true] %s77_s16 }
  0x37   :  { %s2840_s2 = scalar_lea.hbm %s3147_s4, 24576 }
  0x38   :  { %p2841_p10 = scmp.ne.s32.totalorder %s3147_s4, %s2840_s2  ;;  %p2844_p11 = scmp.lt.u32.totalorder %s2840_s2, %s3147_s4 }
  0x3a   :  { %p2846_p12 = pnand %p2844_p11, %p2841_p10 }
  0x3c   :  { %2849 = shalt.err (!%p2846_p12)
}
  0x3d   :  { %s2850_s1 = scalar_lea.vmem %s50_s13, 24576  ;;  %p2855_p0 = scmp.lt.s32.totalorder %s50_s13, %s50_s13 }
  0x3e   :  { %p2851_p13 = scmp.ne.s32.totalorder %s50_s13, %s2850_s1  ;;  %p2856_p1 = scmp.lt.s32.totalorder %s2850_s1, %s2850_s1 }
  0x40   :  { %p2857_p2 = por %p2856_p1, %p2855_p0 }
  0x42   :  { %p2858_p3 = pnand %p2857_p2, %p2851_p13 }
  0x44   :  { %2861 = shalt.err (!%p2858_p3)
}
  0x45   :  { %55 = dma.hbm_to_vmem [thread:$0]  %s3147_s4, 24576, %s50_s13, [#allocation8], %s2919_s14, %s2919_s14, %s2920_s19  }
  0x46   :  { %s2862_s27 = scalar_lea.hbm %s3151_s8, 12288 }
  0x47   :  { %p2863_p4 = scmp.ne.s32.totalorder %s3151_s8, %s2862_s27  ;;  %p2866_p5 = scmp.lt.u32.totalorder %s2862_s27, %s3151_s8 }
  0x49   :  { %p2868_p6 = pnand %p2866_p5, %p2863_p4 }
  0x4b   :  { %2871 = shalt.err (!%p2868_p6)
}
  0x4c   :  { %s2872_s12 = scalar_lea.vmem %s78_s16, 12288  ;;  %p2877_p8 = scmp.lt.s32.totalorder %s78_s16, %s78_s16 }
  0x4d   :  { %p2873_p7 = scmp.ne.s32.totalorder %s78_s16, %s2872_s12  ;;  %p2878_p9 = scmp.lt.s32.totalorder %s2872_s12, %s2872_s12 }
  0x4f   :  { %p2879_p10 = por %p2878_p9, %p2877_p8 }
  0x51   :  { %p2880_p11 = pnand %p2879_p10, %p2873_p7 }
  0x53   :  { %2883 = shalt.err (!%p2880_p11)
}
  0x54   :  { %s2923_s4 = smov 256   ;;  %s2924_s14 = smov 16  }
  0x55   :  { %83 = dma.hbm_to_vmem [thread:$0]  %s3151_s8, 12288, %s78_s16, [#allocation11], %s2923_s4, %s2923_s4, %s2924_s14  }
  0x56   :  { %2906 = dma.done.wait [#allocation5], 512  }
  0x57   :  { %2907 = vsyncadd [#allocation5], 4294966784 }
  0x58   :  { %2908 = dma.done.wait [#allocation8], 57344  }
  0x59   :  { %2909 = vsyncadd [#allocation8], 4294909952 }
  0x5a   :  { %2910 = dma.done.wait [#allocation11], 30720  }
  0x5b   :  { %2911 = vsyncadd [#allocation11], 4294936576  ;;  %v112_v0 = vld [vmem:[#allocation7 + $0x8] sm:$0xff]  ;;  %v114_v2 = vld [vmem:[#allocation7 + $0x18] sm:$0xff]  ;;  %vm2927_vm0 = vmmov 0   ;;  %s2928_s20 = smov [#allocation13]  }
  0x5c   :  { %v116_v1 = vld [vmem:[#allocation7 + $0x28] sm:$0xff]  ;;  %v118_v4 = vld [vmem:[#allocation7 + $0x38] sm:$0xff]  ;;  %v111_v5 = vld [vmem:[#allocation7] sm:$0xff]  ;;  %s1875_s21 = sshll.u32 %s2928_s20, 4  ;;  %s1876_s21 = int_to_ptr.vmem [resolvable:$true] %s1875_s21 }
  0x5d   :  { %v2043_v3 = vpack.c.bf16 %v116_v1, %v112_v0  ;;  %v115_v6 = vld [vmem:[#allocation7 + $0x20] sm:$0xff]  ;;  %v2171_v7 = vpack.c.bf16 %v118_v4, %v114_v2  ;;  %v113_v9 = vld [vmem:[#allocation7 + $0x10] sm:$0xff]  ;;  %v120_v11 = vld [vmem:[#allocation7 + $0x48] sm:$0xff]  ;;  %s2884_s22 = scalar_lea.vmem %s1876_s21, 256  ;;  %p2889_p13 = scmp.lt.s32.totalorder %s1876_s21, %s1876_s21 }
  0x5e   :  { %v2045_v8 = vpack.c.bf16 %v115_v6, %v111_v5  ;;  %v117_v10 = vld [vmem:[#allocation7 + $0x30] sm:$0xff]  ;;  %v124_v13 = vld [vmem:[#allocation7 + $0x68] sm:$0xff]  ;;  %v122_v14 = vld [vmem:[#allocation7 + $0x58] sm:$0xff]  ;;  %p2885_p12 = scmp.ne.s32.totalorder %s1876_s21, %s2884_s22  ;;  %p2890_p0 = scmp.lt.s32.totalorder %s2884_s22, %s2884_s22 }
  0x5f   :  { %2044 = vmatprep.subr.bf16.mxu0 %v2043_v3  ;;  %v2173_v12 = vpack.c.bf16 %v117_v10, %v113_v9  ;;  %v126_v15 = vld [vmem:[#allocation7 + $0x78] sm:$0xff]  ;;  %2172 = vmatprep.subr.bf16.mxu1 %v2171_v7  ;;  %v2047_v16 = vpack.c.bf16 %v124_v13, %v120_v11  ;;  %v119_v18 = vld [vmem:[#allocation7 + $0x40] sm:$0xff]  ;;  %v121_v20 = vld [vmem:[#allocation7 + $0x50] sm:$0xff] }
  0x60   :  { %2046 = vmatpush1.bf16.msra.mxu0 %v2045_v8  ;;  %v2175_v17 = vpack.c.bf16 %v126_v15, %v122_v14  ;;  %v123_v19 = vld [vmem:[#allocation7 + $0x60] sm:$0xff]  ;;  %v125_v22 = vld [vmem:[#allocation7 + $0x70] sm:$0xff]  ;;  %v128_v23 = vld [vmem:[#allocation7 + $0x88] sm:$0xff]  ;;  %p2891_p1 = por %p2890_p0, %p2889_p13 }
  0x61   :  { %2174 = vmatpush1.bf16.msra.mxu1 %v2173_v12  ;;  %v2049_v21 = vpack.c.bf16 %v123_v19, %v119_v18  ;;  %v132_v24 = vld [vmem:[#allocation7 + $0xa8] sm:$0xff]  ;;  %2048 = vmatprep.subr.bf16.mxu0 %v2047_v16  ;;  %v2177_v25 = vpack.c.bf16 %v125_v22, %v121_v20  ;;  %v130_v27 = vld [vmem:[#allocation7 + $0x98] sm:$0xff]  ;;  %v127_v29 = vld [vmem:[#allocation7 + $0x80] sm:$0xff] }
  0x62   :  { %2176 = vmatprep.subr.bf16.mxu1 %v2175_v17  ;;  %v2051_v26 = vpack.c.bf16 %v132_v24, %v128_v23  ;;  %v134_v28 = vld [vmem:[#allocation7 + $0xb8] sm:$0xff]  ;;  %v131_v31 = vld [vmem:[#allocation7 + $0xa0] sm:$0xff]  ;;  %v129_v32 = vld [vmem:[#allocation7 + $0x90] sm:$0xff]  ;;  %p2892_p2 = pnand %p2891_p1, %p2885_p12 }
  0x63   :  { %v2179_v30 = vpack.c.bf16 %v134_v28, %v130_v27  ;;  %v133_v33 = vld [vmem:[#allocation7 + $0xb0] sm:$0xff]  ;;  %v2053_v34 = vpack.c.bf16 %v131_v31, %v127_v29  ;;  %v136_v35 = vld [vmem:[#allocation7 + $0xc8] sm:$0xff]  ;;  %v138_v37 = vld [vmem:[#allocation7 + $0xd8] sm:$0xff] }
  0x64   :  { %2050 = vmatpush1.bf16.msra.mxu0 %v2049_v21  ;;  %v140_v36 = vld [vmem:[#allocation7 + $0xe8] sm:$0xff]  ;;  %v2181_v38 = vpack.c.bf16 %v133_v33, %v129_v32  ;;  %v142_v40 = vld [vmem:[#allocation7 + $0xf8] sm:$0xff]  ;;  %v135_v41 = vld [vmem:[#allocation7 + $0xc0] sm:$0xff] }
  0x65   :  { %2178 = vmatpush1.bf16.msra.mxu1 %v2177_v25  ;;  %2052 = vmatprep.subr.bf16.mxu0 %v2051_v26  ;;  %v2055_v39 = vpack.c.bf16 %v140_v36, %v136_v35  ;;  %v139_v42 = vld [vmem:[#allocation7 + $0xe0] sm:$0xff]  ;;  %v2183_v43 = vpack.c.bf16 %v142_v40, %v138_v37  ;;  %v137_v44 = vld [vmem:[#allocation7 + $0xd0] sm:$0xff]  ;;  %v144_v46 = vld [vmem:[#allocation7 + $0x108] sm:$0xff] }
  0x66   :  { %2180 = vmatprep.subr.bf16.mxu1 %v2179_v30  ;;  %v141_v45 = vld [vmem:[#allocation7 + $0xf0] sm:$0xff]  ;;  %v148_v47 = vld [vmem:[#allocation7 + $0x128] sm:$0xff]  ;;  %v146_v48 = vld [vmem:[#allocation7 + $0x118] sm:$0xff]  ;;  %v2057_v50 = vpack.c.bf16 %v139_v42, %v135_v41 }
  0x67   :  { %v150_v49 = vld [vmem:[#allocation7 + $0x138] sm:$0xff]  ;;  %v2185_v51 = vpack.c.bf16 %v141_v45, %v137_v44  ;;  %v2059_v52 = vpack.c.bf16 %v148_v47, %v144_v46  ;;  %v143_v53 = vld [vmem:[#allocation7 + $0x100] sm:$0xff]  ;;  %v145_v55 = vld [vmem:[#allocation7 + $0x110] sm:$0xff] }
  0x68   :  { %2054 = vmatpush1.bf16.msra.mxu0 %v2053_v34  ;;  %v147_v54 = vld [vmem:[#allocation7 + $0x120] sm:$0xff]  ;;  %v2187_v56 = vpack.c.bf16 %v150_v49, %v146_v48  ;;  %v149_v57 = vld [vmem:[#allocation7 + $0x130] sm:$0xff]  ;;  %v152_v58 = vld [vmem:[#allocation7 + $0x148] sm:$0xff] }
  0x69   :  { %2182 = vmatpush1.bf16.msra.mxu1 %v2181_v38  ;;  %2056 = vmatprep.subr.bf16.mxu0 %v2055_v39  ;;  %v156_v59 = vld [vmem:[#allocation7 + $0x168] sm:$0xff]  ;;  %v154_v60 = vld [vmem:[#allocation7 + $0x158] sm:$0xff]  ;;  %v2061_v62 = vpack.c.bf16 %v147_v54, %v143_v53  ;;  %v2189_v63 = vpack.c.bf16 %v149_v57, %v145_v55  ;;  %v151_v1 = vld [vmem:[#allocation7 + $0x140] sm:$0xff] }
  0x6a   :  { %2184 = vmatprep.subr.bf16.mxu1 %v2183_v43  ;;  %v158_v61 = vld [vmem:[#allocation7 + $0x178] sm:$0xff]  ;;  %v2063_v0 = vpack.c.bf16 %v156_v59, %v152_v58  ;;  %v155_v2 = vld [vmem:[#allocation7 + $0x160] sm:$0xff]  ;;  %v153_v3 = vld [vmem:[#allocation7 + $0x150] sm:$0xff] }
  0x6b   :  { %v2191_v4 = vpack.c.bf16 %v158_v61, %v154_v60  ;;  %v157_v5 = vld [vmem:[#allocation7 + $0x170] sm:$0xff]  ;;  %v160_v6 = vld [vmem:[#allocation7 + $0x188] sm:$0xff]  ;;  %v162_v8 = vld [vmem:[#allocation7 + $0x198] sm:$0xff]  ;;  %v2065_v10 = vpack.c.bf16 %v155_v2, %v151_v1 }
  0x6c   :  { %2058 = vmatpush1.bf16.msra.mxu0 %v2057_v50  ;;  %v164_v7 = vld [vmem:[#allocation7 + $0x1a8] sm:$0xff]  ;;  %v166_v9 = vld [vmem:[#allocation7 + $0x1b8] sm:$0xff]  ;;  %v2193_v11 = vpack.c.bf16 %v157_v5, %v153_v3  ;;  %v159_v13 = vld [vmem:[#allocation7 + $0x180] sm:$0xff] }
  0x6d   :  { %2186 = vmatpush1.bf16.msra.mxu1 %v2185_v51  ;;  %2060 = vmatprep.subr.bf16.mxu0 %v2059_v52  ;;  %v2067_v12 = vpack.c.bf16 %v164_v7, %v160_v6  ;;  %v163_v14 = vld [vmem:[#allocation7 + $0x1a0] sm:$0xff]  ;;  %v161_v15 = vld [vmem:[#allocation7 + $0x190] sm:$0xff]  ;;  %v2195_v16 = vpack.c.bf16 %v166_v9, %v162_v8  ;;  %v168_v18 = vld [vmem:[#allocation7 + $0x1c8] sm:$0xff]  ;;  %v3053_v8 = vstv %s3143_s0 }
  0x6e   :  { %2188 = vmatprep.subr.bf16.mxu1 %v2187_v56  ;;  %v165_v17 = vld [vmem:[#allocation7 + $0x1b0] sm:$0xff]  ;;  %v172_v19 = vld [vmem:[#allocation7 + $0x1e8] sm:$0xff]  ;;  %v170_v20 = vld [vmem:[#allocation7 + $0x1d8] sm:$0xff]  ;;  %v2069_v22 = vpack.c.bf16 %v163_v14, %v159_v13 }
  0x6f   :  { %v174_v21 = vld [vmem:[#allocation7 + $0x1f8] sm:$0xff]  ;;  %v2197_v23 = vpack.c.bf16 %v165_v17, %v161_v15  ;;  %v2071_v24 = vpack.c.bf16 %v172_v19, %v168_v18  ;;  %v167_v25 = vld [vmem:[#allocation7 + $0x1c0] sm:$0xff]  ;;  %v169_v27 = vld [vmem:[#allocation7 + $0x1d0] sm:$0xff] }
  0x70   :  { %2062 = vmatpush1.bf16.msra.mxu0 %v2061_v62  ;;  %v171_v26 = vld [vmem:[#allocation7 + $0x1e0] sm:$0xff]  ;;  %v2199_v28 = vpack.c.bf16 %v174_v21, %v170_v20  ;;  %v173_v29 = vld [vmem:[#allocation7 + $0x1f0] sm:$0xff]  ;;  %v176_v30 = vld [vmem:[#allocation7 + $0x208] sm:$0xff] }
  0x71   :  { %2190 = vmatpush1.bf16.msra.mxu1 %v2189_v63  ;;  %2064 = vmatprep.subr.bf16.mxu0 %v2063_v0  ;;  %v180_v31 = vld [vmem:[#allocation7 + $0x228] sm:$0xff]  ;;  %v178_v32 = vld [vmem:[#allocation7 + $0x218] sm:$0xff]  ;;  %v2073_v34 = vpack.c.bf16 %v171_v26, %v167_v25  ;;  %v2201_v35 = vpack.c.bf16 %v173_v29, %v169_v27  ;;  %v175_v37 = vld [vmem:[#allocation7 + $0x200] sm:$0xff] }
  0x72   :  { %2192 = vmatprep.subr.bf16.mxu1 %v2191_v4  ;;  %v182_v33 = vld [vmem:[#allocation7 + $0x238] sm:$0xff]  ;;  %v2075_v36 = vpack.c.bf16 %v180_v31, %v176_v30  ;;  %v179_v38 = vld [vmem:[#allocation7 + $0x220] sm:$0xff]  ;;  %v177_v39 = vld [vmem:[#allocation7 + $0x210] sm:$0xff] }
  0x73   :  { %v2203_v40 = vpack.c.bf16 %v182_v33, %v178_v32  ;;  %v181_v41 = vld [vmem:[#allocation7 + $0x230] sm:$0xff]  ;;  %v184_v42 = vld [vmem:[#allocation7 + $0x248] sm:$0xff]  ;;  %v186_v44 = vld [vmem:[#allocation7 + $0x258] sm:$0xff]  ;;  %v2077_v46 = vpack.c.bf16 %v179_v38, %v175_v37 }
  0x74   :  { %2066 = vmatpush1.bf16.msra.mxu0 %v2065_v10  ;;  %v188_v43 = vld [vmem:[#allocation7 + $0x268] sm:$0xff]  ;;  %v190_v45 = vld [vmem:[#allocation7 + $0x278] sm:$0xff]  ;;  %v2205_v47 = vpack.c.bf16 %v181_v41, %v177_v39  ;;  %v183_v49 = vld [vmem:[#allocation7 + $0x240] sm:$0xff] }
  0x75   :  { %2194 = vmatpush1.bf16.msra.mxu1 %v2193_v11  ;;  %2068 = vmatprep.subr.bf16.mxu0 %v2067_v12  ;;  %v2079_v48 = vpack.c.bf16 %v188_v43, %v184_v42  ;;  %v187_v50 = vld [vmem:[#allocation7 + $0x260] sm:$0xff]  ;;  %v185_v51 = vld [vmem:[#allocation7 + $0x250] sm:$0xff]  ;;  %v2207_v52 = vpack.c.bf16 %v190_v45, %v186_v44  ;;  %v192_v54 = vld [vmem:[#allocation7 + $0x288] sm:$0xff] }
  0x76   :  { %2196 = vmatprep.subr.bf16.mxu1 %v2195_v16  ;;  %v189_v53 = vld [vmem:[#allocation7 + $0x270] sm:$0xff]  ;;  %v196_v55 = vld [vmem:[#allocation7 + $0x2a8] sm:$0xff]  ;;  %v194_v56 = vld [vmem:[#allocation7 + $0x298] sm:$0xff]  ;;  %v2081_v58 = vpack.c.bf16 %v187_v50, %v183_v49 }
  0x77   :  { %v198_v57 = vld [vmem:[#allocation7 + $0x2b8] sm:$0xff]  ;;  %v2209_v59 = vpack.c.bf16 %v189_v53, %v185_v51  ;;  %v2083_v60 = vpack.c.bf16 %v196_v55, %v192_v54  ;;  %v191_v61 = vld [vmem:[#allocation7 + $0x280] sm:$0xff]  ;;  %v193_v63 = vld [vmem:[#allocation7 + $0x290] sm:$0xff] }
  0x78   :  { %2070 = vmatpush1.bf16.msra.mxu0 %v2069_v22  ;;  %v195_v62 = vld [vmem:[#allocation7 + $0x2a0] sm:$0xff]  ;;  %v2211_v0 = vpack.c.bf16 %v198_v57, %v194_v56  ;;  %v197_v1 = vld [vmem:[#allocation7 + $0x2b0] sm:$0xff]  ;;  %v200_v2 = vld [vmem:[#allocation7 + $0x2c8] sm:$0xff] }
  0x79   :  { %2198 = vmatpush1.bf16.msra.mxu1 %v2197_v23  ;;  %2072 = vmatprep.subr.bf16.mxu0 %v2071_v24  ;;  %v204_v3 = vld [vmem:[#allocation7 + $0x2e8] sm:$0xff]  ;;  %v202_v4 = vld [vmem:[#allocation7 + $0x2d8] sm:$0xff]  ;;  %v2085_v6 = vpack.c.bf16 %v195_v62, %v191_v61  ;;  %v199_v7 = vld [vmem:[#allocation7 + $0x2c0] sm:$0xff]  ;;  %v2213_v9 = vpack.c.bf16 %v197_v1, %v193_v63 }
  0x7a   :  { %2200 = vmatprep.subr.bf16.mxu1 %v2199_v28  ;;  %v206_v5 = vld [vmem:[#allocation7 + $0x2f8] sm:$0xff]  ;;  %v2087_v10 = vpack.c.bf16 %v204_v3, %v200_v2  ;;  %v203_v11 = vld [vmem:[#allocation7 + $0x2e0] sm:$0xff]  ;;  %v201_v12 = vld [vmem:[#allocation7 + $0x2d0] sm:$0xff] }
  0x7b   :  { %v205_v13 = vld [vmem:[#allocation7 + $0x2f0] sm:$0xff]  ;;  %v2215_v14 = vpack.c.bf16 %v206_v5, %v202_v4  ;;  %v208_v15 = vld [vmem:[#allocation7 + $0x308] sm:$0xff]  ;;  %v210_v18 = vld [vmem:[#allocation7 + $0x318] sm:$0xff]  ;;  %v2089_v21 = vpack.c.bf16 %v203_v11, %v199_v7 }
  0x7c   :  { %2074 = vmatpush1.bf16.msra.mxu0 %v2073_v34  ;;  %v212_v16 = vld [vmem:[#allocation7 + $0x328] sm:$0xff]  ;;  %v214_v19 = vld [vmem:[#allocation7 + $0x338] sm:$0xff]  ;;  %v2217_v22 = vpack.c.bf16 %v205_v13, %v201_v12  ;;  %v207_v24 = vld [vmem:[#allocation7 + $0x300] sm:$0xff] }
  0x7d   :  { %2202 = vmatpush1.bf16.msra.mxu1 %v2201_v35  ;;  %2076 = vmatprep.subr.bf16.mxu0 %v2075_v36  ;;  %v102_v17 = vld [vmem:[#allocation4 + $0x8] sm:$0xff]  ;;  %v2091_v23 = vpack.c.bf16 %v212_v16, %v208_v15  ;;  %v211_v25 = vld [vmem:[#allocation7 + $0x320] sm:$0xff]  ;;  %v209_v26 = vld [vmem:[#allocation7 + $0x310] sm:$0xff]  ;;  %v2219_v27 = vpack.c.bf16 %v214_v19, %v210_v18 }
  0x7e   :  { %2204 = vmatprep.subr.bf16.mxu1 %v2203_v40  ;;  %v108_v20 = vmul.f32 %v3053_v8, %v102_v17  ;;  %v213_v28 = vld [vmem:[#allocation7 + $0x330] sm:$0xff]  ;;  %v216_v29 = vld [vmem:[#allocation7 + $0x348] sm:$0xff]  ;;  %v218_v31 = vld [vmem:[#allocation7 + $0x358] sm:$0xff]  ;;  %v2093_v33 = vpack.c.bf16 %v211_v25, %v207_v24 }
  0x7f   :  { %v220_v30 = vld [vmem:[#allocation7 + $0x368] sm:$0xff]  ;;  %v222_v32 = vld [vmem:[#allocation7 + $0x378] sm:$0xff]  ;;  %v2221_v34 = vpack.c.bf16 %v213_v28, %v209_v26  ;;  %v215_v36 = vld [vmem:[#allocation7 + $0x340] sm:$0xff] }
  0x80   :  { %2078 = vmatpush1.bf16.msra.mxu0 %v2077_v46  ;;  %453 = vmatprep.mubr.f32.mxu0 %v108_v20  ;;  %v2095_v35 = vpack.c.bf16 %v220_v30, %v216_v29  ;;  %v219_v37 = vld [vmem:[#allocation7 + $0x360] sm:$0xff]  ;;  %v217_v38 = vld [vmem:[#allocation7 + $0x350] sm:$0xff]  ;;  %v2223_v39 = vpack.c.bf16 %v222_v32, %v218_v31  ;;  %v224_v41 = vld [vmem:[#allocation7 + $0x388] sm:$0xff] }
  0x81   :  { %2206 = vmatpush1.bf16.msra.mxu1 %v2205_v47  ;;  %2080 = vmatprep.subr.bf16.mxu0 %v2079_v48  ;;  %v221_v40 = vld [vmem:[#allocation7 + $0x370] sm:$0xff]  ;;  %v228_v42 = vld [vmem:[#allocation7 + $0x3a8] sm:$0xff]  ;;  %v226_v43 = vld [vmem:[#allocation7 + $0x398] sm:$0xff]  ;;  %v2097_v45 = vpack.c.bf16 %v219_v37, %v215_v36 }
  0x82   :  { %2208 = vmatprep.subr.bf16.mxu1 %v2207_v52  ;;  %595 = vmatprep.mubr.f32.mxu1 %v108_v20  ;;  %v230_v44 = vld [vmem:[#allocation7 + $0x3b8] sm:$0xff]  ;;  %v2225_v46 = vpack.c.bf16 %v221_v40, %v217_v38  ;;  %v2099_v47 = vpack.c.bf16 %v228_v42, %v224_v41  ;;  %v223_v48 = vld [vmem:[#allocation7 + $0x380] sm:$0xff]  ;;  %v225_v50 = vld [vmem:[#allocation7 + $0x390] sm:$0xff] }
  0x83   :  { %v227_v49 = vld [vmem:[#allocation7 + $0x3a0] sm:$0xff]  ;;  %v2227_v51 = vpack.c.bf16 %v230_v44, %v226_v43  ;;  %v229_v52 = vld [vmem:[#allocation7 + $0x3b0] sm:$0xff]  ;;  %v232_v53 = vld [vmem:[#allocation7 + $0x3c8] sm:$0xff] }
  0x84   :  { %2082 = vmatpush1.bf16.msra.mxu0 %v2081_v58  ;;  %v236_v54 = vld [vmem:[#allocation7 + $0x3e8] sm:$0xff]  ;;  %v234_v55 = vld [vmem:[#allocation7 + $0x3d8] sm:$0xff]  ;;  %v2101_v57 = vpack.c.bf16 %v227_v49, %v223_v48  ;;  %v2229_v58 = vpack.c.bf16 %v229_v52, %v225_v50  ;;  %v235_v61 = vld [vmem:[#allocation7 + $0x3e0] sm:$0xff] }
  0x85   :  { %2210 = vmatpush1.bf16.msra.mxu1 %v2209_v59  ;;  %2084 = vmatprep.subr.bf16.mxu0 %v2083_v60  ;;  %v238_v56 = vld [vmem:[#allocation7 + $0x3f8] sm:$0xff]  ;;  %v2103_v59 = vpack.c.bf16 %v236_v54, %v232_v53  ;;  %v231_v60 = vld [vmem:[#allocation7 + $0x3c0] sm:$0xff]  ;;  %v233_v62 = vld [vmem:[#allocation7 + $0x3d0] sm:$0xff] }
  0x86   :  { %2212 = vmatprep.subr.bf16.mxu1 %v2211_v0  ;;  %v2231_v63 = vpack.c.bf16 %v238_v56, %v234_v55  ;;  %v237_v0 = vld [vmem:[#allocation7 + $0x3f0] sm:$0xff]  ;;  %v240_v1 = vld [vmem:[#allocation7 + $0x408] sm:$0xff]  ;;  %v242_v3 = vld [vmem:[#allocation7 + $0x418] sm:$0xff]  ;;  %v2105_v5 = vpack.c.bf16 %v235_v61, %v231_v60 }
  0x87   :  { %v244_v2 = vld [vmem:[#allocation7 + $0x428] sm:$0xff]  ;;  %v246_v4 = vld [vmem:[#allocation7 + $0x438] sm:$0xff]  ;;  %v2233_v7 = vpack.c.bf16 %v237_v0, %v233_v62  ;;  %v243_v11 = vld [vmem:[#allocation7 + $0x420] sm:$0xff] }
  0x88   :  { %2086 = vmatpush1.bf16.msra.mxu0 %v2085_v6  ;;  %v101_v6 = vld [vmem:[#allocation4] sm:$0xff]  ;;  %v241_v12 = vld [vmem:[#allocation7 + $0x410] sm:$0xff]  ;;  %v2235_v13 = vpack.c.bf16 %v246_v4, %v242_v3  ;;  %v248_v15 = vld [vmem:[#allocation7 + $0x448] sm:$0xff] }
  0x89   :  { %2214 = vmatpush1.bf16.msra.mxu1 %v2213_v9  ;;  %2088 = vmatprep.subr.bf16.mxu0 %v2087_v10  ;;  %v2107_v9 = vpack.c.bf16 %v244_v2, %v240_v1  ;;  %v239_v10 = vld [vmem:[#allocation7 + $0x400] sm:$0xff]  ;;  %v252_v16 = vld [vmem:[#allocation7 + $0x468] sm:$0xff]  ;;  %v107_v17 = vmul.f32 %v3053_v8, %v101_v6  ;;  %v250_v18 = vld [vmem:[#allocation7 + $0x458] sm:$0xff] }
  0x8a   :  { %2216 = vmatprep.subr.bf16.mxu1 %v2215_v14  ;;  %v245_v14 = vld [vmem:[#allocation7 + $0x430] sm:$0xff]  ;;  %v254_v19 = vld [vmem:[#allocation7 + $0x478] sm:$0xff]  ;;  %v2109_v20 = vpack.c.bf16 %v243_v11, %v239_v10  ;;  %v251_v24 = vld [vmem:[#allocation7 + $0x460] sm:$0xff] }
  0x8b   :  { %v249_v25 = vld [vmem:[#allocation7 + $0x450] sm:$0xff]  ;;  %v2239_v26 = vpack.c.bf16 %v254_v19, %v250_v18  ;;  %v256_v28 = vld [vmem:[#allocation7 + $0x488] sm:$0xff]  ;;  %v258_v30 = vld [vmem:[#allocation7 + $0x498] sm:$0xff] }
  0x8c   :  { %2090 = vmatpush1.bf16.msra.mxu0 %v2089_v21  ;;  %v2237_v21 = vpack.c.bf16 %v245_v14, %v241_v12  ;;  %v260_v29 = vld [vmem:[#allocation7 + $0x4a8] sm:$0xff]  ;;  %v262_v31 = vld [vmem:[#allocation7 + $0x4b8] sm:$0xff]  ;;  %v259_v36 = vld [vmem:[#allocation7 + $0x4a0] sm:$0xff] }
  0x8d   :  { %2218 = vmatpush1.bf16.msra.mxu1 %v2217_v22  ;;  %2092 = vmatprep.subr.bf16.mxu0 %v2091_v23  ;;  %v2111_v22 = vpack.c.bf16 %v252_v16, %v248_v15  ;;  %v247_v23 = vld [vmem:[#allocation7 + $0x440] sm:$0xff]  ;;  %v257_v37 = vld [vmem:[#allocation7 + $0x490] sm:$0xff]  ;;  %v2243_v38 = vpack.c.bf16 %v262_v31, %v258_v30  ;;  %v264_v40 = vld [vmem:[#allocation7 + $0x4c8] sm:$0xff] }
  0x8e   :  { %2220 = vmatprep.subr.bf16.mxu1 %v2219_v27  ;;  %v253_v27 = vld [vmem:[#allocation7 + $0x470] sm:$0xff]  ;;  %v2113_v32 = vpack.c.bf16 %v251_v24, %v247_v23  ;;  %v268_v41 = vld [vmem:[#allocation7 + $0x4e8] sm:$0xff]  ;;  %v266_v42 = vld [vmem:[#allocation7 + $0x4d8] sm:$0xff] }
  0x8f   :  { %v270_v43 = vld [vmem:[#allocation7 + $0x4f8] sm:$0xff]  ;;  %v267_v48 = vld [vmem:[#allocation7 + $0x4e0] sm:$0xff]  ;;  %v265_v49 = vld [vmem:[#allocation7 + $0x4d0] sm:$0xff] }
  0x90   :  { %2094 = vmatpush1.bf16.msra.mxu0 %v2093_v33  ;;  %v2241_v33 = vpack.c.bf16 %v253_v27, %v249_v25  ;;  %v2247_v50 = vpack.c.bf16 %v270_v43, %v266_v42  ;;  %v272_v52 = vld [vmem:[#allocation7 + $0x508] sm:$0xff]  ;;  %v274_v54 = vld [vmem:[#allocation7 + $0x518] sm:$0xff]  ;;  %v275_v60 = vld [vmem:[#allocation7 + $0x520] sm:$0xff] }
  0x91   :  { %2222 = vmatpush1.bf16.msra.mxu1 %v2221_v34  ;;  %2096 = vmatprep.subr.bf16.mxu0 %v2095_v35  ;;  %v2115_v34 = vpack.c.bf16 %v260_v29, %v256_v28  ;;  %v255_v35 = vld [vmem:[#allocation7 + $0x480] sm:$0xff]  ;;  %v276_v53 = vld [vmem:[#allocation7 + $0x528] sm:$0xff]  ;;  %v278_v55 = vld [vmem:[#allocation7 + $0x538] sm:$0xff] }
  0x92   :  { %2224 = vmatprep.subr.bf16.mxu1 %v2223_v39  ;;  %v261_v39 = vld [vmem:[#allocation7 + $0x4b0] sm:$0xff]  ;;  %v2117_v44 = vpack.c.bf16 %v259_v36, %v255_v35  ;;  %v2251_v62 = vpack.c.bf16 %v278_v55, %v274_v54  ;;  %v280_v0 = vld [vmem:[#allocation7 + $0x548] sm:$0xff]  ;;  %v282_v2 = vld [vmem:[#allocation7 + $0x558] sm:$0xff] }
  0x93   :  { %v273_v61 = vld [vmem:[#allocation7 + $0x510] sm:$0xff]  ;;  %v284_v1 = vld [vmem:[#allocation7 + $0x568] sm:$0xff]  ;;  %v286_v3 = vld [vmem:[#allocation7 + $0x578] sm:$0xff] }
  0x94   :  { %2098 = vmatpush1.bf16.msra.mxu0 %v2097_v45  ;;  %v2245_v45 = vpack.c.bf16 %v261_v39, %v257_v37  ;;  %v2127_v6 = vpack.c.bf16 %v284_v1, %v280_v0  ;;  %v281_v10 = vld [vmem:[#allocation7 + $0x550] sm:$0xff]  ;;  %v2255_v11 = vpack.c.bf16 %v286_v3, %v282_v2  ;;  %v292_v14 = vld [vmem:[#allocation7 + $0x5a8] sm:$0xff]  ;;  %v290_v15 = vld [vmem:[#allocation7 + $0x598] sm:$0xff] }
  0x95   :  { %2226 = vmatpush1.bf16.msra.mxu1 %v2225_v46  ;;  %2100 = vmatprep.subr.bf16.mxu0 %v2099_v47  ;;  %v2119_v46 = vpack.c.bf16 %v268_v41, %v264_v40  ;;  %v263_v47 = vld [vmem:[#allocation7 + $0x4c0] sm:$0xff]  ;;  %v285_v12 = vld [vmem:[#allocation7 + $0x570] sm:$0xff]  ;;  %v294_v16 = vld [vmem:[#allocation7 + $0x5b8] sm:$0xff] }
  0x96   :  { %2228 = vmatprep.subr.bf16.mxu1 %v2227_v51  ;;  %v269_v51 = vld [vmem:[#allocation7 + $0x4f0] sm:$0xff]  ;;  %v2121_v56 = vpack.c.bf16 %v267_v48, %v263_v47  ;;  %v287_v18 = vld [vmem:[#allocation7 + $0x580] sm:$0xff]  ;;  %v2257_v19 = vpack.c.bf16 %v285_v12, %v281_v10  ;;  %v2259_v24 = vpack.c.bf16 %v294_v16, %v290_v15  ;;  %v296_v25 = vld [vmem:[#allocation7 + $0x5c8] sm:$0xff] }
  0x97   :  { %v293_v23 = vld [vmem:[#allocation7 + $0x5b0] sm:$0xff]  ;;  %v104_v27 = vld [vmem:[#allocation4 + $0x18] sm:$0xff]  ;;  %v299_v35 = vld [vmem:[#allocation7 + $0x5e0] sm:$0xff] }
  0x98   :  { %2102 = vmatpush1.bf16.msra.mxu0 %v2101_v57  ;;  %v2249_v57 = vpack.c.bf16 %v269_v51, %v265_v49  ;;  %v298_v28 = vld [vmem:[#allocation7 + $0x5d8] sm:$0xff]  ;;  %v110_v30 = vmul.f32 %v3053_v8, %v104_v27  ;;  %v297_v36 = vld [vmem:[#allocation7 + $0x5d0] sm:$0xff]  ;;  %v304_v39 = vld [vmem:[#allocation7 + $0x608] sm:$0xff] }
  0x99   :  { %2230 = vmatpush1.bf16.msra.mxu1 %v2229_v58  ;;  %2104 = vmatprep.subr.bf16.mxu0 %v2103_v59  ;;  %v2123_v58 = vpack.c.bf16 %v276_v53, %v272_v52  ;;  %v271_v59 = vld [vmem:[#allocation7 + $0x500] sm:$0xff]  ;;  %v302_v29 = vld [vmem:[#allocation7 + $0x5f8] sm:$0xff]  ;;  %v308_v40 = vld [vmem:[#allocation7 + $0x628] sm:$0xff] }
  0x9a   :  { %2232 = vmatprep.subr.bf16.mxu1 %v2231_v63  ;;  %v277_v63 = vld [vmem:[#allocation7 + $0x530] sm:$0xff]  ;;  %v2125_v4 = vpack.c.bf16 %v275_v60, %v271_v59  ;;  %v2263_v37 = vpack.c.bf16 %v302_v29, %v298_v28  ;;  %v306_v41 = vld [vmem:[#allocation7 + $0x618] sm:$0xff]  ;;  %v307_v47 = vld [vmem:[#allocation7 + $0x620] sm:$0xff] }
  0x9b   :  { %v310_v42 = vld [vmem:[#allocation7 + $0x638] sm:$0xff]  ;;  %v305_v48 = vld [vmem:[#allocation7 + $0x610] sm:$0xff]  ;;  %v312_v51 = vld [vmem:[#allocation7 + $0x648] sm:$0xff] }
  0x9c   :  { %2106 = vmatpush1.bf16.msra.mxu0 %v2105_v5  ;;  %v2253_v5 = vpack.c.bf16 %v277_v63, %v273_v61  ;;  %v2267_v49 = vpack.c.bf16 %v310_v42, %v306_v41  ;;  %v316_v52 = vld [vmem:[#allocation7 + $0x668] sm:$0xff]  ;;  %v314_v53 = vld [vmem:[#allocation7 + $0x658] sm:$0xff]  ;;  %v315_v59 = vld [vmem:[#allocation7 + $0x660] sm:$0xff] }
  0x9d   :  { %2234 = vmatpush1.bf16.msra.mxu1 %v2233_v7  ;;  %2108 = vmatprep.subr.bf16.mxu0 %v2107_v9  ;;  %v279_v7 = vld [vmem:[#allocation7 + $0x540] sm:$0xff]  ;;  %v318_v54 = vld [vmem:[#allocation7 + $0x678] sm:$0xff]  ;;  %v313_v60 = vld [vmem:[#allocation7 + $0x650] sm:$0xff] }
  0x9e   :  { %2236 = vmatprep.subr.bf16.mxu1 %v2235_v13  ;;  %v283_v9 = vld [vmem:[#allocation7 + $0x560] sm:$0xff]  ;;  %v288_v13 = vld [vmem:[#allocation7 + $0x588] sm:$0xff]  ;;  %v2271_v61 = vpack.c.bf16 %v318_v54, %v314_v53  ;;  %v322_v1 = vld [vmem:[#allocation7 + $0x698] sm:$0xff] }
  0x9f   :  { %454 = vmatmul.mubr.f32.vlgmr.msra.gmra.mrb[0].mxu0 %v107_v17  ;;  %v320_v63 = vld [vmem:[#allocation7 + $0x688] sm:$0xff]  ;;  %v326_v2 = vld [vmem:[#allocation7 + $0x6b8] sm:$0xff] }
  0xa0   :  { %2110 = vmatpush1.bf16.msra.mxu0 %v2109_v20  ;;  %596 = vmatmul.mubr.f32.vlgmr.msra.gmra.mrb[0].mxu1 %v107_v17  ;;  %v2129_v17 = vpack.c.bf16 %v283_v9, %v279_v7  ;;  %v2131_v20 = vpack.c.bf16 %v292_v14, %v288_v13  ;;  %v324_v0 = vld [vmem:[#allocation7 + $0x6a8] sm:$0xff]  ;;  %v323_v7 = vld [vmem:[#allocation7 + $0x6a0] sm:$0xff]  ;;  %v321_v9 = vld [vmem:[#allocation7 + $0x690] sm:$0xff]  ;;  %v2275_v10 = vpack.c.bf16 %v326_v2, %v322_v1 }
  0xa1   :  { %2238 = vmatpush1.bf16.msra.mxu1 %v2237_v21  ;;  %2112 = vmatprep.subr.bf16.mxu0 %v2111_v22  ;;  %v291_v21 = vld [vmem:[#allocation7 + $0x5a0] sm:$0xff]  ;;  %v289_v22 = vld [vmem:[#allocation7 + $0x590] sm:$0xff]  ;;  %v328_v12 = vld [vmem:[#allocation7 + $0x6c8] sm:$0xff] }
  0xa2   :  { %2240 = vmatprep.subr.bf16.mxu1 %v2239_v26  ;;  %v300_v26 = vld [vmem:[#allocation7 + $0x5e8] sm:$0xff]  ;;  %v2133_v31 = vpack.c.bf16 %v291_v21, %v287_v18  ;;  %524 = vmatprep.mubr.f32.mxu0 %v110_v30  ;;  %v330_v14 = vld [vmem:[#allocation7 + $0x6d8] sm:$0xff]  ;;  %v329_v21 = vld [vmem:[#allocation7 + $0x6d0] sm:$0xff] }
  0xa3   :  { %666 = vmatprep.mubr.f32.mxu1 %v110_v30  ;;  %v332_v13 = vld [vmem:[#allocation7 + $0x6e8] sm:$0xff]  ;;  %v334_v15 = vld [vmem:[#allocation7 + $0x6f8] sm:$0xff] }
  0xa4   :  { %2114 = vmatpush1.bf16.msra.mxu0 %v2113_v32  ;;  %v2261_v32 = vpack.c.bf16 %v293_v23, %v289_v22  ;;  %v2151_v18 = vpack.c.bf16 %v332_v13, %v328_v12  ;;  %v2279_v22 = vpack.c.bf16 %v334_v15, %v330_v14  ;;  %v333_v23 = vld [vmem:[#allocation7 + $0x6f0] sm:$0xff]  ;;  %v342_v27 = vld [vmem:[#allocation7 + $0x738] sm:$0xff]  ;;  %v826_v12 = vld [vmem:[#allocation9 + $0x4a8] sm:$0xff] }
  0xa5   :  { %2242 = vmatpush1.bf16.msra.mxu1 %v2241_v33  ;;  %2116 = vmatprep.subr.bf16.mxu0 %v2115_v34  ;;  %v2135_v33 = vpack.c.bf16 %v300_v26, %v296_v25  ;;  %v295_v34 = vld [vmem:[#allocation7 + $0x5c0] sm:$0xff]  ;;  %v340_v25 = vld [vmem:[#allocation7 + $0x728] sm:$0xff]  ;;  %v338_v26 = vld [vmem:[#allocation7 + $0x718] sm:$0xff]  ;;  %v2281_v29 = vpack.c.bf16 %v333_v23, %v329_v21 }
  0xa6   :  { %2244 = vmatprep.subr.bf16.mxu1 %v2243_v38  ;;  %v301_v38 = vld [vmem:[#allocation7 + $0x5f0] sm:$0xff]  ;;  %v2137_v43 = vpack.c.bf16 %v299_v35, %v295_v34  ;;  %v2283_v34 = vpack.c.bf16 %v342_v27, %v338_v26  ;;  %v778_v23 = vld [vmem:[#allocation9 + $0x328] sm:$0xff]  ;;  %v832_v26 = vld [vmem:[#allocation9 + $0x4d8] sm:$0xff] }
  0xa7   :  { %v341_v35 = vld [vmem:[#allocation7 + $0x730] sm:$0xff] }
  0xa8   :  { %2118 = vmatpush1.bf16.msra.mxu0 %v2117_v44  ;;  %v2265_v44 = vpack.c.bf16 %v301_v38, %v297_v36  ;;  %v344_v36 = vld [vmem:[#allocation7 + $0x748] sm:$0xff]  ;;  %v346_v38 = vld [vmem:[#allocation7 + $0x758] sm:$0xff]  ;;  %v103_v14 = vld [vmem:[#allocation4 + $0x10] sm:$0xff] }
  0xa9   :  { %2246 = vmatpush1.bf16.msra.mxu1 %v2245_v45  ;;  %2120 = vmatprep.subr.bf16.mxu0 %v2119_v46  ;;  %v2139_v45 = vpack.c.bf16 %v308_v40, %v304_v39  ;;  %v303_v46 = vld [vmem:[#allocation7 + $0x600] sm:$0xff]  ;;  %v350_v39 = vld [vmem:[#allocation7 + $0x778] sm:$0xff] }
  0xaa   :  { %2248 = vmatprep.subr.bf16.mxu1 %v2247_v50  ;;  %v309_v50 = vld [vmem:[#allocation7 + $0x630] sm:$0xff]  ;;  %v2141_v55 = vpack.c.bf16 %v307_v47, %v303_v46  ;;  %v2287_v46 = vpack.c.bf16 %v350_v39, %v346_v38  ;;  %v838_v38 = vld [vmem:[#allocation9 + $0x508] sm:$0xff] }
  0xab   :  { %v349_v47 = vld [vmem:[#allocation7 + $0x770] sm:$0xff] }
  0xac   :  { %2122 = vmatpush1.bf16.msra.mxu0 %v2121_v56  ;;  %v2269_v56 = vpack.c.bf16 %v309_v50, %v305_v48  ;;  %v352_v48 = vld [vmem:[#allocation7 + $0x788] sm:$0xff]  ;;  %v354_v50 = vld [vmem:[#allocation7 + $0x798] sm:$0xff] }
  0xad   :  { %2250 = vmatpush1.bf16.msra.mxu1 %v2249_v57  ;;  %2124 = vmatprep.subr.bf16.mxu0 %v2123_v58  ;;  %v2143_v57 = vpack.c.bf16 %v316_v52, %v312_v51  ;;  %v311_v58 = vld [vmem:[#allocation7 + $0x640] sm:$0xff]  ;;  %v358_v51 = vld [vmem:[#allocation7 + $0x7b8] sm:$0xff] }
  0xae   :  { %2252 = vmatprep.subr.bf16.mxu1 %v2251_v62  ;;  %v317_v62 = vld [vmem:[#allocation7 + $0x670] sm:$0xff]  ;;  %v2145_v3 = vpack.c.bf16 %v315_v59, %v311_v58  ;;  %v2291_v58 = vpack.c.bf16 %v358_v51, %v354_v50 }
  0xaf   :  { %v357_v59 = vld [vmem:[#allocation7 + $0x7b0] sm:$0xff] }
  0xb0   :  { %2126 = vmatpush1.bf16.msra.mxu0 %v2125_v4  ;;  %v2273_v4 = vpack.c.bf16 %v317_v62, %v313_v60  ;;  %v360_v60 = vld [vmem:[#allocation7 + $0x7c8] sm:$0xff]  ;;  %v362_v62 = vld [vmem:[#allocation7 + $0x7d8] sm:$0xff] }
  0xb1   :  { %2254 = vmatpush1.bf16.msra.mxu1 %v2253_v5  ;;  %2128 = vmatprep.subr.bf16.mxu0 %v2127_v6  ;;  %v2147_v5 = vpack.c.bf16 %v324_v0, %v320_v63  ;;  %v319_v6 = vld [vmem:[#allocation7 + $0x680] sm:$0xff]  ;;  %v366_v63 = vld [vmem:[#allocation7 + $0x7f8] sm:$0xff] }
  0xb2   :  { %2256 = vmatprep.subr.bf16.mxu1 %v2255_v11  ;;  %v325_v11 = vld [vmem:[#allocation7 + $0x6b0] sm:$0xff]  ;;  %v2149_v16 = vpack.c.bf16 %v323_v7, %v319_v6  ;;  %v2295_v6 = vpack.c.bf16 %v366_v63, %v362_v62 }
  0xb3   :  { %v365_v7 = vld [vmem:[#allocation7 + $0x7f0] sm:$0xff] }
  0xb4   :  { %2130 = vmatpush1.bf16.msra.mxu0 %v2129_v17  ;;  %v2277_v17 = vpack.c.bf16 %v325_v11, %v321_v9  ;;  %v678_v9 = vld [vmem:[#allocation9 + $0x8] sm:$0xff]  ;;  %v823_v11 = vld [vmem:[#allocation9 + $0x490] sm:$0xff] }
  0xb5   :  { %2258 = vmatpush1.bf16.msra.mxu1 %v2257_v19  ;;  %2132 = vmatprep.subr.bf16.mxu0 %v2131_v20  ;;  %v327_v19 = vld [vmem:[#allocation7 + $0x6c0] sm:$0xff]  ;;  %v2459_v21 = vpack.c.bf16 %v826_v12, %v823_v11 }
  0xb6   :  { %2260 = vmatprep.subr.bf16.mxu1 %v2259_v24  ;;  %v331_v20 = vld [vmem:[#allocation7 + $0x6e0] sm:$0xff]  ;;  %v336_v24 = vld [vmem:[#allocation7 + $0x708] sm:$0xff] }
  0xb7   :  { %v2153_v28 = vpack.c.bf16 %v331_v20, %v327_v19  ;;  %v2155_v30 = vpack.c.bf16 %v340_v25, %v336_v24  ;;  %v684_v19 = vld [vmem:[#allocation9 + $0x38] sm:$0xff]  ;;  %v687_v20 = vld [vmem:[#allocation9 + $0x50] sm:$0xff]  ;;  %v109_v24 = vmul.f32 %v3053_v8, %v103_v14  ;;  %v829_v25 = vld [vmem:[#allocation9 + $0x4c0] sm:$0xff] }
  0xb8   :  { %2134 = vmatpush1.bf16.msra.mxu0 %v2133_v31  ;;  %v335_v31 = vld [vmem:[#allocation7 + $0x700] sm:$0xff]  ;;  %v710_v14 = vld [vmem:[#allocation9 + $0x108] sm:$0xff] }
  0xb9   :  { %2262 = vmatpush1.bf16.msra.mxu1 %v2261_v32  ;;  %2136 = vmatprep.subr.bf16.mxu0 %v2135_v33  ;;  %v339_v32 = vld [vmem:[#allocation7 + $0x720] sm:$0xff]  ;;  %v337_v33 = vld [vmem:[#allocation7 + $0x710] sm:$0xff] }
  0xba   :  { %2264 = vmatprep.subr.bf16.mxu1 %v2263_v37  ;;  %v348_v37 = vld [vmem:[#allocation7 + $0x768] sm:$0xff]  ;;  %v2157_v40 = vpack.c.bf16 %v339_v32, %v335_v31  ;;  %v2285_v41 = vpack.c.bf16 %v341_v35, %v337_v33  ;;  %v693_v33 = vld [vmem:[#allocation9 + $0x80] sm:$0xff] }
  0xbb   :  { %v2159_v42 = vpack.c.bf16 %v348_v37, %v344_v36  ;;  %v690_v31 = vld [vmem:[#allocation9 + $0x68] sm:$0xff]  ;;  %v781_v35 = vld [vmem:[#allocation9 + $0x340] sm:$0xff]  ;;  %v784_v36 = vld [vmem:[#allocation9 + $0x358] sm:$0xff] }
  0xbc   :  { %2138 = vmatpush1.bf16.msra.mxu0 %v2137_v43  ;;  %v343_v43 = vld [vmem:[#allocation7 + $0x740] sm:$0xff]  ;;  %v835_v37 = vld [vmem:[#allocation9 + $0x4f0] sm:$0xff]  ;;  %v2307_v39 = vpack.c.bf16 %v693_v33, %v690_v31 }
  0xbd   :  { %2266 = vmatpush1.bf16.msra.mxu1 %v2265_v44  ;;  %2140 = vmatprep.subr.bf16.mxu0 %v2139_v45  ;;  %v347_v44 = vld [vmem:[#allocation7 + $0x760] sm:$0xff]  ;;  %v345_v45 = vld [vmem:[#allocation7 + $0x750] sm:$0xff] }
  0xbe   :  { %2268 = vmatprep.subr.bf16.mxu1 %v2267_v49  ;;  %v356_v49 = vld [vmem:[#allocation7 + $0x7a8] sm:$0xff]  ;;  %v2161_v52 = vpack.c.bf16 %v347_v44, %v343_v43  ;;  %v2289_v53 = vpack.c.bf16 %v349_v47, %v345_v45  ;;  %v2465_v43 = vpack.c.bf16 %v784_v36, %v781_v35  ;;  %v699_v44 = vld [vmem:[#allocation9 + $0xb0] sm:$0xff]  ;;  %v2467_v45 = vpack.c.bf16 %v838_v38, %v835_v37  ;;  %v729_v36 = vld [vmem:[#allocation9 + $0x1a0] sm:$0xff] }
  0xbf   :  { %v2163_v54 = vpack.c.bf16 %v356_v49, %v352_v48  ;;  %v790_v47 = vld [vmem:[#allocation9 + $0x388] sm:$0xff]  ;;  %v841_v48 = vld [vmem:[#allocation9 + $0x520] sm:$0xff]  ;;  %v844_v49 = vld [vmem:[#allocation9 + $0x538] sm:$0xff] }
  0xc0   :  { %2142 = vmatpush1.bf16.msra.mxu0 %v2141_v55  ;;  %v351_v55 = vld [vmem:[#allocation7 + $0x780] sm:$0xff]  ;;  %v719_v33 = vld [vmem:[#allocation9 + $0x150] sm:$0xff]  ;;  %v726_v35 = vld [vmem:[#allocation9 + $0x188] sm:$0xff] }
  0xc1   :  { %2270 = vmatpush1.bf16.msra.mxu1 %v2269_v56  ;;  %2144 = vmatprep.subr.bf16.mxu0 %v2143_v57  ;;  %v355_v56 = vld [vmem:[#allocation7 + $0x7a0] sm:$0xff]  ;;  %v353_v57 = vld [vmem:[#allocation7 + $0x790] sm:$0xff]  ;;  %v2331_v38 = vpack.c.bf16 %v729_v36, %v726_v35 }
  0xc2   :  { %2272 = vmatprep.subr.bf16.mxu1 %v2271_v61  ;;  %v364_v61 = vld [vmem:[#allocation7 + $0x7e8] sm:$0xff]  ;;  %v2165_v0 = vpack.c.bf16 %v355_v56, %v351_v55  ;;  %v2293_v1 = vpack.c.bf16 %v357_v59, %v353_v57  ;;  %v705_v56 = vld [vmem:[#allocation9 + $0xe0] sm:$0xff]  ;;  %v2471_v57 = vpack.c.bf16 %v844_v49, %v841_v48  ;;  %v796_v59 = vld [vmem:[#allocation9 + $0x3b8] sm:$0xff] }
  0xc3   :  { %v2167_v2 = vpack.c.bf16 %v364_v61, %v360_v60  ;;  %v847_v60 = vld [vmem:[#allocation9 + $0x550] sm:$0xff]  ;;  %v850_v61 = vld [vmem:[#allocation9 + $0x568] sm:$0xff]  ;;  %v367_v35 = vld [vmem:[%s3146_s3] sm:$0xf] }
  0xc4   :  { %2146 = vmatpush1.bf16.msra.mxu0 %v2145_v3  ;;  %v359_v3 = vld [vmem:[#allocation7 + $0x7c0] sm:$0xff] }
  0xc5   :  { %2274 = vmatpush1.bf16.msra.mxu1 %v2273_v4  ;;  %2148 = vmatprep.subr.bf16.mxu0 %v2147_v5  ;;  %v363_v4 = vld [vmem:[#allocation7 + $0x7e0] sm:$0xff]  ;;  %v361_v5 = vld [vmem:[#allocation7 + $0x7d0] sm:$0xff] }
  0xc6   :  { %2276 = vmatprep.subr.bf16.mxu1 %v2275_v10  ;;  %v681_v10 = vld [vmem:[#allocation9 + $0x20] sm:$0xff]  ;;  %v2169_v13 = vpack.c.bf16 %v363_v4, %v359_v3  ;;  %v2297_v15 = vpack.c.bf16 %v365_v7, %v361_v5  ;;  %v711_v4 = vld [vmem:[#allocation9 + $0x110] sm:$0xff]  ;;  %v2475_v5 = vpack.c.bf16 %v850_v61, %v847_v60  ;;  %v802_v7 = vld [vmem:[#allocation9 + $0x3e8] sm:$0xff] }
  0xc8   :  { %2150 = vmatpush1.bf16.msra.mxu0 %v2149_v16  ;;  %v2299_v16 = vpack.c.bf16 %v681_v10, %v678_v9  ;;  %v853_v9 = vld [vmem:[#allocation9 + $0x580] sm:$0xff]  ;;  %v856_v10 = vld [vmem:[#allocation9 + $0x598] sm:$0xff] }
  0xc9   :  { %2278 = vmatpush1.bf16.msra.mxu1 %v2277_v17  ;;  %2152 = vmatprep.subr.bf16.mxu0 %v2151_v18  ;;  %v677_v17 = vld [vmem:[#allocation9] sm:$0xff]  ;;  %v680_v18 = vld [vmem:[#allocation9 + $0x18] sm:$0xff] }
  0xca   :  { %2280 = vmatprep.subr.bf16.mxu1 %v2279_v22  ;;  %v775_v22 = vld [vmem:[#allocation9 + $0x310] sm:$0xff]  ;;  %v2301_v27 = vpack.c.bf16 %v680_v18, %v677_v17  ;;  %v717_v17 = vld [vmem:[#allocation9 + $0x140] sm:$0xff]  ;;  %v2479_v18 = vpack.c.bf16 %v856_v10, %v853_v9 }
  0xcb   :  { %v2461_v32 = vpack.c.bf16 %v778_v23, %v775_v22  ;;  %v862_v22 = vld [vmem:[#allocation9 + $0x5c8] sm:$0xff] }
  0xcc   :  { %2154 = vmatpush1.bf16.msra.mxu0 %v2153_v28  ;;  %v2303_v28 = vpack.c.bf16 %v687_v20, %v684_v19  ;;  %v805_v19 = vld [vmem:[#allocation9 + $0x400] sm:$0xff]  ;;  %v808_v20 = vld [vmem:[#allocation9 + $0x418] sm:$0xff] }
  0xcd   :  { %2282 = vmatpush1.bf16.msra.mxu1 %v2281_v29  ;;  %2156 = vmatprep.subr.bf16.mxu0 %v2155_v30  ;;  %v683_v29 = vld [vmem:[#allocation9 + $0x30] sm:$0xff]  ;;  %v686_v30 = vld [vmem:[#allocation9 + $0x48] sm:$0xff] }
  0xce   :  { %2284 = vmatprep.subr.bf16.mxu1 %v2283_v34  ;;  %v2463_v34 = vpack.c.bf16 %v832_v26, %v829_v25  ;;  %v2305_v8 = vpack.c.bf16 %v686_v30, %v683_v29  ;;  %v713_v25 = vld [vmem:[#allocation9 + $0x120] sm:$0xff]  ;;  %v716_v26 = vld [vmem:[#allocation9 + $0x138] sm:$0xff]  ;;  %v723_v29 = vld [vmem:[#allocation9 + $0x170] sm:$0xff] }
  0xcf   :  { %v2325_v31 = vpack.c.bf16 %v716_v26, %v713_v25  ;;  %v817_v25 = vld [vmem:[#allocation9 + $0x460] sm:$0xff]  ;;  %v820_v26 = vld [vmem:[#allocation9 + $0x478] sm:$0xff] }
  0xd0   :  { %2158 = vmatpush1.bf16.msra.mxu0 %v2157_v40  ;;  %v689_v40 = vld [vmem:[#allocation9 + $0x60] sm:$0xff] }
  0xd1   :  { %2286 = vmatpush1.bf16.msra.mxu1 %v2285_v41  ;;  %2160 = vmatprep.subr.bf16.mxu0 %v2159_v42  ;;  %v692_v41 = vld [vmem:[#allocation9 + $0x78] sm:$0xff] }
  0xd2   :  { %2288 = vmatprep.subr.bf16.mxu1 %v2287_v46  ;;  %v696_v42 = vld [vmem:[#allocation9 + $0x98] sm:$0xff]  ;;  %v787_v46 = vld [vmem:[#allocation9 + $0x370] sm:$0xff]  ;;  %v2309_v50 = vpack.c.bf16 %v692_v41, %v689_v40 }
  0xd3   :  { %v2311_v51 = vpack.c.bf16 %v699_v44, %v696_v42  ;;  %v2469_v55 = vpack.c.bf16 %v790_v47, %v787_v46  ;;  %v732_v40 = vld [vmem:[#allocation9 + $0x1b8] sm:$0xff]  ;;  %v735_v41 = vld [vmem:[#allocation9 + $0x1d0] sm:$0xff]  ;;  %v738_v46 = vld [vmem:[#allocation9 + $0x1e8] sm:$0xff] }
  0xd4   :  { %2162 = vmatpush1.bf16.msra.mxu0 %v2161_v52  ;;  %v695_v52 = vld [vmem:[#allocation9 + $0x90] sm:$0xff]  ;;  %v741_v47 = vld [vmem:[#allocation9 + $0x200] sm:$0xff] }
  0xd5   :  { %2290 = vmatpush1.bf16.msra.mxu1 %v2289_v53  ;;  %2164 = vmatprep.subr.bf16.mxu0 %v2163_v54  ;;  %v698_v53 = vld [vmem:[#allocation9 + $0xa8] sm:$0xff]  ;;  %v731_v44 = vld [vmem:[#allocation9 + $0x1b0] sm:$0xff]  ;;  %v2339_v49 = vpack.c.bf16 %v741_v47, %v738_v46  ;;  %v773_v46 = vld [vmem:[#allocation9 + $0x300] sm:$0xff] }
  0xd6   :  { %2292 = vmatprep.subr.bf16.mxu1 %v2291_v58  ;;  %v702_v54 = vld [vmem:[#allocation9 + $0xc8] sm:$0xff]  ;;  %v793_v58 = vld [vmem:[#allocation9 + $0x3a0] sm:$0xff]  ;;  %v2313_v62 = vpack.c.bf16 %v698_v53, %v695_v52  ;;  %v744_v52 = vld [vmem:[#allocation9 + $0x218] sm:$0xff] }
  0xd7   :  { %v2315_v63 = vpack.c.bf16 %v705_v56, %v702_v54  ;;  %v2473_v3 = vpack.c.bf16 %v796_v59, %v793_v58  ;;  %v747_v53 = vld [vmem:[#allocation9 + $0x230] sm:$0xff]  ;;  %v750_v58 = vld [vmem:[#allocation9 + $0x248] sm:$0xff]  ;;  %v753_v59 = vld [vmem:[#allocation9 + $0x260] sm:$0xff] }
  0xd8   :  { %2166 = vmatpush1.bf16.msra.mxu0 %v2165_v0  ;;  %v701_v0 = vld [vmem:[#allocation9 + $0xc0] sm:$0xff]  ;;  %v743_v56 = vld [vmem:[#allocation9 + $0x210] sm:$0xff]  ;;  %v2347_v61 = vpack.c.bf16 %v753_v59, %v750_v58  ;;  %v776_v47 = vld [vmem:[#allocation9 + $0x318] sm:$0xff] }
  0xd9   :  { %2294 = vmatpush1.bf16.msra.mxu1 %v2293_v1  ;;  %2168 = vmatprep.subr.bf16.mxu0 %v2167_v2  ;;  %v704_v1 = vld [vmem:[#allocation9 + $0xd8] sm:$0xff] }
  0xda   :  { %2296 = vmatprep.subr.bf16.mxu1 %v2295_v6  ;;  %v708_v2 = vld [vmem:[#allocation9 + $0xf8] sm:$0xff]  ;;  %v799_v6 = vld [vmem:[#allocation9 + $0x3d0] sm:$0xff]  ;;  %v2317_v11 = vpack.c.bf16 %v704_v1, %v701_v0 }
  0xdb   :  { %v2319_v12 = vpack.c.bf16 %v711_v4, %v708_v2  ;;  %v756_v0 = vld [vmem:[#allocation9 + $0x278] sm:$0xff]  ;;  %v759_v1 = vld [vmem:[#allocation9 + $0x290] sm:$0xff] }
  0xdc   :  { %2170 = vmatpush1.bf16.msra.mxu0 %v2169_v13  ;;  %v707_v13 = vld [vmem:[#allocation9 + $0xf0] sm:$0xff] }
  0xdd   :  { %2298 = vmatpush1.bf16.msra.mxu1 %v2297_v15  ;;  %2300 = vmatprep.subr.bf16.mxu0 %v2299_v16  ;;  %v714_v15 = vld [vmem:[#allocation9 + $0x128] sm:$0xff]  ;;  %v2477_v16 = vpack.c.bf16 %v802_v7, %v799_v6  ;;  %v2321_v23 = vpack.c.bf16 %v710_v14, %v707_v13  ;;  %v755_v4 = vld [vmem:[#allocation9 + $0x270] sm:$0xff]  ;;  %v765_v7 = vld [vmem:[#allocation9 + $0x2c0] sm:$0xff] }
  0xde   :  { %2460 = vmatprep.subr.bf16.mxu1 %v2459_v21  ;;  %v859_v21 = vld [vmem:[#allocation9 + $0x5b0] sm:$0xff]  ;;  %v762_v6 = vld [vmem:[#allocation9 + $0x2a8] sm:$0xff] }
  0xdf   :  { %525 = vmatmul.mubr.f32.vlgmr.msra.gmra.mrb[0].mxu0 %v109_v24  ;;  %v2483_v30 = vpack.c.bf16 %v862_v22, %v859_v21  ;;  %v2355_v10 = vpack.c.bf16 %v765_v7, %v762_v6  ;;  %v811_v14 = vld [vmem:[#allocation9 + $0x430] sm:$0xff]  ;;  %v770_v21 = vld [vmem:[#allocation9 + $0x2e8] sm:$0xff]  ;;  %v865_v22 = vld [vmem:[#allocation9 + $0x5e0] sm:$0xff] }
  0xe0   :  { %667 = vmatmul.mubr.f32.vlgmr.msra.gmra.mrb[0].mxu1 %v109_v24  ;;  %2302 = vmatpush1.bf16.msra.mxu0 %v2301_v27  ;;  %v2323_v24 = vpack.c.bf16 %v717_v17, %v714_v15  ;;  %v2481_v27 = vpack.c.bf16 %v808_v20, %v805_v19  ;;  %v814_v15 = vld [vmem:[#allocation9 + $0x448] sm:$0xff]  ;;  %v768_v17 = vld [vmem:[#allocation9 + $0x2d8] sm:$0xff]  ;;  %v767_v20 = vld [vmem:[#allocation9 + $0x2d0] sm:$0xff] }
  0xe1   :  { %2304 = vmatprep.subr.bf16.mxu0 %v2303_v28  ;;  %2462 = vmatpush3.bf16.msra.mxu1 %v2461_v32  ;;  %v720_v28 = vld [vmem:[#allocation9 + $0x158] sm:$0xff] }
  0xe2   :  { %2464 = vmatprep.subr.bf16.mxu1 %v2463_v34  ;;  %v2327_v32 = vpack.c.bf16 %v723_v29, %v720_v28  ;;  %v722_v34 = vld [vmem:[#allocation9 + $0x168] sm:$0xff]  ;;  %v2489_v28 = vpack.c.bf16 %v820_v26, %v817_v25 }
  0xe3   :  { %v2329_v37 = vpack.c.bf16 %v722_v34, %v719_v33  ;;  %v774_v29 = vld [vmem:[#allocation9 + $0x308] sm:$0xff] }
  0xe4   :  { %2306 = vmatpush1.bf16.msra.mxu0 %v2305_v8  ;;  %v725_v8 = vld [vmem:[#allocation9 + $0x180] sm:$0xff] }
  0xe5   :  { %2308 = vmatprep.subr.bf16.mxu0 %v2307_v39  ;;  %2466 = vmatpush3.bf16.msra.mxu1 %v2465_v43  ;;  %v728_v39 = vld [vmem:[#allocation9 + $0x198] sm:$0xff]  ;;  %v2335_v43 = vpack.c.bf16 %v735_v41, %v732_v40 }
  0xe6   :  { %2468 = vmatprep.subr.bf16.mxu1 %v2467_v45  ;;  %v2333_v42 = vpack.c.bf16 %v728_v39, %v725_v8  ;;  %v734_v45 = vld [vmem:[#allocation9 + $0x1c8] sm:$0xff] }
  0xe7   :  { %v2337_v48 = vpack.c.bf16 %v734_v45, %v731_v44 }
  0xe8   :  { %2310 = vmatpush1.bf16.msra.mxu0 %v2309_v50  ;;  %v737_v50 = vld [vmem:[#allocation9 + $0x1e0] sm:$0xff] }
  0xe9   :  { %2312 = vmatprep.subr.bf16.mxu0 %v2311_v51  ;;  %2470 = vmatpush3.bf16.msra.mxu1 %v2469_v55  ;;  %v740_v51 = vld [vmem:[#allocation9 + $0x1f8] sm:$0xff]  ;;  %v2343_v55 = vpack.c.bf16 %v747_v53, %v744_v52  ;;  %v783_v52 = vld [vmem:[#allocation9 + $0x350] sm:$0xff] }
  0xea   :  { %2472 = vmatprep.subr.bf16.mxu1 %v2471_v57  ;;  %v2341_v54 = vpack.c.bf16 %v740_v51, %v737_v50  ;;  %v746_v57 = vld [vmem:[#allocation9 + $0x228] sm:$0xff]  ;;  %v780_v51 = vld [vmem:[#allocation9 + $0x338] sm:$0xff] }
  0xeb   :  { %v2345_v60 = vpack.c.bf16 %v746_v57, %v743_v56  ;;  %v2365_v56 = vpack.c.bf16 %v776_v47, %v773_v46  ;;  %v2367_v59 = vpack.c.bf16 %v783_v52, %v780_v51  ;;  %v830_v51 = vld [vmem:[#allocation9 + $0x4c8] sm:$0xff] }
  0xec   :  { %2314 = vmatpush1.bf16.msra.mxu0 %v2313_v62  ;;  %v749_v62 = vld [vmem:[#allocation9 + $0x240] sm:$0xff]  ;;  %v834_v52 = vld [vmem:[#allocation9 + $0x4e8] sm:$0xff] }
  0xed   :  { %2316 = vmatprep.subr.bf16.mxu0 %v2315_v63  ;;  %2474 = vmatpush3.bf16.msra.mxu1 %v2473_v3  ;;  %v752_v63 = vld [vmem:[#allocation9 + $0x258] sm:$0xff]  ;;  %v2351_v3 = vpack.c.bf16 %v759_v1, %v756_v0 }
  0xee   :  { %2476 = vmatprep.subr.bf16.mxu1 %v2475_v5  ;;  %v2349_v2 = vpack.c.bf16 %v752_v63, %v749_v62  ;;  %v758_v5 = vld [vmem:[#allocation9 + $0x288] sm:$0xff]  ;;  %v789_v63 = vld [vmem:[#allocation9 + $0x380] sm:$0xff] }
  0xef   :  { %v2353_v9 = vpack.c.bf16 %v758_v5, %v755_v4  ;;  %v786_v62 = vld [vmem:[#allocation9 + $0x368] sm:$0xff]  ;;  %v792_v4 = vld [vmem:[#allocation9 + $0x398] sm:$0xff]  ;;  %v795_v5 = vld [vmem:[#allocation9 + $0x3b0] sm:$0xff] }
  0xf0   :  { %2318 = vmatpush1.bf16.msra.mxu0 %v2317_v11  ;;  %v761_v11 = vld [vmem:[#allocation9 + $0x2a0] sm:$0xff]  ;;  %v2371_v1 = vpack.c.bf16 %v789_v63, %v786_v62  ;;  %v2375_v7 = vpack.c.bf16 %v795_v5, %v792_v4  ;;  %v843_v62 = vld [vmem:[#allocation9 + $0x530] sm:$0xff] }
  0xf1   :  { %2320 = vmatprep.subr.bf16.mxu0 %v2319_v12  ;;  %2478 = vmatpush3.bf16.msra.mxu1 %v2477_v16  ;;  %v764_v12 = vld [vmem:[#allocation9 + $0x2b8] sm:$0xff]  ;;  %v2485_v16 = vpack.c.bf16 %v814_v15, %v811_v14  ;;  %v797_v15 = vld [vmem:[#allocation9 + $0x3c0] sm:$0xff] }
  0xf2   :  { %2480 = vmatprep.subr.bf16.mxu1 %v2479_v18  ;;  %v2357_v13 = vpack.c.bf16 %v764_v12, %v761_v11  ;;  %v771_v18 = vld [vmem:[#allocation9 + $0x2f0] sm:$0xff]  ;;  %v798_v11 = vld [vmem:[#allocation9 + $0x3c8] sm:$0xff]  ;;  %v801_v12 = vld [vmem:[#allocation9 + $0x3e0] sm:$0xff] }
  0xf3   :  { %v2359_v19 = vpack.c.bf16 %v771_v18, %v768_v17  ;;  %v2379_v14 = vpack.c.bf16 %v801_v12, %v798_v11  ;;  %v804_v17 = vld [vmem:[#allocation9 + $0x3f8] sm:$0xff]  ;;  %v807_v18 = vld [vmem:[#allocation9 + $0x410] sm:$0xff]  ;;  %v849_v4 = vld [vmem:[#allocation9 + $0x560] sm:$0xff] }
  0xf4   :  { %2322 = vmatpush1.bf16.msra.mxu0 %v2321_v23  ;;  %v2361_v23 = vpack.c.bf16 %v770_v21, %v767_v20  ;;  %v2383_v20 = vpack.c.bf16 %v807_v18, %v804_v17  ;;  %v803_v21 = vld [vmem:[#allocation9 + $0x3f0] sm:$0xff]  ;;  %v861_v17 = vld [vmem:[#allocation9 + $0x5c0] sm:$0xff] }
  0xf5   :  { %2324 = vmatprep.subr.bf16.mxu0 %v2323_v24  ;;  %2482 = vmatpush3.bf16.msra.mxu1 %v2481_v27  ;;  %v868_v24 = vld [vmem:[#allocation9 + $0x5f8] sm:$0xff]  ;;  %v855_v11 = vld [vmem:[#allocation9 + $0x590] sm:$0xff] }
  0xf6   :  { %2484 = vmatprep.subr.bf16.mxu1 %v2483_v30  ;;  %v2487_v27 = vpack.c.bf16 %v868_v24, %v865_v22  ;;  %v777_v30 = vld [vmem:[#allocation9 + $0x320] sm:$0xff]  ;;  %v806_v22 = vld [vmem:[#allocation9 + $0x408] sm:$0xff] }
  0xf7   :  { %v813_v24 = vld [vmem:[#allocation9 + $0x440] sm:$0xff]  ;;  %v2385_v25 = vpack.c.bf16 %v806_v22, %v803_v21  ;;  %v860_v21 = vld [vmem:[#allocation9 + $0x5b8] sm:$0xff] }
  0xf8   :  { %2326 = vmatpush1.bf16.msra.mxu0 %v2325_v31  ;;  %v2363_v31 = vpack.c.bf16 %v777_v30, %v774_v29  ;;  %v816_v29 = vld [vmem:[#allocation9 + $0x458] sm:$0xff]  ;;  %v819_v30 = vld [vmem:[#allocation9 + $0x470] sm:$0xff] }
  0xf9   :  { %2328 = vmatprep.subr.bf16.mxu0 %v2327_v32  ;;  %2486 = vmatpush3.bf16.msra.mxu1 %v2485_v16  ;;  %v369_v32 = vlaneseq  ;;  %v800_v16 = vld [vmem:[#allocation9 + $0x3d8] sm:$0xff] }
  0xfa   :  { %2488 = vmatprep.subr.bf16.mxu1 %v2487_v27  ;;  %v809_v27 = vld [vmem:[#allocation9 + $0x420] sm:$0xff]  ;;  %v864_v22 = vld [vmem:[#allocation9 + $0x5d8] sm:$0xff] }
  0xfb   :  { %v370_v33 = vshrl.u32 %v369_v32, 7  ;;  %v2391_v32 = vpack.c.bf16 %v819_v30, %v816_v29  ;;  %v730_v29 = vld [vmem:[#allocation9 + $0x1a8] sm:$0xff] }
  0xfc   :  { %2330 = vmatpush1.bf16.msra.mxu0 %v2329_v37 }
  0xfd   :  { %2332 = vmatprep.subr.bf16.mxu0 %v2331_v38  ;;  %2490 = vmatpush3.bf16.msra.mxu1 %v2489_v28  ;;  %v3059_v34 = vsub.s32 0, %v370_v33  ;;  %v3064_v36 = vsub.s32 2, %v370_v33  ;;  %v3066_v37 = vsub.s32 1, %v370_v33  ;;  %v383_v38 = vsub.s32 3, %v370_v33  ;;  %v812_v28 = vld [vmem:[#allocation9 + $0x438] sm:$0xff]  ;;  %v815_v33 = vld [vmem:[#allocation9 + $0x450] sm:$0xff] }
  0xff   :  { %v372_v8 = vrot.slane %v367_v35, %v3059_v34  ;;  %v380_v39 = vrot.slane %v367_v35, %v3064_v36  ;;  %v376_v40 = vrot.slane %v367_v35, %v3066_v37  ;;  %v384_v41 = vrot.slane %v367_v35, %v383_v38  ;;  %v818_v35 = vld [vmem:[#allocation9 + $0x468] sm:$0xff] }
 0x100   :  { %2334 = vmatpush1.bf16.msra.mxu0 %v2333_v42  ;;  %v822_v38 = vld [vmem:[#allocation9 + $0x488] sm:$0xff] }
 0x101   :  { %2336 = vmatprep.subr.bf16.mxu0 %v2335_v43 }
 0x104   :  { %2338 = vmatpush1.bf16.msra.mxu0 %v2337_v48 }
 0x105   :  { %2340 = vmatprep.subr.bf16.mxu0 %v2339_v49 }
 0x108   :  { %2342 = vmatpush1.bf16.msra.mxu0 %v2341_v54 }
 0x109   :  { %2344 = vmatprep.subr.bf16.mxu0 %v2343_v55 }
 0x10c   :  { %2346 = vmatpush1.bf16.msra.mxu0 %v2345_v60  ;;  %v779_v60 = vld [vmem:[#allocation9 + $0x330] sm:$0xff] }
 0x10d   :  { %2348 = vmatprep.subr.bf16.mxu0 %v2347_v61  ;;  %v782_v61 = vld [vmem:[#allocation9 + $0x348] sm:$0xff] }
 0x10e   :  { %v2369_v0 = vpack.c.bf16 %v782_v61, %v779_v60  ;;  %v836_v60 = vld [vmem:[#allocation9 + $0x4f8] sm:$0xff] }
 0x10f   :  { %v840_v61 = vld [vmem:[#allocation9 + $0x518] sm:$0xff] }
 0x110   :  { %2350 = vmatpush1.bf16.msra.mxu0 %v2349_v2  ;;  %v785_v2 = vld [vmem:[#allocation9 + $0x360] sm:$0xff] }
 0x111   :  { %2352 = vmatprep.subr.bf16.mxu0 %v2351_v3  ;;  %v788_v3 = vld [vmem:[#allocation9 + $0x378] sm:$0xff] }
 0x112   :  { %v2373_v6 = vpack.c.bf16 %v788_v3, %v785_v2  ;;  %v842_v2 = vld [vmem:[#allocation9 + $0x528] sm:$0xff] }
 0x113   :  { %v846_v3 = vld [vmem:[#allocation9 + $0x548] sm:$0xff] }
 0x114   :  { %2354 = vmatpush1.bf16.msra.mxu0 %v2353_v9  ;;  %v791_v9 = vld [vmem:[#allocation9 + $0x390] sm:$0xff] }
 0x115   :  { %2356 = vmatprep.subr.bf16.mxu0 %v2355_v10  ;;  %v794_v10 = vld [vmem:[#allocation9 + $0x3a8] sm:$0xff] }
 0x118   :  { %2358 = vmatpush1.bf16.msra.mxu0 %v2357_v13  ;;  %v2377_v13 = vpack.c.bf16 %v794_v10, %v791_v9  ;;  %v848_v9 = vld [vmem:[#allocation9 + $0x558] sm:$0xff] }
 0x119   :  { %2360 = vmatprep.subr.bf16.mxu0 %v2359_v19  ;;  %v2381_v19 = vpack.c.bf16 %v800_v16, %v797_v15  ;;  %v852_v10 = vld [vmem:[#allocation9 + $0x578] sm:$0xff]  ;;  %v854_v15 = vld [vmem:[#allocation9 + $0x588] sm:$0xff] }
 0x11a   :  { %v858_v16 = vld [vmem:[#allocation9 + $0x5a8] sm:$0xff] }
 0x11c   :  { %2362 = vmatpush1.bf16.msra.mxu0 %v2361_v23  ;;  %v810_v23 = vld [vmem:[#allocation9 + $0x428] sm:$0xff] }
 0x11d   :  { %2364 = vmatprep.subr.bf16.mxu0 %v2363_v31  ;;  %v2387_v26 = vpack.c.bf16 %v813_v24, %v810_v23  ;;  %v2389_v31 = vpack.c.bf16 %v812_v28, %v809_v27  ;;  %v867_v23 = vld [vmem:[#allocation9 + $0x5f0] sm:$0xff]  ;;  %v866_v27 = vld [vmem:[#allocation9 + $0x5e8] sm:$0xff] }
 0x11e   :  { %v727_v28 = vld [vmem:[#allocation9 + $0x190] sm:$0xff] }
 0x1b2   :  { %v526_v42 = vpop.f32.mrb[0].mxu0 }
 0x1b3   :  { %v3071_v43 = vadd.f32 %v526_v42, %v372_v8  ;;  %v668_v44 = vpop.f32.mrb[0].mxu1  ;;  %v528_v45 = vpop.f32.mrb[1].mxu0  ;;  %v825_v8 = vld [vmem:[#allocation9 + $0x4a0] sm:$0xff]  ;;  %v824_v42 = vld [vmem:[#allocation9 + $0x498] sm:$0xff] }
 0x1b4   :  { %v3073_v48 = vadd.f32 %v668_v44, %v380_v39  ;;  %v3075_v49 = vadd.f32 %v528_v45, %v376_v40  ;;  %v670_v50 = vpop.f32.mrb[1].mxu1  ;;  %v2393_v39 = vpack.c.bf16 %v818_v35, %v815_v33  ;;  %v2395_v40 = vpack.c.bf16 %v825_v8, %v822_v38  ;;  %v828_v44 = vld [vmem:[#allocation9 + $0x4b8] sm:$0xff]  ;;  %v831_v45 = vld [vmem:[#allocation9 + $0x4d0] sm:$0xff]  ;;  %v682_v33 = vld [vmem:[#allocation9 + $0x28] sm:$0xff] }
 0x1b5   :  { %v2742_v53 = vadd.f32 %v670_v50, %v384_v41  ;;  %v673_v57 = vmax.f32 %v3071_v43, 0.0  ;;  %v821_v41 = vld [vmem:[#allocation9 + $0x480] sm:$0xff]  ;;  %v2399_v47 = vpack.c.bf16 %v831_v45, %v828_v44  ;;  %v827_v50 = vld [vmem:[#allocation9 + $0x4b0] sm:$0xff]  ;;  %v736_v38 = vld [vmem:[#allocation9 + $0x1d8] sm:$0xff] }
 0x1b6   :  { %v675_v54 = vmax.f32 %v3073_v48, 0.0  ;;  %v674_v55 = vmax.f32 %v3075_v49, 0.0  ;;  %v2397_v46 = vpack.c.bf16 %v824_v42, %v821_v41  ;;  %v733_v35 = vld [vmem:[#allocation9 + $0x1c0] sm:$0xff]  ;;  %v688_v41 = vld [vmem:[#allocation9 + $0x58] sm:$0xff]  ;;  %v739_v42 = vld [vmem:[#allocation9 + $0x1f0] sm:$0xff] }
 0x1b7   :  { %v676_v58 = vmax.f32 %v2742_v53, 0.0  ;;  %v837_v53 = vld [vmem:[#allocation9 + $0x500] sm:$0xff]  ;;  %v742_v44 = vld [vmem:[#allocation9 + $0x208] sm:$0xff]  ;;  %v1230_v43 = vld [vmem:[#allocation10 + $0x1d8] sm:$0xff] }
 0x1b8   :  { %950 = vmatprep.mubr.f32.mxu0 %v674_v55  ;;  %v754_v48 = vld [vmem:[#allocation9 + $0x268] sm:$0xff] }
 0x1b9   :  { %1162 = vmatprep.mubr.f32.mxu1 %v676_v58  ;;  %951 = vmatmul.mubr.f32.vlgmr.msra.gmra.mrb[2].mxu0 %v673_v57 }
 0x1ba   :  { %2366 = vmatpush1.bf16.msra.mxu0 %v2365_v56  ;;  %1163 = vmatmul.mubr.f32.vlgmr.msra.gmra.mrb[2].mxu1 %v675_v54  ;;  %v2401_v56 = vpack.c.bf16 %v830_v51, %v827_v50  ;;  %v694_v50 = vld [vmem:[#allocation9 + $0x88] sm:$0xff]  ;;  %v745_v51 = vld [vmem:[#allocation9 + $0x220] sm:$0xff] }
 0x1bb   :  { %1021 = vmatprep.mubr.f32.mxu0 %v676_v58  ;;  %2368 = vmatprep.subr.bf16.mxu0 %v2367_v59  ;;  %v2403_v58 = vpack.c.bf16 %v837_v53, %v834_v52  ;;  %v833_v59 = vld [vmem:[#allocation9 + $0x4e0] sm:$0xff]  ;;  %v748_v52 = vld [vmem:[#allocation9 + $0x238] sm:$0xff] }
 0x1bc   :  { %v2405_v63 = vpack.c.bf16 %v836_v60, %v833_v59  ;;  %v700_v59 = vld [vmem:[#allocation9 + $0xb8] sm:$0xff]  ;;  %v751_v60 = vld [vmem:[#allocation9 + $0x250] sm:$0xff] }
 0x1bd   :  { %v2443_v49 = vpack.c.bf16 %v754_v48, %v751_v60  ;;  %v1176_v60 = vld [vmem:[#allocation10 + $0x28] sm:$0xff]  ;;  %v1205_v48 = vld [vmem:[#allocation10 + $0x110] sm:$0xff] }
 0x1be   :  { %2370 = vmatpush1.bf16.msra.mxu0 %v2369_v0  ;;  %v2407_v0 = vpack.c.bf16 %v843_v62, %v840_v61  ;;  %v706_v61 = vld [vmem:[#allocation9 + $0xe8] sm:$0xff]  ;;  %v757_v62 = vld [vmem:[#allocation9 + $0x280] sm:$0xff] }
 0x1bf   :  { %2372 = vmatprep.subr.bf16.mxu0 %v2371_v1  ;;  %v839_v1 = vld [vmem:[#allocation9 + $0x510] sm:$0xff] }
 0x1c0   :  { %v2409_v5 = vpack.c.bf16 %v842_v2, %v839_v1  ;;  %v709_v2 = vld [vmem:[#allocation9 + $0x100] sm:$0xff] }
 0x1c2   :  { %2374 = vmatpush1.bf16.msra.mxu0 %v2373_v6  ;;  %v2411_v6 = vpack.c.bf16 %v849_v4, %v846_v3  ;;  %v712_v3 = vld [vmem:[#allocation9 + $0x118] sm:$0xff]  ;;  %v763_v4 = vld [vmem:[#allocation9 + $0x2b0] sm:$0xff] }
 0x1c3   :  { %2376 = vmatprep.subr.bf16.mxu0 %v2375_v7  ;;  %v845_v7 = vld [vmem:[#allocation9 + $0x540] sm:$0xff] }
 0x1c4   :  { %v2413_v12 = vpack.c.bf16 %v848_v9, %v845_v7  ;;  %v715_v9 = vld [vmem:[#allocation9 + $0x130] sm:$0xff] }
 0x1c6   :  { %2378 = vmatpush1.bf16.msra.mxu0 %v2377_v13  ;;  %v2415_v13 = vpack.c.bf16 %v855_v11, %v852_v10  ;;  %v718_v10 = vld [vmem:[#allocation9 + $0x148] sm:$0xff]  ;;  %v769_v11 = vld [vmem:[#allocation9 + $0x2e0] sm:$0xff] }
 0x1c7   :  { %2380 = vmatprep.subr.bf16.mxu0 %v2379_v14  ;;  %v851_v14 = vld [vmem:[#allocation9 + $0x570] sm:$0xff] }
 0x1c8   :  { %v2417_v18 = vpack.c.bf16 %v854_v15, %v851_v14  ;;  %v721_v14 = vld [vmem:[#allocation9 + $0x160] sm:$0xff]  ;;  %v724_v15 = vld [vmem:[#allocation9 + $0x178] sm:$0xff] }
 0x1ca   :  { %2382 = vmatpush1.bf16.msra.mxu0 %v2381_v19  ;;  %v2419_v19 = vpack.c.bf16 %v861_v17, %v858_v16  ;;  %v1172_v17 = vld [vmem:[#allocation10 + $0x8] sm:$0xff] }
 0x1cb   :  { %2384 = vmatprep.subr.bf16.mxu0 %v2383_v20  ;;  %v857_v20 = vld [vmem:[#allocation9 + $0x5a0] sm:$0xff] }
 0x1cc   :  { %v2421_v24 = vpack.c.bf16 %v860_v21, %v857_v20  ;;  %v1174_v21 = vld [vmem:[#allocation10 + $0x18] sm:$0xff] }
 0x1ce   :  { %2386 = vmatpush1.bf16.msra.mxu0 %v2385_v25  ;;  %v2423_v25 = vpack.c.bf16 %v867_v23, %v864_v22  ;;  %v1178_v22 = vld [vmem:[#allocation10 + $0x38] sm:$0xff]  ;;  %v1181_v23 = vld [vmem:[#allocation10 + $0x50] sm:$0xff] }
 0x1cf   :  { %2388 = vmatprep.subr.bf16.mxu0 %v2387_v26  ;;  %v863_v26 = vld [vmem:[#allocation9 + $0x5d0] sm:$0xff] }
 0x1d0   :  { %v2425_v30 = vpack.c.bf16 %v866_v27, %v863_v26  ;;  %v1177_v26 = vld [vmem:[#allocation10 + $0x30] sm:$0xff]  ;;  %v1180_v27 = vld [vmem:[#allocation10 + $0x48] sm:$0xff] }
 0x1d2   :  { %2390 = vmatpush1.bf16.msra.mxu0 %v2389_v31  ;;  %v2427_v31 = vpack.c.bf16 %v730_v29, %v727_v28  ;;  %v1184_v28 = vld [vmem:[#allocation10 + $0x68] sm:$0xff]  ;;  %v2457_v29 = vpack.c.bf16 %v724_v15, %v721_v14  ;;  %v1207_v14 = vld [vmem:[#allocation10 + $0x120] sm:$0xff]  ;;  %v1210_v15 = vld [vmem:[#allocation10 + $0x138] sm:$0xff] }
 0x1d3   :  { %2392 = vmatprep.subr.bf16.mxu0 %v2391_v32  ;;  %v679_v32 = vld [vmem:[#allocation9 + $0x10] sm:$0xff] }
 0x1d4   :  { %v2429_v8 = vpack.c.bf16 %v682_v33, %v679_v32  ;;  %v1183_v33 = vld [vmem:[#allocation10 + $0x60] sm:$0xff] }
 0x1d6   :  { %2394 = vmatpush1.bf16.msra.mxu0 %v2393_v39  ;;  %v2431_v39 = vpack.c.bf16 %v736_v38, %v733_v35  ;;  %v1186_v35 = vld [vmem:[#allocation10 + $0x78] sm:$0xff] }
 0x1d7   :  { %2396 = vmatprep.subr.bf16.mxu0 %v2395_v40  ;;  %v685_v40 = vld [vmem:[#allocation9 + $0x40] sm:$0xff]  ;;  %v1190_v38 = vld [vmem:[#allocation10 + $0x98] sm:$0xff] }
 0x1d8   :  { %v2433_v45 = vpack.c.bf16 %v688_v41, %v685_v40  ;;  %v1189_v41 = vld [vmem:[#allocation10 + $0x90] sm:$0xff] }
 0x1da   :  { %2398 = vmatpush1.bf16.msra.mxu0 %v2397_v46  ;;  %v2435_v46 = vpack.c.bf16 %v742_v44, %v739_v42  ;;  %v1192_v42 = vld [vmem:[#allocation10 + $0xa8] sm:$0xff] }
 0x1db   :  { %2400 = vmatprep.subr.bf16.mxu0 %v2399_v47  ;;  %v691_v47 = vld [vmem:[#allocation9 + $0x70] sm:$0xff]  ;;  %v1196_v44 = vld [vmem:[#allocation10 + $0xc8] sm:$0xff] }
 0x1dc   :  { %v2437_v53 = vpack.c.bf16 %v694_v50, %v691_v47  ;;  %v1224_v47 = vld [vmem:[#allocation10 + $0x1a8] sm:$0xff]  ;;  %v2505_v50 = vpack.c.bf16 %v1192_v42, %v1189_v41  ;;  %v1222_v41 = vld [vmem:[#allocation10 + $0x198] sm:$0xff] }
 0x1de   :  { %2402 = vmatpush1.bf16.msra.mxu0 %v2401_v56  ;;  %v2439_v56 = vpack.c.bf16 %v748_v52, %v745_v51  ;;  %v1195_v51 = vld [vmem:[#allocation10 + $0xc0] sm:$0xff] }
 0x1df   :  { %2404 = vmatprep.subr.bf16.mxu0 %v2403_v58  ;;  %v697_v58 = vld [vmem:[#allocation9 + $0xa0] sm:$0xff] }
 0x1e2   :  { %2406 = vmatpush1.bf16.msra.mxu0 %v2405_v63  ;;  %v760_v63 = vld [vmem:[#allocation9 + $0x298] sm:$0xff] }
 0x1e3   :  { %2408 = vmatprep.subr.bf16.mxu0 %v2407_v0  ;;  %v2447_v1 = vpack.c.bf16 %v760_v63, %v757_v62  ;;  %v1201_v63 = vld [vmem:[#allocation10 + $0xf0] sm:$0xff] }
 0x1e6   :  { %2410 = vmatpush1.bf16.msra.mxu0 %v2409_v5  ;;  %v766_v5 = vld [vmem:[#allocation9 + $0x2c8] sm:$0xff] }
 0x1e7   :  { %2412 = vmatprep.subr.bf16.mxu0 %v2411_v6  ;;  %v2449_v6 = vpack.c.bf16 %v712_v3, %v709_v2  ;;  %v2451_v7 = vpack.c.bf16 %v766_v5, %v763_v4  ;;  %v1204_v3 = vld [vmem:[#allocation10 + $0x108] sm:$0xff] }
 0x1e8   :  { %v1208_v4 = vld [vmem:[#allocation10 + $0x128] sm:$0xff] }
 0x1e9   :  { %v1236_v5 = vld [vmem:[#allocation10 + $0x208] sm:$0xff] }
 0x1ea   :  { %2414 = vmatpush1.bf16.msra.mxu0 %v2413_v12  ;;  %v772_v12 = vld [vmem:[#allocation9 + $0x2f8] sm:$0xff] }
 0x1eb   :  { %2416 = vmatprep.subr.bf16.mxu0 %v2415_v13  ;;  %v2453_v13 = vpack.c.bf16 %v718_v10, %v715_v9  ;;  %v2455_v16 = vpack.c.bf16 %v772_v12, %v769_v11  ;;  %v1185_v9 = vld [vmem:[#allocation10 + $0x70] sm:$0xff]  ;;  %v1188_v10 = vld [vmem:[#allocation10 + $0x88] sm:$0xff]  ;;  %v1239_v11 = vld [vmem:[#allocation10 + $0x220] sm:$0xff] }
 0x1ec   :  { %v1242_v12 = vld [vmem:[#allocation10 + $0x238] sm:$0xff] }
 0x1ee   :  { %2418 = vmatpush1.bf16.msra.mxu0 %v2417_v18  ;;  %v1175_v18 = vld [vmem:[#allocation10 + $0x20] sm:$0xff] }
 0x1ef   :  { %2420 = vmatprep.subr.bf16.mxu0 %v2419_v19  ;;  %v1171_v19 = vld [vmem:[#allocation10] sm:$0xff]  ;;  %v2491_v20 = vpack.c.bf16 %v1175_v18, %v1172_v17  ;;  %v1214_v18 = vld [vmem:[#allocation10 + $0x158] sm:$0xff] }
 0x1f1   :  { %2492 = vmatprep.subr.bf16.mxu1 %v2491_v20  ;;  %v1191_v20 = vld [vmem:[#allocation10 + $0xa0] sm:$0xff] }
 0x1f2   :  { %2422 = vmatpush1.bf16.msra.mxu0 %v2421_v24  ;;  %v2493_v24 = vpack.c.bf16 %v1174_v21, %v1171_v19  ;;  %v2599_v19 = vpack.c.bf16 %v1242_v12, %v1239_v11  ;;  %v1194_v21 = vld [vmem:[#allocation10 + $0xb8] sm:$0xff] }
 0x1f3   :  { %2424 = vmatprep.subr.bf16.mxu0 %v2423_v25  ;;  %v2495_v25 = vpack.c.bf16 %v1181_v23, %v1178_v22  ;;  %v1217_v22 = vld [vmem:[#allocation10 + $0x170] sm:$0xff]  ;;  %v1246_v11 = vld [vmem:[#allocation10 + $0x258] sm:$0xff] }
 0x1f4   :  { %2494 = vmatpush1.bf16.msra.mxu1 %v2493_v24  ;;  %v1245_v23 = vld [vmem:[#allocation10 + $0x250] sm:$0xff]  ;;  %v1248_v24 = vld [vmem:[#allocation10 + $0x268] sm:$0xff]  ;;  %v1250_v12 = vld [vmem:[#allocation10 + $0x278] sm:$0xff] }
 0x1f5   :  { %2496 = vmatprep.subr.bf16.mxu1 %v2495_v25  ;;  %v2517_v25 = vpack.c.bf16 %v1210_v15, %v1207_v14 }
 0x1f6   :  { %2426 = vmatpush1.bf16.msra.mxu0 %v2425_v30  ;;  %v1187_v30 = vld [vmem:[#allocation10 + $0x80] sm:$0xff] }
 0x1f7   :  { %2428 = vmatprep.subr.bf16.mxu0 %v2427_v31  ;;  %v2497_v31 = vpack.c.bf16 %v1180_v27, %v1177_v26  ;;  %v2499_v32 = vpack.c.bf16 %v1187_v30, %v1184_v28  ;;  %v1213_v26 = vld [vmem:[#allocation10 + $0x150] sm:$0xff]  ;;  %v1216_v27 = vld [vmem:[#allocation10 + $0x168] sm:$0xff]  ;;  %v2601_v28 = vpack.c.bf16 %v1194_v21, %v1191_v20 }
 0x1f8   :  { %v1220_v30 = vld [vmem:[#allocation10 + $0x188] sm:$0xff] }
 0x1f9   :  { %1022 = vmatmul.mubr.f32.vlgmr.msra.gmra.mrb[2].mxu0 %v675_v54  ;;  %v2441_v54 = vpack.c.bf16 %v700_v59, %v697_v58  ;;  %2498 = vmatpush1.bf16.msra.mxu1 %v2497_v31  ;;  %v1198_v58 = vld [vmem:[#allocation10 + $0xd8] sm:$0xff]  ;;  %v2603_v31 = vpack.c.bf16 %v1248_v24, %v1245_v23  ;;  %v1209_v24 = vld [vmem:[#allocation10 + $0x130] sm:$0xff] }
 0x1fa   :  { %2430 = vmatpush3.bf16.msra.mxu0 %v2429_v8  ;;  %1092 = vmatprep.mubr.f32.mxu0 %v674_v55  ;;  %v703_v55 = vld [vmem:[#allocation9 + $0xd0] sm:$0xff]  ;;  %v1202_v59 = vld [vmem:[#allocation10 + $0xf8] sm:$0xff]  ;;  %v2509_v62 = vpack.c.bf16 %v1198_v58, %v1195_v51 }
 0x1fb   :  { %2432 = vmatprep.subr.bf16.mxu0 %v2431_v39  ;;  %v2445_v0 = vpack.c.bf16 %v706_v61, %v703_v55  ;;  %v1193_v8 = vld [vmem:[#allocation10 + $0xb0] sm:$0xff]  ;;  %v2501_v39 = vpack.c.bf16 %v1186_v35, %v1183_v33  ;;  %2500 = vmatprep.subr.bf16.mxu1 %v2499_v32  ;;  %v1179_v55 = vld [vmem:[#allocation10 + $0x40] sm:$0xff]  ;;  %v1182_v61 = vld [vmem:[#allocation10 + $0x58] sm:$0xff]  ;;  %v2511_v2 = vpack.c.bf16 %v1205_v48, %v1202_v59 }
 0x1fc   :  { %v2503_v40 = vpack.c.bf16 %v1193_v8, %v1190_v38  ;;  %v1197_v32 = vld [vmem:[#allocation10 + $0xd0] sm:$0xff]  ;;  %v1200_v33 = vld [vmem:[#allocation10 + $0xe8] sm:$0xff]  ;;  %v1223_v35 = vld [vmem:[#allocation10 + $0x1a0] sm:$0xff] }
 0x1fd   :  { %2502 = vmatpush1.bf16.msra.mxu1 %v2501_v39  ;;  %v1251_v38 = vld [vmem:[#allocation10 + $0x280] sm:$0xff]  ;;  %v1254_v8 = vld [vmem:[#allocation10 + $0x298] sm:$0xff]  ;;  %v2521_v39 = vpack.c.bf16 %v1216_v27, %v1213_v26  ;;  %v2605_v42 = vpack.c.bf16 %v1200_v33, %v1197_v32  ;;  %v1229_v51 = vld [vmem:[#allocation10 + $0x1d0] sm:$0xff] }
 0x1fe   :  { %2434 = vmatpush3.bf16.msra.mxu0 %v2433_v45  ;;  %v1199_v45 = vld [vmem:[#allocation10 + $0xe0] sm:$0xff]  ;;  %2504 = vmatprep.subr.bf16.mxu1 %v2503_v40  ;;  %v1228_v48 = vld [vmem:[#allocation10 + $0x1c8] sm:$0xff]  ;;  %v1258_v23 = vld [vmem:[#allocation10 + $0x2b8] sm:$0xff] }
 0x1ff   :  { %2436 = vmatprep.subr.bf16.mxu0 %v2435_v46  ;;  %v1221_v46 = vld [vmem:[#allocation10 + $0x190] sm:$0xff]  ;;  %v1219_v40 = vld [vmem:[#allocation10 + $0x180] sm:$0xff]  ;;  %v1212_v26 = vld [vmem:[#allocation10 + $0x148] sm:$0xff] }
 0x200   :  { %v2587_v52 = vpack.c.bf16 %v1224_v47, %v1221_v46  ;;  %v2607_v46 = vpack.c.bf16 %v1254_v8, %v1251_v38  ;;  %v1203_v47 = vld [vmem:[#allocation10 + $0x100] sm:$0xff]  ;;  %v2613_v27 = vpack.c.bf16 %v1212_v26, %v1209_v24  ;;  %v1266_v32 = vld [vmem:[#allocation10 + $0x2f8] sm:$0xff]  ;;  %v1261_v33 = vld [vmem:[#allocation10 + $0x2d0] sm:$0xff] }
 0x201   :  { %2506 = vmatpush1.bf16.msra.mxu1 %v2505_v50  ;;  %v1206_v50 = vld [vmem:[#allocation10 + $0x118] sm:$0xff]  ;;  %v1288_v24 = vld [vmem:[#allocation10 + $0x3a8] sm:$0xff] }
 0x202   :  { %2438 = vmatpush3.bf16.msra.mxu0 %v2437_v53  ;;  %v1173_v53 = vld [vmem:[#allocation10 + $0x10] sm:$0xff]  ;;  %v2609_v58 = vpack.c.bf16 %v1206_v50, %v1203_v47  ;;  %v1290_v26 = vld [vmem:[#allocation10 + $0x3b8] sm:$0xff] }
 0x203   :  { %2440 = vmatprep.subr.bf16.mxu0 %v2439_v56  ;;  %v2507_v56 = vpack.c.bf16 %v1199_v45, %v1196_v44  ;;  %v2523_v44 = vpack.c.bf16 %v1223_v35, %v1220_v30  ;;  %v1226_v45 = vld [vmem:[#allocation10 + $0x1b8] sm:$0xff]  ;;  %v1263_v30 = vld [vmem:[#allocation10 + $0x2e0] sm:$0xff]  ;;  %v1264_v35 = vld [vmem:[#allocation10 + $0x2e8] sm:$0xff] }
 0x204   :  { %v2527_v59 = vpack.c.bf16 %v1229_v51, %v1226_v45  ;;  %v2615_v38 = vpack.c.bf16 %v1266_v32, %v1263_v30  ;;  %v2553_v8 = vpack.c.bf16 %v1264_v35, %v1261_v33  ;;  %v1294_v33 = vld [vmem:[#allocation10 + $0x3d8] sm:$0xff]  ;;  %v1293_v35 = vld [vmem:[#allocation10 + $0x3d0] sm:$0xff] }
 0x205   :  { %2508 = vmatprep.subr.bf16.mxu1 %v2507_v56  ;;  %v2525_v56 = vpack.c.bf16 %v1222_v41, %v1219_v40  ;;  %v1218_v40 = vld [vmem:[#allocation10 + $0x178] sm:$0xff] }
 0x206   :  { %2442 = vmatpush3.bf16.msra.mxu0 %v2441_v54  ;;  %v2589_v54 = vpack.c.bf16 %v1176_v60, %v1173_v53  ;;  %2510 = vmatpush1.bf16.msra.mxu1 %v2509_v62  ;;  %v1260_v53 = vld [vmem:[#allocation10 + $0x2c8] sm:$0xff]  ;;  %v1225_v60 = vld [vmem:[#allocation10 + $0x1b0] sm:$0xff]  ;;  %v1234_v62 = vld [vmem:[#allocation10 + $0x1f8] sm:$0xff] }
 0x207   :  { %2444 = vmatprep.subr.bf16.mxu0 %v2443_v49  ;;  %v1227_v49 = vld [vmem:[#allocation10 + $0x1c0] sm:$0xff]  ;;  %2512 = vmatprep.subr.bf16.mxu1 %v2511_v2 }
 0x20a   :  { %2446 = vmatpush3.bf16.msra.mxu0 %v2445_v0  ;;  %v2593_v0 = vpack.c.bf16 %v1182_v61, %v1179_v55  ;;  %v1231_v61 = vld [vmem:[#allocation10 + $0x1e0] sm:$0xff] }
 0x20b   :  { %2448 = vmatprep.subr.bf16.mxu0 %v2447_v1  ;;  %v1233_v1 = vld [vmem:[#allocation10 + $0x1f0] sm:$0xff] }
 0x20e   :  { %2450 = vmatpush3.bf16.msra.mxu0 %v2449_v6  ;;  %v1211_v6 = vld [vmem:[#allocation10 + $0x140] sm:$0xff] }
 0x20f   :  { %2452 = vmatprep.subr.bf16.mxu0 %v2451_v7  ;;  %v2595_v7 = vpack.c.bf16 %v1236_v5, %v1233_v1  ;;  %v2515_v17 = vpack.c.bf16 %v1211_v6, %v1208_v4  ;;  %v2533_v1 = vpack.c.bf16 %v1234_v62, %v1231_v61  ;;  %v1240_v4 = vld [vmem:[#allocation10 + $0x228] sm:$0xff]  ;;  %v1247_v6 = vld [vmem:[#allocation10 + $0x260] sm:$0xff]  ;;  %v1277_v61 = vld [vmem:[#allocation10 + $0x350] sm:$0xff] }
 0x210   :  { %v1244_v5 = vld [vmem:[#allocation10 + $0x248] sm:$0xff] }
 0x212   :  { %2454 = vmatpush3.bf16.msra.mxu0 %v2453_v13  ;;  %v2513_v13 = vpack.c.bf16 %v1204_v3, %v1201_v63  ;;  %v1238_v63 = vld [vmem:[#allocation10 + $0x218] sm:$0xff]  ;;  %v1237_v3 = vld [vmem:[#allocation10 + $0x210] sm:$0xff] }
 0x213   :  { %2456 = vmatprep.subr.bf16.mxu0 %v2455_v16  ;;  %v2597_v16 = vpack.c.bf16 %v1188_v10, %v1185_v9  ;;  %v2539_v9 = vpack.c.bf16 %v1247_v6, %v1244_v5  ;;  %v1243_v10 = vld [vmem:[#allocation10 + $0x240] sm:$0xff]  ;;  %v1278_v6 = vld [vmem:[#allocation10 + $0x358] sm:$0xff] }
 0x214   :  { %2514 = vmatpush1.bf16.msra.mxu1 %v2513_v13  ;;  %v1253_v13 = vld [vmem:[#allocation10 + $0x290] sm:$0xff]  ;;  %v2541_v14 = vpack.c.bf16 %v1246_v11, %v1243_v10  ;;  %v1275_v5 = vld [vmem:[#allocation10 + $0x340] sm:$0xff] }
 0x215   :  { %2516 = vmatprep.subr.bf16.mxu1 %v2515_v17  ;;  %v2543_v15 = vpack.c.bf16 %v1253_v13, %v1250_v12  ;;  %v1252_v17 = vld [vmem:[#allocation10 + $0x288] sm:$0xff]  ;;  %v2623_v11 = vpack.c.bf16 %v1278_v6, %v1275_v5  ;;  %v1279_v12 = vld [vmem:[#allocation10 + $0x360] sm:$0xff]  ;;  %v1620_v5 = vld [vmem:[#allocation12 + $0x18] sm:$0xff] }
 0x216   :  { %2458 = vmatpush3.bf16.msra.mxu0 %v2457_v29  ;;  %v2519_v29 = vpack.c.bf16 %v1217_v22, %v1214_v18  ;;  %v1256_v18 = vld [vmem:[#allocation10 + $0x2a8] sm:$0xff]  ;;  %v1255_v22 = vld [vmem:[#allocation10 + $0x2a0] sm:$0xff] }
 0x217   :  { %2588 = vmatprep.subr.bf16.mxu0 %v2587_v52  ;;  %v1257_v52 = vld [vmem:[#allocation10 + $0x2b0] sm:$0xff] }
 0x218   :  { %2518 = vmatpush1.bf16.msra.mxu1 %v2517_v25  ;;  %v2549_v25 = vpack.c.bf16 %v1258_v23, %v1255_v22  ;;  %v1285_v22 = vld [vmem:[#allocation10 + $0x390] sm:$0xff] }
 0x219   :  { %1093 = vmatmul.mubr.f32.vlgmr.msra.gmra.mrb[4].mxu0 %v673_v57  ;;  %v2591_v57 = vpack.c.bf16 %v1230_v43, %v1227_v49  ;;  %2520 = vmatprep.subr.bf16.mxu1 %v2519_v29  ;;  %v1232_v49 = vld [vmem:[#allocation10 + $0x1e8] sm:$0xff]  ;;  %v1235_v43 = vld [vmem:[#allocation10 + $0x200] sm:$0xff]  ;;  %v1265_v29 = vld [vmem:[#allocation10 + $0x2f0] sm:$0xff] }
 0x21a   :  { %2590 = vmatpush3.bf16.msra.mxu0 %v2589_v54  ;;  %v2611_v54 = vpack.c.bf16 %v1260_v53, %v1257_v52  ;;  %v2531_v55 = vpack.c.bf16 %v1235_v43, %v1232_v49  ;;  %v3098_v52 = vld [vmem:[%s3148_s5] sm:$0x7]  ;;  %v1269_v49 = vld [vmem:[#allocation10 + $0x310] sm:$0xff]  ;;  %v1272_v43 = vld [vmem:[#allocation10 + $0x328] sm:$0xff] }
 0x21b   :  { %2592 = vmatprep.subr.bf16.mxu0 %v2591_v57  ;;  %v2529_v57 = vpack.c.bf16 %v1228_v48, %v1225_v60  ;;  %v874_v53 = vrot.slane %v3098_v52, %v3059_v34 }
 0x21c   :  { %2522 = vmatpush1.bf16.msra.mxu1 %v2521_v39  ;;  %v1215_v39 = vld [vmem:[#allocation10 + $0x160] sm:$0xff] }
 0x21d   :  { %2524 = vmatprep.subr.bf16.mxu1 %v2523_v44  ;;  %v2617_v41 = vpack.c.bf16 %v1218_v40, %v1215_v39  ;;  %v1271_v44 = vld [vmem:[#allocation10 + $0x320] sm:$0xff]  ;;  %v1301_v39 = vld [vmem:[#allocation10 + $0x410] sm:$0xff] }
 0x21e   :  { %2594 = vmatpush3.bf16.msra.mxu0 %v2593_v0  ;;  %v1241_v0 = vld [vmem:[#allocation10 + $0x230] sm:$0xff] }
 0x21f   :  { %2596 = vmatprep.subr.bf16.mxu0 %v2595_v7  ;;  %v2535_v2 = vpack.c.bf16 %v1241_v0, %v1238_v63  ;;  %v2537_v7 = vpack.c.bf16 %v1240_v4, %v1237_v3  ;;  %v2620_v0 = vpack.c.bf16 %v1272_v43, %v1269_v49  ;;  %v1276_v4 = vld [vmem:[#allocation10 + $0x348] sm:$0xff]  ;;  %v1305_v49 = vld [vmem:[#allocation10 + $0x430] sm:$0xff] }
 0x220   :  { %2526 = vmatpush1.bf16.msra.mxu1 %v2525_v56  ;;  %v878_v56 = vrot.slane %v3098_v52, %v3066_v37  ;;  %v1308_v43 = vld [vmem:[#allocation10 + $0x448] sm:$0xff] }
 0x221   :  { %2528 = vmatprep.subr.bf16.mxu1 %v2527_v59  ;;  %v1267_v59 = vld [vmem:[#allocation10 + $0x300] sm:$0xff] }
 0x222   :  { %2598 = vmatpush3.bf16.msra.mxu0 %v2597_v16  ;;  %v1249_v16 = vld [vmem:[#allocation10 + $0x270] sm:$0xff] }
 0x223   :  { %2600 = vmatprep.subr.bf16.mxu0 %v2599_v19  ;;  %v1259_v19 = vld [vmem:[#allocation10 + $0x2c0] sm:$0xff]  ;;  %v2545_v20 = vpack.c.bf16 %v1252_v17, %v1249_v16  ;;  %v1284_v16 = vld [vmem:[#allocation10 + $0x388] sm:$0xff]  ;;  %v1286_v17 = vld [vmem:[#allocation10 + $0x398] sm:$0xff] }
 0x224   :  { %2530 = vmatpush1.bf16.msra.mxu1 %v2529_v57  ;;  %v2547_v21 = vpack.c.bf16 %v1259_v19, %v1256_v18  ;;  %v1289_v18 = vld [vmem:[#allocation10 + $0x3b0] sm:$0xff]  ;;  %v2926_v19 = vmov 0.0  }
 0x225   :  { %2532 = vmatprep.subr.bf16.mxu1 %v2531_v55  ;;  %v1274_v55 = vld [vmem:[#allocation10 + $0x338] sm:$0xff]  ;;  %v2567_v23 = vpack.c.bf16 %v1289_v18, %v1286_v17  ;;  %v1622_v17 = vld [vmem:[#allocation12 + $0x28] sm:$0xff] }
 0x226   :  { %2602 = vmatpush3.bf16.msra.mxu0 %v2601_v28  ;;  %v1262_v28 = vld [vmem:[#allocation10 + $0x2d8] sm:$0xff]  ;;  %v2559_v3 = vpack.c.bf16 %v1277_v61, %v1274_v55  ;;  %v1313_v55 = vld [vmem:[#allocation10 + $0x470] sm:$0xff] }
 0x227   :  { %2604 = vmatprep.subr.bf16.mxu0 %v2603_v31  ;;  %v2551_v31 = vpack.c.bf16 %v1265_v29, %v1262_v28  ;;  %v1295_v28 = vld [vmem:[#allocation10 + $0x3e0] sm:$0xff]  ;;  %v2569_v29 = vpack.c.bf16 %v1288_v24, %v1285_v22  ;;  %v1624_v18 = vld [vmem:[#allocation12 + $0x38] sm:$0xff]  ;;  %v1623_v24 = vld [vmem:[#allocation12 + $0x30] sm:$0xff] }
 0x228   :  { %2534 = vmatpush1.bf16.msra.mxu1 %v2533_v1  ;;  %v1273_v1 = vld [vmem:[#allocation10 + $0x330] sm:$0xff]  ;;  %v2647_v22 = vpack.c.bf16 %v1624_v18, %v1622_v17  ;;  %v1657_v17 = vld [vmem:[#allocation12 + $0x140] sm:$0xff] }
 0x229   :  { %2536 = vmatprep.subr.bf16.mxu1 %v2535_v2  ;;  %v2561_v10 = vpack.c.bf16 %v1276_v4, %v1273_v1  ;;  %v1312_v1 = vld [vmem:[#allocation10 + $0x468] sm:$0xff]  ;;  %v1659_v18 = vld [vmem:[#allocation12 + $0x150] sm:$0xff] }
 0x22a   :  { %2606 = vmatpush3.bf16.msra.mxu0 %v2605_v42  ;;  %v1268_v42 = vld [vmem:[#allocation10 + $0x308] sm:$0xff] }
 0x22b   :  { %2608 = vmatprep.subr.bf16.mxu0 %v2607_v46  ;;  %v2555_v45 = vpack.c.bf16 %v1271_v44, %v1268_v42  ;;  %v2925_v46 = vmov 0.0|0.0   ;;  %v1297_v42 = vld [vmem:[#allocation10 + $0x3f0] sm:$0xff]  ;;  %v1618_v4 = vld [vmem:[#allocation12 + $0x8] sm:$0xff] }
 0x22c   :  { %2538 = vmatpush1.bf16.msra.mxu1 %v2537_v7  ;;  %v1280_v7 = vld [vmem:[#allocation10 + $0x368] sm:$0xff] }
 0x22d   :  { %2540 = vmatprep.subr.bf16.mxu1 %v2539_v9  ;;  %v1283_v9 = vld [vmem:[#allocation10 + $0x380] sm:$0xff] }
 0x22e   :  { %2610 = vmatpush3.bf16.msra.mxu0 %v2609_v58  ;;  %v2563_v13 = vpack.c.bf16 %v1283_v9, %v1280_v7  ;;  %v882_v7 = vrot.slane %v3098_v52, %v3064_v36 }
 0x22f   :  { %2612 = vmatprep.subr.bf16.mxu0 %v2611_v54  ;;  %v1270_v54 = vld [vmem:[#allocation10 + $0x318] sm:$0xff] }
 0x230   :  { %2542 = vmatpush1.bf16.msra.mxu1 %v2541_v14  ;;  %v2557_v63 = vpack.c.bf16 %v1270_v54, %v1267_v59  ;;  %v1282_v14 = vld [vmem:[#allocation10 + $0x378] sm:$0xff] }
 0x231   :  { %2544 = vmatprep.subr.bf16.mxu1 %v2543_v15  ;;  %v1281_v15 = vld [vmem:[#allocation10 + $0x370] sm:$0xff]  ;;  %v1306_v54 = vld [vmem:[#allocation10 + $0x438] sm:$0xff] }
 0x232   :  { %2614 = vmatpush3.bf16.msra.mxu0 %v2613_v27  ;;  %v1292_v27 = vld [vmem:[#allocation10 + $0x3c8] sm:$0xff] }
 0x233   :  { %2616 = vmatprep.subr.bf16.mxu0 %v2615_v38  ;;  %v2571_v32 = vpack.c.bf16 %v1295_v28, %v1292_v27  ;;  %v1296_v38 = vld [vmem:[#allocation10 + $0x3e8] sm:$0xff]  ;;  %v1625_v28 = vld [vmem:[#allocation12 + $0x40] sm:$0xff] }
 0x234   :  { %2546 = vmatpush1.bf16.msra.mxu1 %v2545_v20  ;;  %v2565_v20 = vpack.c.bf16 %v1282_v14, %v1279_v12  ;;  %v2643_v12 = vpack.c.bf16 %v1620_v5, %v1618_v4  ;;  %v1649_v4 = vld [vmem:[#allocation12 + $0x100] sm:$0xff]  ;;  %v1651_v5 = vld [vmem:[#allocation12 + $0x110] sm:$0xff] }
 0x235   :  { %2548 = vmatprep.subr.bf16.mxu1 %v2547_v21  ;;  %v2626_v21 = vpack.c.bf16 %v1284_v16, %v1281_v15  ;;  %v1617_v15 = vld [vmem:[#allocation12] sm:$0xff]  ;;  %v1619_v16 = vld [vmem:[#allocation12 + $0x10] sm:$0xff] }
 0x236   :  { %2618 = vmatpush3.bf16.msra.mxu0 %v2617_v41  ;;  %v2632_v41 = vpack.c.bf16 %v1296_v38, %v1293_v35  ;;  %v1631_v35 = vld [vmem:[#allocation12 + $0x70] sm:$0xff]  ;;  %v1634_v38 = vld [vmem:[#allocation12 + $0x88] sm:$0xff] }
 0x237   :  { %2619 = vmatprep.subr.bf16.mxu0 %v2925_v46 }
 0x238   :  { %2550 = vmatpush1.bf16.msra.mxu1 %v2549_v25  ;;  %v1287_v25 = vld [vmem:[#allocation10 + $0x3a0] sm:$0xff] }
 0x239   :  { %2552 = vmatprep.subr.bf16.mxu1 %v2551_v31  ;;  %v2629_v30 = vpack.c.bf16 %v1290_v26, %v1287_v25  ;;  %v1291_v31 = vld [vmem:[#allocation10 + $0x3c0] sm:$0xff]  ;;  %v1626_v25 = vld [vmem:[#allocation12 + $0x48] sm:$0xff]  ;;  %v1628_v26 = vld [vmem:[#allocation12 + $0x58] sm:$0xff] }
 0x23a   :  { %v2573_v40 = vpack.c.bf16 %v1294_v33, %v1291_v31  ;;  %v2651_v27 = vpack.c.bf16 %v1628_v26, %v1626_v25  ;;  %v1632_v31 = vld [vmem:[#allocation12 + $0x78] sm:$0xff]  ;;  %v1629_v33 = vld [vmem:[#allocation12 + $0x60] sm:$0xff]  ;;  %v1666_v25 = vld [vmem:[#allocation12 + $0x188] sm:$0xff] }
 0x23b   :  { %v1668_v26 = vld [vmem:[#allocation12 + $0x198] sm:$0xff] }
 0x23c   :  { %2554 = vmatpush1.bf16.msra.mxu1 %v2553_v8  ;;  %v1298_v8 = vld [vmem:[#allocation10 + $0x3f8] sm:$0xff] }
 0x23d   :  { %2556 = vmatprep.subr.bf16.mxu1 %v2555_v45  ;;  %v2575_v44 = vpack.c.bf16 %v1301_v39, %v1298_v8  ;;  %v1300_v45 = vld [vmem:[#allocation10 + $0x408] sm:$0xff]  ;;  %v1636_v8 = vld [vmem:[#allocation12 + $0x98] sm:$0xff]  ;;  %v2657_v39 = vpack.c.bf16 %v1631_v35, %v1629_v33  ;;  %v1669_v33 = vld [vmem:[#allocation12 + $0x1a0] sm:$0xff] }
 0x23e   :  { %v1671_v35 = vld [vmem:[#allocation12 + $0x1b0] sm:$0xff] }
 0x28d   :  { %v1953_v47 = vpop.f32.mrb[2].mxu1 }
 0x28e   :  { %v1954_v50 = vpop.f32.mrb[3].mxu1 }
 0x28f   :  { %v3093_v51 = vadd.f32 %v1954_v50, %v1953_v47  ;;  %v1299_v47 = vld [vmem:[#allocation10 + $0x400] sm:$0xff]  ;;  %v1302_v50 = vld [vmem:[#allocation10 + $0x418] sm:$0xff] }
 0x290   :  { %v2635_v59 = vpack.c.bf16 %v1302_v50, %v1299_v47 }
 0x2cc   :  { %v1023_v58 = vpop.f32.mrb[2].mxu0 }
 0x2cd   :  { %v2743_v60 = vadd.f32 %v1023_v58, %v874_v53  ;;  %v1025_v48 = vpop.f32.mrb[3].mxu0  ;;  %v1304_v53 = vld [vmem:[#allocation10 + $0x428] sm:$0xff]  ;;  %v2577_v58 = vpack.c.bf16 %v1300_v45, %v1297_v42  ;;  %v1635_v42 = vld [vmem:[#allocation12 + $0x90] sm:$0xff]  ;;  %v1640_v45 = vld [vmem:[#allocation12 + $0xb8] sm:$0xff] }
 0x2ce   :  { %v2744_v57 = vadd.f32 %v1025_v48, %v878_v56  ;;  %v1307_v56 = vld [vmem:[#allocation10 + $0x440] sm:$0xff] }
 0x2cf   :  { %v1168_v2 = vmax.f32 %v2743_v60, 0.0  ;;  %v1303_v60 = vld [vmem:[#allocation10 + $0x420] sm:$0xff]  ;;  %v2579_v48 = vpack.c.bf16 %v1307_v56, %v1304_v53  ;;  %v1639_v56 = vld [vmem:[#allocation12 + $0xb0] sm:$0xff] }
 0x2d0   :  { %v1169_v62 = vmax.f32 %v2744_v57, 0.0  ;;  %v1310_v57 = vld [vmem:[#allocation10 + $0x458] sm:$0xff]  ;;  %v2581_v61 = vpack.c.bf16 %v1306_v54, %v1303_v60  ;;  %v1637_v53 = vld [vmem:[#allocation12 + $0xa0] sm:$0xff] }
 0x2d1   :  { %v1644_v60 = vld [vmem:[#allocation12 + $0xd8] sm:$0xff]  ;;  %v1641_v54 = vld [vmem:[#allocation12 + $0xc0] sm:$0xff] }
 0x2d2   :  { %1396 = vmatprep.mubr.f32.mxu1 %v1169_v62  ;;  %1538 = vmatprep.mubr.f32.mxu0 %v1169_v62  ;;  %v2638_v62 = vpack.c.bf16 %v1308_v43, %v1305_v49  ;;  %v1643_v49 = vld [vmem:[#allocation12 + $0xd0] sm:$0xff] }
 0x2d3   :  { %1397 = vmatmul.mubr.f32.vlgmr.msra.gmra.mrb[4].mxu1 %v1168_v2  ;;  %1539 = vmatmul.mubr.f32.vlgmr.msra.gmra.mrb[6].mxu0 %v1168_v2  ;;  %v1311_v2 = vld [vmem:[#allocation10 + $0x460] sm:$0xff]  ;;  %v2669_v43 = vpack.c.bf16 %v1643_v49, %v1641_v54 }
 0x2d4   :  { %2558 = vmatpush1.bf16.msra.mxu1 %v2557_v63  ;;  %2621 = vmatpush3.bf16.msra.mxu0 %v2620_v0  ;;  %v1309_v63 = vld [vmem:[#allocation10 + $0x450] sm:$0xff]  ;;  %v2583_v0 = vpack.c.bf16 %v1313_v55, %v1310_v57  ;;  %v1646_v57 = vld [vmem:[#allocation12 + $0xe8] sm:$0xff]  ;;  %v1648_v55 = vld [vmem:[#allocation12 + $0xf8] sm:$0xff] }
 0x2d5   :  { %2560 = vmatprep.subr.bf16.mxu1 %v2559_v3  ;;  %2622 = vmatprep.subr.bf16.mxu0 %v2925_v46  ;;  %v1314_v3 = vld [vmem:[#allocation10 + $0x478] sm:$0xff]  ;;  %v2585_v9 = vpack.c.bf16 %v1312_v1, %v1309_v63  ;;  %v1647_v63 = vld [vmem:[#allocation12 + $0xf0] sm:$0xff] }
 0x2d6   :  { %1467 = vmatprep.mubr.f32.mxu1 %v2926_v19  ;;  %2040 = vmatprep.mubr.msk.f32.mxu0 %vm2927_vm0, %v2926_v19  ;;  %v1652_v1 = vld [vmem:[#allocation12 + $0x118] sm:$0xff] }
 0x2d8   :  { %2562 = vmatpush1.bf16.msra.mxu1 %v2561_v10  ;;  %2624 = vmatpush3.bf16.msra.mxu0 %v2623_v11  ;;  %v2641_v10 = vpack.c.bf16 %v1314_v3, %v1311_v2 }
 0x2d9   :  { %2564 = vmatprep.subr.bf16.mxu1 %v2563_v13  ;;  %2625 = vmatprep.subr.bf16.mxu0 %v2925_v46 }
 0x2dc   :  { %2566 = vmatpush1.bf16.msra.mxu1 %v2565_v20  ;;  %2627 = vmatpush3.bf16.msra.mxu0 %v2626_v21  ;;  %v2645_v20 = vpack.c.bf16 %v1619_v16, %v1617_v15 }
 0x2dd   :  { %2568 = vmatprep.subr.bf16.mxu1 %v2567_v23  ;;  %2628 = vmatprep.subr.bf16.mxu0 %v2925_v46  ;;  %v1621_v23 = vld [vmem:[#allocation12 + $0x20] sm:$0xff] }
 0x2e0   :  { %2570 = vmatpush1.bf16.msra.mxu1 %v2569_v29  ;;  %2630 = vmatpush3.bf16.msra.mxu0 %v2629_v30  ;;  %v1627_v29 = vld [vmem:[#allocation12 + $0x50] sm:$0xff]  ;;  %v1630_v30 = vld [vmem:[#allocation12 + $0x68] sm:$0xff] }
 0x2e1   :  { %2572 = vmatprep.subr.bf16.mxu1 %v2571_v32  ;;  %2631 = vmatprep.subr.bf16.mxu0 %v2925_v46  ;;  %v2653_v32 = vpack.c.bf16 %v1627_v29, %v1625_v28  ;;  %v1665_v28 = vld [vmem:[#allocation12 + $0x180] sm:$0xff]  ;;  %v1667_v29 = vld [vmem:[#allocation12 + $0x190] sm:$0xff] }
 0x2e4   :  { %2574 = vmatpush1.bf16.msra.mxu1 %v2573_v40  ;;  %2633 = vmatpush3.bf16.msra.mxu0 %v2632_v41  ;;  %v2659_v40 = vpack.c.bf16 %v1636_v8, %v1634_v38  ;;  %v1633_v41 = vld [vmem:[#allocation12 + $0x80] sm:$0xff]  ;;  %v1674_v38 = vld [vmem:[#allocation12 + $0x1c8] sm:$0xff]  ;;  %v1676_v8 = vld [vmem:[#allocation12 + $0x1d8] sm:$0xff] }
 0x2e5   :  { %2576 = vmatprep.subr.bf16.mxu1 %v2575_v44  ;;  %2634 = vmatprep.subr.bf16.mxu0 %v2925_v46  ;;  %v1638_v44 = vld [vmem:[#allocation12 + $0xa8] sm:$0xff]  ;;  %v2661_v47 = vpack.c.bf16 %v1635_v42, %v1633_v41  ;;  %v1673_v41 = vld [vmem:[#allocation12 + $0x1c0] sm:$0xff]  ;;  %v1675_v42 = vld [vmem:[#allocation12 + $0x1d0] sm:$0xff] }
 0x2e6   :  { %v2663_v50 = vpack.c.bf16 %v1640_v45, %v1638_v44  ;;  %v2701_v44 = vpack.c.bf16 %v1675_v42, %v1673_v41  ;;  %v1678_v45 = vld [vmem:[#allocation12 + $0x1e8] sm:$0xff]  ;;  %v1708_v41 = vld [vmem:[#allocation12 + $0x2d8] sm:$0xff] }
 0x2e8   :  { %2578 = vmatpush1.bf16.msra.mxu1 %v2577_v58  ;;  %2636 = vmatpush3.bf16.msra.mxu0 %v2635_v59  ;;  %v2665_v58 = vpack.c.bf16 %v1639_v56, %v1637_v53  ;;  %v1642_v59 = vld [vmem:[#allocation12 + $0xc8] sm:$0xff]  ;;  %v1677_v53 = vld [vmem:[#allocation12 + $0x1e0] sm:$0xff]  ;;  %v1679_v56 = vld [vmem:[#allocation12 + $0x1f0] sm:$0xff] }
 0x2e9   :  { %2580 = vmatprep.subr.bf16.mxu1 %v2579_v48  ;;  %2637 = vmatprep.subr.bf16.mxu0 %v2925_v46  ;;  %v2667_v48 = vpack.c.bf16 %v1644_v60, %v1642_v59  ;;  %v1682_v59 = vld [vmem:[#allocation12 + $0x208] sm:$0xff]  ;;  %v1684_v60 = vld [vmem:[#allocation12 + $0x218] sm:$0xff] }
 0x2ec   :  { %v1918_v6 = vpop.f32.mrb[4].mxu0  ;;  %2582 = vmatpush1.bf16.msra.mxu1 %v2581_v61  ;;  %2639 = vmatpush3.bf16.msra.mxu0 %v2638_v62  ;;  %v1645_v61 = vld [vmem:[#allocation12 + $0xe0] sm:$0xff]  ;;  %v2671_v62 = vpack.c.bf16 %v1648_v55, %v1646_v57 }
 0x2ed   :  { %v1919_v11 = vpop.f32.mrb[5].mxu0  ;;  %2584 = vmatprep.subr.bf16.mxu1 %v2583_v0  ;;  %2640 = vmatprep.subr.bf16.mxu0 %v2925_v46  ;;  %v2649_v46 = vpack.c.bf16 %v1623_v24, %v1621_v23  ;;  %v1650_v0 = vld [vmem:[#allocation12 + $0x108] sm:$0xff]  ;;  %v2673_v2 = vpack.c.bf16 %v1647_v63, %v1645_v61  ;;  %v1661_v23 = vld [vmem:[#allocation12 + $0x160] sm:$0xff]  ;;  %v1663_v24 = vld [vmem:[#allocation12 + $0x170] sm:$0xff] }
 0x2ee   :  { %v1920_v13 = vadd.f32 %v1919_v11, %v1918_v6  ;;  %v2675_v3 = vpack.c.bf16 %v1652_v1, %v1650_v0  ;;  %v1654_v6 = vld [vmem:[#allocation12 + $0x128] sm:$0xff]  ;;  %v1653_v11 = vld [vmem:[#allocation12 + $0x120] sm:$0xff] }
 0x2ef   :  { %v1315_v57 = vld [vmem:[%s3150_s7] sm:$0x7] }
 0x2f0   :  { %v1095_v14 = vadd.f32 %v1920_v13, %v882_v7  ;;  %2586 = vmatpush1.bf16.msra.mxu1 %v2585_v9  ;;  %2642 = vmatpush3.bf16.msra.mxu0 %v2641_v10  ;;  %v1656_v7 = vld [vmem:[#allocation12 + $0x138] sm:$0xff]  ;;  %v2677_v9 = vpack.c.bf16 %v1651_v5, %v1649_v4  ;;  %v1658_v13 = vld [vmem:[#allocation12 + $0x148] sm:$0xff]  ;;  %v1328_v55 = vrot.slane %v1315_v57, %v3064_v36 }
 0x2f1   :  { %2644 = vmatprep.subr.bf16.mxu1 %v2643_v12  ;;  %v2679_v10 = vpack.c.bf16 %v1656_v7, %v1654_v6  ;;  %v1655_v12 = vld [vmem:[#allocation12 + $0x130] sm:$0xff]  ;;  %v1320_v61 = vrot.slane %v1315_v57, %v3059_v34  ;;  %v1681_v6 = vld [vmem:[#allocation12 + $0x200] sm:$0xff] }
 0x2f2   :  { %v1165_v52 = vadd.f32 %v3093_v51, %v1095_v14  ;;  %v2655_v51 = vpack.c.bf16 %v1632_v31, %v1630_v30  ;;  %v1660_v14 = vld [vmem:[#allocation12 + $0x158] sm:$0xff]  ;;  %v2681_v15 = vpack.c.bf16 %v1655_v12, %v1653_v11  ;;  %v1670_v30 = vld [vmem:[#allocation12 + $0x1a8] sm:$0xff]  ;;  %v1683_v7 = vld [vmem:[#allocation12 + $0x210] sm:$0xff] }
 0x2f3   :  { %v2683_v16 = vpack.c.bf16 %v1660_v14, %v1658_v13  ;;  %v1672_v31 = vld [vmem:[#allocation12 + $0x1b8] sm:$0xff]  ;;  %v2709_v13 = vpack.c.bf16 %v1683_v7, %v1681_v6 }
 0x2f4   :  { %v1170_v21 = vmax.f32 %v1165_v52, 0.0  ;;  %v1662_v52 = vld [vmem:[#allocation12 + $0x168] sm:$0xff]  ;;  %v1688_v11 = vld [vmem:[#allocation12 + $0x238] sm:$0xff] }
 0x2f6   :  { %1468 = vmatmul.mubr.f32.vlgmr.msra.gmra.mrb[4].mxu1 %v1170_v21  ;;  %2041 = vmatmul.mubr.f32.vlgmr.msra.gmra.mrb[8].mxu0 %v1170_v21  ;;  %v2685_v21 = vpack.c.bf16 %v1659_v18, %v1657_v17  ;;  %v1690_v17 = vld [vmem:[#allocation12 + $0x248] sm:$0xff]  ;;  %v1692_v18 = vld [vmem:[#allocation12 + $0x258] sm:$0xff] }
 0x2f7   :  { %2646 = vmatpush1.bf16.msra.mxu1 %v2645_v20  ;;  %v1664_v20 = vld [vmem:[#allocation12 + $0x178] sm:$0xff] }
 0x2f8   :  { %2648 = vmatprep.subr.bf16.mxu1 %v2647_v22  ;;  %v2687_v22 = vpack.c.bf16 %v1664_v20, %v1662_v52  ;;  %v2715_v20 = vpack.c.bf16 %v1692_v18, %v1690_v17 }
 0x2fb   :  { %2650 = vmatpush1.bf16.msra.mxu1 %v2649_v46  ;;  %v2689_v46 = vpack.c.bf16 %v1663_v24, %v1661_v23  ;;  %v1694_v23 = vld [vmem:[#allocation12 + $0x268] sm:$0xff]  ;;  %v1696_v24 = vld [vmem:[#allocation12 + $0x278] sm:$0xff] }
 0x2fc   :  { %2652 = vmatprep.subr.bf16.mxu1 %v2651_v27  ;;  %v2691_v27 = vpack.c.bf16 %v1668_v26, %v1666_v25  ;;  %v2719_v26 = vpack.c.bf16 %v1696_v24, %v1694_v23 }
 0x2ff   :  { %2654 = vmatpush1.bf16.msra.mxu1 %v2653_v32  ;;  %v2693_v32 = vpack.c.bf16 %v1667_v29, %v1665_v28  ;;  %v1698_v28 = vld [vmem:[#allocation12 + $0x288] sm:$0xff]  ;;  %v1700_v29 = vld [vmem:[#allocation12 + $0x298] sm:$0xff] }
 0x300   :  { %2656 = vmatprep.subr.bf16.mxu1 %v2655_v51  ;;  %v2695_v51 = vpack.c.bf16 %v1672_v31, %v1670_v30  ;;  %v2723_v31 = vpack.c.bf16 %v1700_v29, %v1698_v28 }
 0x303   :  { %2658 = vmatpush1.bf16.msra.mxu1 %v2657_v39  ;;  %v2697_v39 = vpack.c.bf16 %v1671_v35, %v1669_v33  ;;  %v1704_v33 = vld [vmem:[#allocation12 + $0x2b8] sm:$0xff] }
 0x304   :  { %2660 = vmatprep.subr.bf16.mxu1 %v2659_v40  ;;  %v2699_v40 = vpack.c.bf16 %v1676_v8, %v1674_v38  ;;  %v1701_v8 = vld [vmem:[#allocation12 + $0x2a0] sm:$0xff] }
 0x307   :  { %2662 = vmatpush1.bf16.msra.mxu1 %v2661_v47  ;;  %v1680_v47 = vld [vmem:[#allocation12 + $0x1f8] sm:$0xff] }
 0x308   :  { %2664 = vmatprep.subr.bf16.mxu1 %v2663_v50  ;;  %v2703_v50 = vpack.c.bf16 %v1680_v47, %v1678_v45  ;;  %v1705_v45 = vld [vmem:[#allocation12 + $0x2c0] sm:$0xff]  ;;  %v1707_v47 = vld [vmem:[#allocation12 + $0x2d0] sm:$0xff] }
 0x30b   :  { %2666 = vmatpush1.bf16.msra.mxu1 %v2665_v58  ;;  %v2705_v58 = vpack.c.bf16 %v1679_v56, %v1677_v53  ;;  %v1712_v53 = vld [vmem:[#allocation12 + $0x2f8] sm:$0xff]  ;;  %v2733_v56 = vpack.c.bf16 %v1707_v47, %v1705_v45 }
 0x30c   :  { %2668 = vmatprep.subr.bf16.mxu1 %v2667_v48  ;;  %v2707_v48 = vpack.c.bf16 %v1684_v60, %v1682_v59  ;;  %v1709_v59 = vld [vmem:[#allocation12 + $0x2e0] sm:$0xff]  ;;  %v1711_v60 = vld [vmem:[#allocation12 + $0x2f0] sm:$0xff] }
 0x30f   :  { %2670 = vmatpush1.bf16.msra.mxu1 %v2669_v43 }
 0x310   :  { %2672 = vmatprep.subr.bf16.mxu1 %v2671_v62  ;;  %v1324_v62 = vrot.slane %v1315_v57, %v3066_v37 }
 0x313   :  { %2674 = vmatpush1.bf16.msra.mxu1 %v2673_v2 }
 0x314   :  { %2676 = vmatprep.subr.bf16.mxu1 %v2675_v3 }
 0x317   :  { %2678 = vmatpush1.bf16.msra.mxu1 %v2677_v9 }
 0x318   :  { %2680 = vmatprep.subr.bf16.mxu1 %v2679_v10  ;;  %v1686_v10 = vld [vmem:[#allocation12 + $0x228] sm:$0xff] }
 0x319   :  { %v2711_v14 = vpack.c.bf16 %v1688_v11, %v1686_v10 }
 0x31b   :  { %2682 = vmatpush1.bf16.msra.mxu1 %v2681_v15  ;;  %v1685_v15 = vld [vmem:[#allocation12 + $0x220] sm:$0xff] }
 0x31c   :  { %2684 = vmatprep.subr.bf16.mxu1 %v2683_v16  ;;  %v1687_v16 = vld [vmem:[#allocation12 + $0x230] sm:$0xff] }
 0x31d   :  { %v2713_v52 = vpack.c.bf16 %v1687_v16, %v1685_v15 }
 0x31f   :  { %2686 = vmatpush1.bf16.msra.mxu1 %v2685_v21  ;;  %v1689_v21 = vld [vmem:[#allocation12 + $0x240] sm:$0xff] }
 0x320   :  { %2688 = vmatprep.subr.bf16.mxu1 %v2687_v22  ;;  %v1691_v22 = vld [vmem:[#allocation12 + $0x250] sm:$0xff] }
 0x321   :  { %v2717_v25 = vpack.c.bf16 %v1691_v22, %v1689_v21 }
 0x323   :  { %2690 = vmatpush1.bf16.msra.mxu1 %v2689_v46  ;;  %v1693_v46 = vld [vmem:[#allocation12 + $0x260] sm:$0xff] }
 0x324   :  { %2692 = vmatprep.subr.bf16.mxu1 %v2691_v27  ;;  %v1695_v27 = vld [vmem:[#allocation12 + $0x270] sm:$0xff] }
 0x325   :  { %v2721_v30 = vpack.c.bf16 %v1695_v27, %v1693_v46 }
 0x327   :  { %2694 = vmatpush1.bf16.msra.mxu1 %v2693_v32  ;;  %v1697_v32 = vld [vmem:[#allocation12 + $0x280] sm:$0xff] }
 0x328   :  { %2696 = vmatprep.subr.bf16.mxu1 %v2695_v51  ;;  %v1702_v51 = vld [vmem:[#allocation12 + $0x2a8] sm:$0xff] }
 0x329   :  { %v2727_v38 = vpack.c.bf16 %v1704_v33, %v1702_v51 }
 0x32b   :  { %2698 = vmatpush1.bf16.msra.mxu1 %v2697_v39  ;;  %v1703_v39 = vld [vmem:[#allocation12 + $0x2b0] sm:$0xff] }
 0x32c   :  { %2700 = vmatprep.subr.bf16.mxu1 %v2699_v40  ;;  %v1706_v40 = vld [vmem:[#allocation12 + $0x2c8] sm:$0xff]  ;;  %v2729_v42 = vpack.c.bf16 %v1703_v39, %v1701_v8 }
 0x32f   :  { %2702 = vmatpush1.bf16.msra.mxu1 %v2701_v44  ;;  %v2731_v44 = vpack.c.bf16 %v1708_v41, %v1706_v40 }
 0x330   :  { %2704 = vmatprep.subr.bf16.mxu1 %v2703_v50  ;;  %v1710_v50 = vld [vmem:[#allocation12 + $0x2e8] sm:$0xff] }
 0x333   :  { %2706 = vmatpush1.bf16.msra.mxu1 %v2705_v58  ;;  %v2735_v58 = vpack.c.bf16 %v1712_v53, %v1710_v50 }
 0x334   :  { %2708 = vmatprep.subr.bf16.mxu1 %v2707_v48  ;;  %v2737_v48 = vpack.c.bf16 %v1711_v60, %v1709_v59 }
 0x3a6   :  { %v1988_v54 = vpop.f32.mrb[6].mxu0 }
 0x3a7   :  { %v1989_v49 = vpop.f32.mrb[7].mxu0 }
 0x3a8   :  { %v1990_v43 = vadd.f32 %v1989_v49, %v1988_v54  ;;  %v1713_v49 = vld [vmem:[%s3152_s9] sm:$0x3] }
 0x3a9   :  { %v1722_v57 = vrot.slane %v1713_v49, %v3066_v37 }
 0x3aa   :  { %v1541_v63 = vadd.f32 %v1990_v43, %v1328_v55  ;;  %v1718_v43 = vrot.slane %v1713_v49, %v3059_v34 }
 0x3c9   :  { %v1469_v0 = vpop.f32.mrb[4].mxu1  ;;  %v1610_v1 = vpop.f32.mrb[8].mxu0 }
 0x3ca   :  { %v2745_v2 = vadd.f32 %v1469_v0, %v1320_v61  ;;  %v3122_v3 = vadd.f32 %v1610_v1, %v1541_v63  ;;  %v1471_v4 = vpop.f32.mrb[5].mxu1  ;;  %v2042_v5 = vpop.f32.mrb[9].mxu0 }
 0x3cb   :  { %v2746_v9 = vadd.f32 %v1471_v4, %v1324_v62 }
 0x3cc   :  { %v1614_v36 = vmax.f32 %v2745_v2, 0.0  ;;  %v1616_v54 = vmax.f32 %v3122_v3, 0.0 }
 0x3cd   :  { %v1615_v12 = vmax.f32 %v2746_v9, 0.0 }
 0x3cf   :  { %1789 = vmatprep.mubr.f32.mxu1 %v1615_v12 }
 0x3d0   :  { %1790 = vmatmul.mubr.f32.vlgmr.msra.gmra.mrb[6].mxu1 %v1614_v36 }
 0x3d1   :  { %2710 = vmatpush1.bf16.msra.mxu1 %v2709_v13  ;;  %1860 = vmatprep.mubr.f32.mxu1 %v2926_v19  ;;  %v1699_v19 = vld [vmem:[#allocation12 + $0x290] sm:$0xff] }
 0x3d2   :  { %2712 = vmatprep.subr.bf16.mxu1 %v2711_v14  ;;  %v2725_v35 = vpack.c.bf16 %v1699_v19, %v1697_v32 }
 0x3d5   :  { %2714 = vmatpush1.bf16.msra.mxu1 %v2713_v52 }
 0x3d6   :  { %2716 = vmatprep.subr.bf16.mxu1 %v2715_v20 }
 0x3d9   :  { %2718 = vmatpush1.bf16.msra.mxu1 %v2717_v25 }
 0x3da   :  { %2720 = vmatprep.subr.bf16.mxu1 %v2719_v26 }
 0x3dd   :  { %2722 = vmatpush1.bf16.msra.mxu1 %v2721_v30 }
 0x3de   :  { %2724 = vmatprep.subr.bf16.mxu1 %v2723_v31 }
 0x3e1   :  { %2726 = vmatpush1.bf16.msra.mxu1 %v2725_v35 }
 0x3e2   :  { %2728 = vmatprep.subr.bf16.mxu1 %v2727_v38 }
 0x3e5   :  { %2730 = vmatpush1.bf16.msra.mxu1 %v2729_v42 }
 0x3e6   :  { %2732 = vmatprep.subr.bf16.mxu1 %v2731_v44 }
 0x3e9   :  { %2734 = vmatpush1.bf16.msra.mxu1 %v2733_v56 }
 0x3ea   :  { %2736 = vmatprep.subr.bf16.mxu1 %v2735_v58 }
 0x3ed   :  { %2738 = vmatpush1.bf16.msra.mxu1 %v2737_v48 }
 0x3f0   :  { %1861 = vmatmul.mubr.f32.vlgmr.msra.gmra.mrb[6].mxu1 %v1616_v54 }
 0x4c3   :  { %v1862_v55 = vpop.f32.mrb[6].mxu1 }
 0x4c4   :  { %v2747_v61 = vadd.f32 %v1862_v55, %v1718_v43  ;;  %v1864_v62 = vpop.f32.mrb[7].mxu1 }
 0x4c5   :  { %v2748_v63 = vadd.f32 %v1864_v62, %v1722_v57 }
 0x4c6   :  { %1867 = vst [vmem:[#allocation13] sm:$0xff] %v2747_v61 }
 0x4c7   :  { %1868 = vst [vmem:[#allocation13 + $0x8] sm:$0xff] %v2748_v63 }
 0x4c8   :  { %2895 = shalt.err (!%p2892_p2)
}
 0x4c9   :  { %s2896_s1 = scalar_lea.hbm %s3153_s10, 256 }
 0x4ca   :  { %p2897_p3 = scmp.ne.s32.totalorder %s3153_s10, %s2896_s1  ;;  %p2900_p4 = scmp.lt.u32.totalorder %s2896_s1, %s3153_s10 }
 0x4cc   :  { %p2902_p5 = pnand %p2900_p4, %p2897_p3 }
 0x4ce   :  { %2905 = shalt.err (!%p2902_p5)
}
 0x4cf   :  { %1878 = dma.vmem_to_hbm [thread:$0]  %s1876_s21, 256, %s3153_s10, [#allocation6]  }
 0x4d0   :  { %2912 = dma.done.wait [#allocation6], 256  }
 0x4d1   :  { %2913 = vsyncadd [#allocation6], 4294967040 }
 0x4d2   :  { %1882 = vsyncpa [#allocation5], 1 }
 0x4d3   :  { %1883 = vsyncpa [#allocation8], 1 }
 0x4d4   :  { %1884 = vsyncpa [#allocation11], 1 }
 0x4d5   :  { %1885 = vsyncpa [#allocation6], 1 }

// kernel: tpu_custom_call.1
= control target key start
LH: loop header
LB: loop body
LE: loop exit
PB: predicated region body
PF: predicated region fallthrough
CT: control target
= control target key end

     0   :  { %16 = vsyncpa [#allocation5], 0  ;;  %s3143_s0 = inlined_call_operand.<no memory space> [shape: f32[1], index: 0, kind: input, shape index: {}]   ;;  %s3144_s1 = inlined_call_operand.hbm [shape: f32[8,512], index: 1, kind: input, shape index: {}]   ;;  %s3145_s2 = inlined_call_operand.hbm [shape: f32[512,512], index: 2, kind: input, shape index: {}]   ;;  %s3146_s3 = inlined_call_operand.vmem [shape: f32[1,512], index: 3, kind: input, shape index: {}]   ;;  %s3147_s4 = inlined_call_operand.hbm [shape: f32[512,384], index: 4, kind: input, shape index: {}]   ;;  %s3148_s5 = inlined_call_operand.vmem [shape: f32[1,384], index: 5, kind: input, shape index: {}]   ;;  %s3149_s6 = inlined_call_operand.hbm [shape: f32[384,384], index: 6, kind: input, shape index: {}]   ;;  %s3150_s7 = inlined_call_operand.vmem [shape: f32[1,384], index: 7, kind: input, shape index: {}]   ;;  %s3151_s8 = inlined_call_operand.hbm [shape: f32[384,256], index: 8, kind: input, shape index: {}]   ;;  %s3152_s9 = inlined_call_operand.vmem [shape: f32[1,256], index: 9, kind: input, shape index: {}]   ;;  %s3153_s10 = inlined_call_operand.hbm [shape: f32[8,256], index: 10, kind: output, shape index: {}]  }
   0x1   :  { %17 = vsyncpa [#allocation8], 0 }
   0x2   :  { %18 = vsyncpa [#allocation11], 0 }
   0x3   :  { %19 = vsyncpa [#allocation6], 0  ;;  %s2914_s13 = smov [#allocation7]   ;;  %s2774_s17 = scalar_lea.hbm %s3145_s2, 32768 }
   0x4   :  { %s35_s14 = sshll.u32 %s2914_s13, 4  ;;  %p2775_p0 = scmp.ne.s32.totalorder %s3145_s2, %s2774_s17  ;;  %s36_s14 = int_to_ptr.vmem [resolvable:$true] %s35_s14 }
   0x5   :  { %p2778_p1 = scmp.lt.u32.totalorder %s2774_s17, %s3145_s2 }
   0x7   :  { %p2780_p2 = pnand %p2778_p1, %p2775_p0 }
   0x9   :  { %2783 = shalt.err (!%p2780_p2)
}
   0xa   :  { %s2784_s22 = scalar_lea.vmem %s36_s14, 32768  ;;  %p2789_p4 = scmp.lt.s32.totalorder %s36_s14, %s36_s14 }
   0xb   :  { %p2785_p3 = scmp.ne.s32.totalorder %s36_s14, %s2784_s22  ;;  %p2790_p5 = scmp.lt.s32.totalorder %s2784_s22, %s2784_s22 }
   0xd   :  { %p2791_p6 = por %p2790_p5, %p2789_p4 }
   0xf   :  { %p2792_p7 = pnand %p2791_p6, %p2785_p3 }
  0x11   :  { %2795 = shalt.err (!%p2792_p7)
}
  0x12   :  { %s2915_s23 = smov 512   ;;  %s2916_s24 = smov 32  }
  0x13   :  { %41 = dma.hbm_to_vmem [thread:$0]  %s3145_s2, 32768, %s36_s14, [#allocation8], %s2915_s23, %s2915_s23, %s2916_s24  }
  0x14   :  { %s2917_s27 = smov [#allocation10]   ;;  %s2918_s29 = smov [#allocation4]  }
  0x15   :  { %s63_s28 = sshll.u32 %s2917_s27, 4  ;;  %s26_s30 = sshll.u32 %s2918_s29, 4  ;;  %s64_s28 = int_to_ptr.vmem [resolvable:$true] %s63_s28  ;;  %s27_s30 = int_to_ptr.vmem [resolvable:$true] %s26_s30 }
  0x16   :  { %s2796_s13 = scalar_lea.hbm %s3149_s6, 18432 }
  0x17   :  { %p2797_p8 = scmp.ne.s32.totalorder %s3149_s6, %s2796_s13  ;;  %p2800_p9 = scmp.lt.u32.totalorder %s2796_s13, %s3149_s6 }
  0x19   :  { %p2802_p10 = pnand %p2800_p9, %p2797_p8 }
  0x1b   :  { %2805 = shalt.err (!%p2802_p10)
}
  0x1c   :  { %s2806_s2 = scalar_lea.vmem %s64_s28, 18432  ;;  %p2811_p12 = scmp.lt.s32.totalorder %s64_s28, %s64_s28 }
  0x1d   :  { %p2807_p11 = scmp.ne.s32.totalorder %s64_s28, %s2806_s2  ;;  %p2812_p13 = scmp.lt.s32.totalorder %s2806_s2, %s2806_s2 }
  0x1f   :  { %p2813_p0 = por %p2812_p13, %p2811_p12 }
  0x21   :  { %p2814_p1 = pnand %p2813_p0, %p2807_p11 }
  0x23   :  { %2817 = shalt.err (!%p2814_p1)
}
  0x24   :  { %s2919_s14 = smov 384   ;;  %s2920_s19 = smov 24  }
  0x25   :  { %69 = dma.hbm_to_vmem [thread:$0]  %s3149_s6, 18432, %s64_s28, [#allocation11], %s2919_s14, %s2919_s14, %s2920_s19  }
  0x26   :  { %s2818_s24 = scalar_lea.hbm %s3144_s1, 512 }
  0x27   :  { %p2819_p2 = scmp.ne.s32.totalorder %s3144_s1, %s2818_s24  ;;  %p2822_p3 = scmp.lt.u32.totalorder %s2818_s24, %s3144_s1 }
  0x29   :  { %p2824_p4 = pnand %p2822_p3, %p2819_p2 }
  0x2b   :  { %2827 = shalt.err (!%p2824_p4)
}
  0x2c   :  { %s2828_s11 = scalar_lea.vmem %s27_s30, 512  ;;  %p2833_p6 = scmp.lt.s32.totalorder %s27_s30, %s27_s30 }
  0x2d   :  { %p2829_p5 = scmp.ne.s32.totalorder %s27_s30, %s2828_s11  ;;  %p2834_p7 = scmp.lt.s32.totalorder %s2828_s11, %s2828_s11 }
  0x2f   :  { %p2835_p8 = por %p2834_p7, %p2833_p6 }
  0x31   :  { %p2836_p9 = pnand %p2835_p8, %p2829_p5 }
  0x33   :  { %2839 = shalt.err (!%p2836_p9)
}
  0x34   :  { %29 = dma.hbm_to_vmem [thread:$0]  %s3144_s1, 512, %s27_s30, [#allocation5]  }
  0x35   :  { %s2921_s12 = smov [#allocation9]   ;;  %s2922_s15 = smov [#allocation12]  }
  0x36   :  { %s49_s13 = sshll.u32 %s2921_s12, 4  ;;  %s77_s16 = sshll.u32 %s2922_s15, 4  ;;  %s50_s13 = int_to_ptr.vmem [resolvable:$true] %s49_s13  ;;  %s78_s16 = int_to_ptr.vmem [resolvable:$true] %s77_s16 }
  0x37   :  { %s2840_s2 = scalar_lea.hbm %s3147_s4, 24576 }
  0x38   :  { %p2841_p10 = scmp.ne.s32.totalorder %s3147_s4, %s2840_s2  ;;  %p2844_p11 = scmp.lt.u32.totalorder %s2840_s2, %s3147_s4 }
  0x3a   :  { %p2846_p12 = pnand %p2844_p11, %p2841_p10 }
  0x3c   :  { %2849 = shalt.err (!%p2846_p12)
}
  0x3d   :  { %s2850_s1 = scalar_lea.vmem %s50_s13, 24576  ;;  %p2855_p0 = scmp.lt.s32.totalorder %s50_s13, %s50_s13 }
  0x3e   :  { %p2851_p13 = scmp.ne.s32.totalorder %s50_s13, %s2850_s1  ;;  %p2856_p1 = scmp.lt.s32.totalorder %s2850_s1, %s2850_s1 }
  0x40   :  { %p2857_p2 = por %p2856_p1, %p2855_p0 }
  0x42   :  { %p2858_p3 = pnand %p2857_p2, %p2851_p13 }
  0x44   :  { %2861 = shalt.err (!%p2858_p3)
}
  0x45   :  { %55 = dma.hbm_to_vmem [thread:$0]  %s3147_s4, 24576, %s50_s13, [#allocation8], %s2919_s14, %s2919_s14, %s2920_s19  }
  0x46   :  { %s2862_s27 = scalar_lea.hbm %s3151_s8, 12288 }
  0x47   :  { %p2863_p4 = scmp.ne.s32.totalorder %s3151_s8, %s2862_s27  ;;  %p2866_p5 = scmp.lt.u32.totalorder %s2862_s27, %s3151_s8 }
  0x49   :  { %p2868_p6 = pnand %p2866_p5, %p2863_p4 }
  0x4b   :  { %2871 = shalt.err (!%p2868_p6)
}
  0x4c   :  { %s2872_s12 = scalar_lea.vmem %s78_s16, 12288  ;;  %p2877_p8 = scmp.lt.s32.totalorder %s78_s16, %s78_s16 }
  0x4d   :  { %p2873_p7 = scmp.ne.s32.totalorder %s78_s16, %s2872_s12  ;;  %p2878_p9 = scmp.lt.s32.totalorder %s2872_s12, %s2872_s12 }
  0x4f   :  { %p2879_p10 = por %p2878_p9, %p2877_p8 }
  0x51   :  { %p2880_p11 = pnand %p2879_p10, %p2873_p7 }
  0x53   :  { %2883 = shalt.err (!%p2880_p11)
}
  0x54   :  { %s2923_s4 = smov 256   ;;  %s2924_s14 = smov 16  }
  0x55   :  { %83 = dma.hbm_to_vmem [thread:$0]  %s3151_s8, 12288, %s78_s16, [#allocation11], %s2923_s4, %s2923_s4, %s2924_s14  }
  0x56   :  { %2906 = dma.done.wait [#allocation5], 512  }
  0x57   :  { %2907 = vsyncadd [#allocation5], 4294966784 }
  0x58   :  { %2908 = dma.done.wait [#allocation8], 57344  }
  0x59   :  { %2909 = vsyncadd [#allocation8], 4294909952 }
  0x5a   :  { %2910 = dma.done.wait [#allocation11], 30720  }
  0x5b   :  { %2911 = vsyncadd [#allocation11], 4294936576  ;;  %v112_v0 = vld [vmem:[#allocation7 + $0x8] sm:$0xff]  ;;  %v114_v2 = vld [vmem:[#allocation7 + $0x18] sm:$0xff]  ;;  %vm2927_vm0 = vmmov 0   ;;  %s2928_s20 = smov [#allocation13]  }
  0x5c   :  { %v116_v1 = vld [vmem:[#allocation7 + $0x28] sm:$0xff]  ;;  %v118_v4 = vld [vmem:[#allocation7 + $0x38] sm:$0xff]  ;;  %v111_v5 = vld [vmem:[#allocation7] sm:$0xff]  ;;  %s1875_s21 = sshll.u32 %s2928_s20, 4  ;;  %s1876_s21 = int_to_ptr.vmem [resolvable:$true] %s1875_s21 }
  0x5d   :  { %v2043_v3 = vpack.c.bf16 %v116_v1, %v112_v0  ;;  %v115_v6 = vld [vmem:[#allocation7 + $0x20] sm:$0xff]  ;;  %v2171_v7 = vpack.c.bf16 %v118_v4, %v114_v2  ;;  %v113_v9 = vld [vmem:[#allocation7 + $0x10] sm:$0xff]  ;;  %v120_v11 = vld [vmem:[#allocation7 + $0x48] sm:$0xff]  ;;  %s2884_s22 = scalar_lea.vmem %s1876_s21, 256  ;;  %p2889_p13 = scmp.lt.s32.totalorder %s1876_s21, %s1876_s21 }
  0x5e   :  { %v2045_v8 = vpack.c.bf16 %v115_v6, %v111_v5  ;;  %v117_v10 = vld [vmem:[#allocation7 + $0x30] sm:$0xff]  ;;  %v124_v13 = vld [vmem:[#allocation7 + $0x68] sm:$0xff]  ;;  %v122_v14 = vld [vmem:[#allocation7 + $0x58] sm:$0xff]  ;;  %p2885_p12 = scmp.ne.s32.totalorder %s1876_s21, %s2884_s22  ;;  %p2890_p0 = scmp.lt.s32.totalorder %s2884_s22, %s2884_s22 }
  0x5f   :  { %2044 = vmatprep.subr.bf16.mxu0 %v2043_v3  ;;  %v2173_v12 = vpack.c.bf16 %v117_v10, %v113_v9  ;;  %v126_v15 = vld [vmem:[#allocation7 + $0x78] sm:$0xff]  ;;  %2172 = vmatprep.subr.bf16.mxu1 %v2171_v7  ;;  %v2047_v16 = vpack.c.bf16 %v124_v13, %v120_v11  ;;  %v119_v18 = vld [vmem:[#allocation7 + $0x40] sm:$0xff]  ;;  %v121_v20 = vld [vmem:[#allocation7 + $0x50] sm:$0xff] }
  0x60   :  { %2046 = vmatpush1.bf16.msra.mxu0 %v2045_v8  ;;  %v2175_v17 = vpack.c.bf16 %v126_v15, %v122_v14  ;;  %v123_v19 = vld [vmem:[#allocation7 + $0x60] sm:$0xff]  ;;  %v125_v22 = vld [vmem:[#allocation7 + $0x70] sm:$0xff]  ;;  %v128_v23 = vld [vmem:[#allocation7 + $0x88] sm:$0xff]  ;;  %p2891_p1 = por %p2890_p0, %p2889_p13 }
  0x61   :  { %2174 = vmatpush1.bf16.msra.mxu1 %v2173_v12  ;;  %v2049_v21 = vpack.c.bf16 %v123_v19, %v119_v18  ;;  %v132_v24 = vld [vmem:[#allocation7 + $0xa8] sm:$0xff]  ;;  %2048 = vmatprep.subr.bf16.mxu0 %v2047_v16  ;;  %v2177_v25 = vpack.c.bf16 %v125_v22, %v121_v20  ;;  %v130_v27 = vld [vmem:[#allocation7 + $0x98] sm:$0xff]  ;;  %v127_v29 = vld [vmem:[#allocation7 + $0x80] sm:$0xff] }
  0x62   :  { %2176 = vmatprep.subr.bf16.mxu1 %v2175_v17  ;;  %v2051_v26 = vpack.c.bf16 %v132_v24, %v128_v23  ;;  %v134_v28 = vld [vmem:[#allocation7 + $0xb8] sm:$0xff]  ;;  %v131_v31 = vld [vmem:[#allocation7 + $0xa0] sm:$0xff]  ;;  %v129_v32 = vld [vmem:[#allocation7 + $0x90] sm:$0xff]  ;;  %p2892_p2 = pnand %p2891_p1, %p2885_p12 }
  0x63   :  { %v2179_v30 = vpack.c.bf16 %v134_v28, %v130_v27  ;;  %v133_v33 = vld [vmem:[#allocation7 + $0xb0] sm:$0xff]  ;;  %v2053_v34 = vpack.c.bf16 %v131_v31, %v127_v29  ;;  %v136_v35 = vld [vmem:[#allocation7 + $0xc8] sm:$0xff]  ;;  %v138_v37 = vld [vmem:[#allocation7 + $0xd8] sm:$0xff] }
  0x64   :  { %2050 = vmatpush1.bf16.msra.mxu0 %v2049_v21  ;;  %v140_v36 = vld [vmem:[#allocation7 + $0xe8] sm:$0xff]  ;;  %v2181_v38 = vpack.c.bf16 %v133_v33, %v129_v32  ;;  %v142_v40 = vld [vmem:[#allocation7 + $0xf8] sm:$0xff]  ;;  %v135_v41 = vld [vmem:[#allocation7 + $0xc0] sm:$0xff] }
  0x65   :  { %2178 = vmatpush1.bf16.msra.mxu1 %v2177_v25  ;;  %2052 = vmatprep.subr.bf16.mxu0 %v2051_v26  ;;  %v2055_v39 = vpack.c.bf16 %v140_v36, %v136_v35  ;;  %v139_v42 = vld [vmem:[#allocation7 + $0xe0] sm:$0xff]  ;;  %v2183_v43 = vpack.c.bf16 %v142_v40, %v138_v37  ;;  %v137_v44 = vld [vmem:[#allocation7 + $0xd0] sm:$0xff]  ;;  %v144_v46 = vld [vmem:[#allocation7 + $0x108] sm:$0xff] }
  0x66   :  { %2180 = vmatprep.subr.bf16.mxu1 %v2179_v30  ;;  %v141_v45 = vld [vmem:[#allocation7 + $0xf0] sm:$0xff]  ;;  %v148_v47 = vld [vmem:[#allocation7 + $0x128] sm:$0xff]  ;;  %v146_v48 = vld [vmem:[#allocation7 + $0x118] sm:$0xff]  ;;  %v2057_v50 = vpack.c.bf16 %v139_v42, %v135_v41 }
  0x67   :  { %v150_v49 = vld [vmem:[#allocation7 + $0x138] sm:$0xff]  ;;  %v2185_v51 = vpack.c.bf16 %v141_v45, %v137_v44  ;;  %v2059_v52 = vpack.c.bf16 %v148_v47, %v144_v46  ;;  %v143_v53 = vld [vmem:[#allocation7 + $0x100] sm:$0xff]  ;;  %v145_v55 = vld [vmem:[#allocation7 + $0x110] sm:$0xff] }
  0x68   :  { %2054 = vmatpush1.bf16.msra.mxu0 %v2053_v34  ;;  %v147_v54 = vld [vmem:[#allocation7 + $0x120] sm:$0xff]  ;;  %v2187_v56 = vpack.c.bf16 %v150_v49, %v146_v48  ;;  %v149_v57 = vld [vmem:[#allocation7 + $0x130] sm:$0xff]  ;;  %v152_v58 = vld [vmem:[#allocation7 + $0x148] sm:$0xff] }
  0x69   :  { %2182 = vmatpush1.bf16.msra.mxu1 %v2181_v38  ;;  %2056 = vmatprep.subr.bf16.mxu0 %v2055_v39  ;;  %v156_v59 = vld [vmem:[#allocation7 + $0x168] sm:$0xff]  ;;  %v154_v60 = vld [vmem:[#allocation7 + $0x158] sm:$0xff]  ;;  %v2061_v62 = vpack.c.bf16 %v147_v54, %v143_v53  ;;  %v2189_v63 = vpack.c.bf16 %v149_v57, %v145_v55  ;;  %v151_v1 = vld [vmem:[#allocation7 + $0x140] sm:$0xff] }
  0x6a   :  { %2184 = vmatprep.subr.bf16.mxu1 %v2183_v43  ;;  %v158_v61 = vld [vmem:[#allocation7 + $0x178] sm:$0xff]  ;;  %v2063_v0 = vpack.c.bf16 %v156_v59, %v152_v58  ;;  %v155_v2 = vld [vmem:[#allocation7 + $0x160] sm:$0xff]  ;;  %v153_v3 = vld [vmem:[#allocation7 + $0x150] sm:$0xff] }
  0x6b   :  { %v2191_v4 = vpack.c.bf16 %v158_v61, %v154_v60  ;;  %v157_v5 = vld [vmem:[#allocation7 + $0x170] sm:$0xff]  ;;  %v160_v6 = vld [vmem:[#allocation7 + $0x188] sm:$0xff]  ;;  %v162_v8 = vld [vmem:[#allocation7 + $0x198] sm:$0xff]  ;;  %v2065_v10 = vpack.c.bf16 %v155_v2, %v151_v1 }
  0x6c   :  { %2058 = vmatpush1.bf16.msra.mxu0 %v2057_v50  ;;  %v164_v7 = vld [vmem:[#allocation7 + $0x1a8] sm:$0xff]  ;;  %v166_v9 = vld [vmem:[#allocation7 + $0x1b8] sm:$0xff]  ;;  %v2193_v11 = vpack.c.bf16 %v157_v5, %v153_v3  ;;  %v159_v13 = vld [vmem:[#allocation7 + $0x180] sm:$0xff] }
  0x6d   :  { %2186 = vmatpush1.bf16.msra.mxu1 %v2185_v51  ;;  %2060 = vmatprep.subr.bf16.mxu0 %v2059_v52  ;;  %v2067_v12 = vpack.c.bf16 %v164_v7, %v160_v6  ;;  %v163_v14 = vld [vmem:[#allocation7 + $0x1a0] sm:$0xff]  ;;  %v161_v15 = vld [vmem:[#allocation7 + $0x190] sm:$0xff]  ;;  %v2195_v16 = vpack.c.bf16 %v166_v9, %v162_v8  ;;  %v168_v18 = vld [vmem:[#allocation7 + $0x1c8] sm:$0xff]  ;;  %v3053_v8 = vstv %s3143_s0 }
  0x6e   :  { %2188 = vmatprep.subr.bf16.mxu1 %v2187_v56  ;;  %v165_v17 = vld [vmem:[#allocation7 + $0x1b0] sm:$0xff]  ;;  %v172_v19 = vld [vmem:[#allocation7 + $0x1e8] sm:$0xff]  ;;  %v170_v20 = vld [vmem:[#allocation7 + $0x1d8] sm:$0xff]  ;;  %v2069_v22 = vpack.c.bf16 %v163_v14, %v159_v13 }
  0x6f   :  { %v174_v21 = vld [vmem:[#allocation7 + $0x1f8] sm:$0xff]  ;;  %v2197_v23 = vpack.c.bf16 %v165_v17, %v161_v15  ;;  %v2071_v24 = vpack.c.bf16 %v172_v19, %v168_v18  ;;  %v167_v25 = vld [vmem:[#allocation7 + $0x1c0] sm:$0xff]  ;;  %v169_v27 = vld [vmem:[#allocation7 + $0x1d0] sm:$0xff] }
  0x70   :  { %2062 = vmatpush1.bf16.msra.mxu0 %v2061_v62  ;;  %v171_v26 = vld [vmem:[#allocation7 + $0x1e0] sm:$0xff]  ;;  %v2199_v28 = vpack.c.bf16 %v174_v21, %v170_v20  ;;  %v173_v29 = vld [vmem:[#allocation7 + $0x1f0] sm:$0xff]  ;;  %v176_v30 = vld [vmem:[#allocation7 + $0x208] sm:$0xff] }
  0x71   :  { %2190 = vmatpush1.bf16.msra.mxu1 %v2189_v63  ;;  %2064 = vmatprep.subr.bf16.mxu0 %v2063_v0  ;;  %v180_v31 = vld [vmem:[#allocation7 + $0x228] sm:$0xff]  ;;  %v178_v32 = vld [vmem:[#allocation7 + $0x218] sm:$0xff]  ;;  %v2073_v34 = vpack.c.bf16 %v171_v26, %v167_v25  ;;  %v2201_v35 = vpack.c.bf16 %v173_v29, %v169_v27  ;;  %v175_v37 = vld [vmem:[#allocation7 + $0x200] sm:$0xff] }
  0x72   :  { %2192 = vmatprep.subr.bf16.mxu1 %v2191_v4  ;;  %v182_v33 = vld [vmem:[#allocation7 + $0x238] sm:$0xff]  ;;  %v2075_v36 = vpack.c.bf16 %v180_v31, %v176_v30  ;;  %v179_v38 = vld [vmem:[#allocation7 + $0x220] sm:$0xff]  ;;  %v177_v39 = vld [vmem:[#allocation7 + $0x210] sm:$0xff] }
  0x73   :  { %v2203_v40 = vpack.c.bf16 %v182_v33, %v178_v32  ;;  %v181_v41 = vld [vmem:[#allocation7 + $0x230] sm:$0xff]  ;;  %v184_v42 = vld [vmem:[#allocation7 + $0x248] sm:$0xff]  ;;  %v186_v44 = vld [vmem:[#allocation7 + $0x258] sm:$0xff]  ;;  %v2077_v46 = vpack.c.bf16 %v179_v38, %v175_v37 }
  0x74   :  { %2066 = vmatpush1.bf16.msra.mxu0 %v2065_v10  ;;  %v188_v43 = vld [vmem:[#allocation7 + $0x268] sm:$0xff]  ;;  %v190_v45 = vld [vmem:[#allocation7 + $0x278] sm:$0xff]  ;;  %v2205_v47 = vpack.c.bf16 %v181_v41, %v177_v39  ;;  %v183_v49 = vld [vmem:[#allocation7 + $0x240] sm:$0xff] }
  0x75   :  { %2194 = vmatpush1.bf16.msra.mxu1 %v2193_v11  ;;  %2068 = vmatprep.subr.bf16.mxu0 %v2067_v12  ;;  %v2079_v48 = vpack.c.bf16 %v188_v43, %v184_v42  ;;  %v187_v50 = vld [vmem:[#allocation7 + $0x260] sm:$0xff]  ;;  %v185_v51 = vld [vmem:[#allocation7 + $0x250] sm:$0xff]  ;;  %v2207_v52 = vpack.c.bf16 %v190_v45, %v186_v44  ;;  %v192_v54 = vld [vmem:[#allocation7 + $0x288] sm:$0xff] }
  0x76   :  { %2196 = vmatprep.subr.bf16.mxu1 %v2195_v16  ;;  %v189_v53 = vld [vmem:[#allocation7 + $0x270] sm:$0xff]  ;;  %v196_v55 = vld [vmem:[#allocation7 + $0x2a8] sm:$0xff]  ;;  %v194_v56 = vld [vmem:[#allocation7 + $0x298] sm:$0xff]  ;;  %v2081_v58 = vpack.c.bf16 %v187_v50, %v183_v49 }
  0x77   :  { %v198_v57 = vld [vmem:[#allocation7 + $0x2b8] sm:$0xff]  ;;  %v2209_v59 = vpack.c.bf16 %v189_v53, %v185_v51  ;;  %v2083_v60 = vpack.c.bf16 %v196_v55, %v192_v54  ;;  %v191_v61 = vld [vmem:[#allocation7 + $0x280] sm:$0xff]  ;;  %v193_v63 = vld [vmem:[#allocation7 + $0x290] sm:$0xff] }
  0x78   :  { %2070 = vmatpush1.bf16.msra.mxu0 %v2069_v22  ;;  %v195_v62 = vld [vmem:[#allocation7 + $0x2a0] sm:$0xff]  ;;  %v2211_v0 = vpack.c.bf16 %v198_v57, %v194_v56  ;;  %v197_v1 = vld [vmem:[#allocation7 + $0x2b0] sm:$0xff]  ;;  %v200_v2 = vld [vmem:[#allocation7 + $0x2c8] sm:$0xff] }
  0x79   :  { %2198 = vmatpush1.bf16.msra.mxu1 %v2197_v23  ;;  %2072 = vmatprep.subr.bf16.mxu0 %v2071_v24  ;;  %v204_v3 = vld [vmem:[#allocation7 + $0x2e8] sm:$0xff]  ;;  %v202_v4 = vld [vmem:[#allocation7 + $0x2d8] sm:$0xff]  ;;  %v2085_v6 = vpack.c.bf16 %v195_v62, %v191_v61  ;;  %v199_v7 = vld [vmem:[#allocation7 + $0x2c0] sm:$0xff]  ;;  %v2213_v9 = vpack.c.bf16 %v197_v1, %v193_v63 }
  0x7a   :  { %2200 = vmatprep.subr.bf16.mxu1 %v2199_v28  ;;  %v206_v5 = vld [vmem:[#allocation7 + $0x2f8] sm:$0xff]  ;;  %v2087_v10 = vpack.c.bf16 %v204_v3, %v200_v2  ;;  %v203_v11 = vld [vmem:[#allocation7 + $0x2e0] sm:$0xff]  ;;  %v201_v12 = vld [vmem:[#allocation7 + $0x2d0] sm:$0xff] }
  0x7b   :  { %v205_v13 = vld [vmem:[#allocation7 + $0x2f0] sm:$0xff]  ;;  %v2215_v14 = vpack.c.bf16 %v206_v5, %v202_v4  ;;  %v208_v15 = vld [vmem:[#allocation7 + $0x308] sm:$0xff]  ;;  %v210_v18 = vld [vmem:[#allocation7 + $0x318] sm:$0xff]  ;;  %v2089_v21 = vpack.c.bf16 %v203_v11, %v199_v7 }
  0x7c   :  { %2074 = vmatpush1.bf16.msra.mxu0 %v2073_v34  ;;  %v212_v16 = vld [vmem:[#allocation7 + $0x328] sm:$0xff]  ;;  %v214_v19 = vld [vmem:[#allocation7 + $0x338] sm:$0xff]  ;;  %v2217_v22 = vpack.c.bf16 %v205_v13, %v201_v12  ;;  %v207_v24 = vld [vmem:[#allocation7 + $0x300] sm:$0xff] }
  0x7d   :  { %2202 = vmatpush1.bf16.msra.mxu1 %v2201_v35  ;;  %2076 = vmatprep.subr.bf16.mxu0 %v2075_v36  ;;  %v102_v17 = vld [vmem:[#allocation4 + $0x8] sm:$0xff]  ;;  %v2091_v23 = vpack.c.bf16 %v212_v16, %v208_v15  ;;  %v211_v25 = vld [vmem:[#allocation7 + $0x320] sm:$0xff]  ;;  %v209_v26 = vld [vmem:[#allocation7 + $0x310] sm:$0xff]  ;;  %v2219_v27 = vpack.c.bf16 %v214_v19, %v210_v18 }
  0x7e   :  { %2204 = vmatprep.subr.bf16.mxu1 %v2203_v40  ;;  %v108_v20 = vmul.f32 %v3053_v8, %v102_v17  ;;  %v213_v28 = vld [vmem:[#allocation7 + $0x330] sm:$0xff]  ;;  %v216_v29 = vld [vmem:[#allocation7 + $0x348] sm:$0xff]  ;;  %v218_v31 = vld [vmem:[#allocation7 + $0x358] sm:$0xff]  ;;  %v2093_v33 = vpack.c.bf16 %v211_v25, %v207_v24 }
  0x7f   :  { %v220_v30 = vld [vmem:[#allocation7 + $0x368] sm:$0xff]  ;;  %v222_v32 = vld [vmem:[#allocation7 + $0x378] sm:$0xff]  ;;  %v2221_v34 = vpack.c.bf16 %v213_v28, %v209_v26  ;;  %v215_v36 = vld [vmem:[#allocation7 + $0x340] sm:$0xff] }
  0x80   :  { %2078 = vmatpush1.bf16.msra.mxu0 %v2077_v46  ;;  %453 = vmatprep.mubr.f32.mxu0 %v108_v20  ;;  %v2095_v35 = vpack.c.bf16 %v220_v30, %v216_v29  ;;  %v219_v37 = vld [vmem:[#allocation7 + $0x360] sm:$0xff]  ;;  %v217_v38 = vld [vmem:[#allocation7 + $0x350] sm:$0xff]  ;;  %v2223_v39 = vpack.c.bf16 %v222_v32, %v218_v31  ;;  %v224_v41 = vld [vmem:[#allocation7 + $0x388] sm:$0xff] }
  0x81   :  { %2206 = vmatpush1.bf16.msra.mxu1 %v2205_v47  ;;  %2080 = vmatprep.subr.bf16.mxu0 %v2079_v48  ;;  %v221_v40 = vld [vmem:[#allocation7 + $0x370] sm:$0xff]  ;;  %v228_v42 = vld [vmem:[#allocation7 + $0x3a8] sm:$0xff]  ;;  %v226_v43 = vld [vmem:[#allocation7 + $0x398] sm:$0xff]  ;;  %v2097_v45 = vpack.c.bf16 %v219_v37, %v215_v36 }
  0x82   :  { %2208 = vmatprep.subr.bf16.mxu1 %v2207_v52  ;;  %595 = vmatprep.mubr.f32.mxu1 %v108_v20  ;;  %v230_v44 = vld [vmem:[#allocation7 + $0x3b8] sm:$0xff]  ;;  %v2225_v46 = vpack.c.bf16 %v221_v40, %v217_v38  ;;  %v2099_v47 = vpack.c.bf16 %v228_v42, %v224_v41  ;;  %v223_v48 = vld [vmem:[#allocation7 + $0x380] sm:$0xff]  ;;  %v225_v50 = vld [vmem:[#allocation7 + $0x390] sm:$0xff] }
  0x83   :  { %v227_v49 = vld [vmem:[#allocation7 + $0x3a0] sm:$0xff]  ;;  %v2227_v51 = vpack.c.bf16 %v230_v44, %v226_v43  ;;  %v229_v52 = vld [vmem:[#allocation7 + $0x3b0] sm:$0xff]  ;;  %v232_v53 = vld [vmem:[#allocation7 + $0x3c8] sm:$0xff] }
  0x84   :  { %2082 = vmatpush1.bf16.msra.mxu0 %v2081_v58  ;;  %v236_v54 = vld [vmem:[#allocation7 + $0x3e8] sm:$0xff]  ;;  %v234_v55 = vld [vmem:[#allocation7 + $0x3d8] sm:$0xff]  ;;  %v2101_v57 = vpack.c.bf16 %v227_v49, %v223_v48  ;;  %v2229_v58 = vpack.c.bf16 %v229_v52, %v225_v50  ;;  %v235_v61 = vld [vmem:[#allocation7 + $0x3e0] sm:$0xff] }
  0x85   :  { %2210 = vmatpush1.bf16.msra.mxu1 %v2209_v59  ;;  %2084 = vmatprep.subr.bf16.mxu0 %v2083_v60  ;;  %v238_v56 = vld [vmem:[#allocation7 + $0x3f8] sm:$0xff]  ;;  %v2103_v59 = vpack.c.bf16 %v236_v54, %v232_v53  ;;  %v231_v60 = vld [vmem:[#allocation7 + $0x3c0] sm:$0xff]  ;;  %v233_v62 = vld [vmem:[#allocation7 + $0x3d0] sm:$0xff] }
  0x86   :  { %2212 = vmatprep.subr.bf16.mxu1 %v2211_v0  ;;  %v2231_v63 = vpack.c.bf16 %v238_v56, %v234_v55  ;;  %v237_v0 = vld [vmem:[#allocation7 + $0x3f0] sm:$0xff]  ;;  %v240_v1 = vld [vmem:[#allocation7 + $0x408] sm:$0xff]  ;;  %v242_v3 = vld [vmem:[#allocation7 + $0x418] sm:$0xff]  ;;  %v2105_v5 = vpack.c.bf16 %v235_v61, %v231_v60 }
  0x87   :  { %v244_v2 = vld [vmem:[#allocation7 + $0x428] sm:$0xff]  ;;  %v246_v4 = vld [vmem:[#allocation7 + $0x438] sm:$0xff]  ;;  %v2233_v7 = vpack.c.bf16 %v237_v0, %v233_v62  ;;  %v243_v11 = vld [vmem:[#allocation7 + $0x420] sm:$0xff] }
  0x88   :  { %2086 = vmatpush1.bf16.msra.mxu0 %v2085_v6  ;;  %v101_v6 = vld [vmem:[#allocation4] sm:$0xff]  ;;  %v241_v12 = vld [vmem:[#allocation7 + $0x410] sm:$0xff]  ;;  %v2235_v13 = vpack.c.bf16 %v246_v4, %v242_v3  ;;  %v248_v15 = vld [vmem:[#allocation7 + $0x448] sm:$0xff] }
  0x89   :  { %2214 = vmatpush1.bf16.msra.mxu1 %v2213_v9  ;;  %2088 = vmatprep.subr.bf16.mxu0 %v2087_v10  ;;  %v2107_v9 = vpack.c.bf16 %v244_v2, %v240_v1  ;;  %v239_v10 = vld [vmem:[#allocation7 + $0x400] sm:$0xff]  ;;  %v252_v16 = vld [vmem:[#allocation7 + $0x468] sm:$0xff]  ;;  %v107_v17 = vmul.f32 %v3053_v8, %v101_v6  ;;  %v250_v18 = vld [vmem:[#allocation7 + $0x458] sm:$0xff] }
  0x8a   :  { %2216 = vmatprep.subr.bf16.mxu1 %v2215_v14  ;;  %v245_v14 = vld [vmem:[#allocation7 + $0x430] sm:$0xff]  ;;  %v254_v19 = vld [vmem:[#allocation7 + $0x478] sm:$0xff]  ;;  %v2109_v20 = vpack.c.bf16 %v243_v11, %v239_v10  ;;  %v251_v24 = vld [vmem:[#allocation7 + $0x460] sm:$0xff] }
  0x8b   :  { %v249_v25 = vld [vmem:[#allocation7 + $0x450] sm:$0xff]  ;;  %v2239_v26 = vpack.c.bf16 %v254_v19, %v250_v18  ;;  %v256_v28 = vld [vmem:[#allocation7 + $0x488] sm:$0xff]  ;;  %v258_v30 = vld [vmem:[#allocation7 + $0x498] sm:$0xff] }
  0x8c   :  { %2090 = vmatpush1.bf16.msra.mxu0 %v2089_v21  ;;  %v2237_v21 = vpack.c.bf16 %v245_v14, %v241_v12  ;;  %v260_v29 = vld [vmem:[#allocation7 + $0x4a8] sm:$0xff]  ;;  %v262_v31 = vld [vmem:[#allocation7 + $0x4b8] sm:$0xff]  ;;  %v259_v36 = vld [vmem:[#allocation7 + $0x4a0] sm:$0xff] }
  0x8d   :  { %2218 = vmatpush1.bf16.msra.mxu1 %v2217_v22  ;;  %2092 = vmatprep.subr.bf16.mxu0 %v2091_v23  ;;  %v2111_v22 = vpack.c.bf16 %v252_v16, %v248_v15  ;;  %v247_v23 = vld [vmem:[#allocation7 + $0x440] sm:$0xff]  ;;  %v257_v37 = vld [vmem:[#allocation7 + $0x490] sm:$0xff]  ;;  %v2243_v38 = vpack.c.bf16 %v262_v31, %v258_v30  ;;  %v264_v40 = vld [vmem:[#allocation7 + $0x4c8] sm:$0xff] }
  0x8e   :  { %2220 = vmatprep.subr.bf16.mxu1 %v2219_v27  ;;  %v253_v27 = vld [vmem:[#allocation7 + $0x470] sm:$0xff]  ;;  %v2113_v32 = vpack.c.bf16 %v251_v24, %v247_v23  ;;  %v268_v41 = vld [vmem:[#allocation7 + $0x4e8] sm:$0xff]  ;;  %v266_v42 = vld [vmem:[#allocation7 + $0x4d8] sm:$0xff] }
  0x8f   :  { %v270_v43 = vld [vmem:[#allocation7 + $0x4f8] sm:$0xff]  ;;  %v267_v48 = vld [vmem:[#allocation7 + $0x4e0] sm:$0xff]  ;;  %v265_v49 = vld [vmem:[#allocation7 + $0x4d0] sm:$0xff] }
  0x90   :  { %2094 = vmatpush1.bf16.msra.mxu0 %v2093_v33  ;;  %v2241_v33 = vpack.c.bf16 %v253_v27, %v249_v25  ;;  %v2247_v50 = vpack.c.bf16 %v270_v43, %v266_v42  ;;  %v272_v52 = vld [vmem:[#allocation7 + $0x508] sm:$0xff]  ;;  %v274_v54 = vld [vmem:[#allocation7 + $0x518] sm:$0xff]  ;;  %v275_v60 = vld [vmem:[#allocation7 + $0x520] sm:$0xff] }
  0x91   :  { %2222 = vmatpush1.bf16.msra.mxu1 %v2221_v34  ;;  %2096 = vmatprep.subr.bf16.mxu0 %v2095_v35  ;;  %v2115_v34 = vpack.c.bf16 %v260_v29, %v256_v28  ;;  %v255_v35 = vld [vmem:[#allocation7 + $0x480] sm:$0xff]  ;;  %v276_v53 = vld [vmem:[#allocation7 + $0x528] sm:$0xff]  ;;  %v278_v55 = vld [vmem:[#allocation7 + $0x538] sm:$0xff] }
  0x92   :  { %2224 = vmatprep.subr.bf16.mxu1 %v2223_v39  ;;  %v261_v39 = vld [vmem:[#allocation7 + $0x4b0] sm:$0xff]  ;;  %v2117_v44 = vpack.c.bf16 %v259_v36, %v255_v35  ;;  %v2251_v62 = vpack.c.bf16 %v278_v55, %v274_v54  ;;  %v280_v0 = vld [vmem:[#allocation7 + $0x548] sm:$0xff]  ;;  %v282_v2 = vld [vmem:[#allocation7 + $0x558] sm:$0xff] }
  0x93   :  { %v273_v61 = vld [vmem:[#allocation7 + $0x510] sm:$0xff]  ;;  %v284_v1 = vld [vmem:[#allocation7 + $0x568] sm:$0xff]  ;;  %v286_v3 = vld [vmem:[#allocation7 + $0x578] sm:$0xff] }
  0x94   :  { %2098 = vmatpush1.bf16.msra.mxu0 %v2097_v45  ;;  %v2245_v45 = vpack.c.bf16 %v261_v39, %v257_v37  ;;  %v2127_v6 = vpack.c.bf16 %v284_v1, %v280_v0  ;;  %v281_v10 = vld [vmem:[#allocation7 + $0x550] sm:$0xff]  ;;  %v2255_v11 = vpack.c.bf16 %v286_v3, %v282_v2  ;;  %v292_v14 = vld [vmem:[#allocation7 + $0x5a8] sm:$0xff]  ;;  %v290_v15 = vld [vmem:[#allocation7 + $0x598] sm:$0xff] }
  0x95   :  { %2226 = vmatpush1.bf16.msra.mxu1 %v2225_v46  ;;  %2100 = vmatprep.subr.bf16.mxu0 %v2099_v47  ;;  %v2119_v46 = vpack.c.bf16 %v268_v41, %v264_v40  ;;  %v263_v47 = vld [vmem:[#allocation7 + $0x4c0] sm:$0xff]  ;;  %v285_v12 = vld [vmem:[#allocation7 + $0x570] sm:$0xff]  ;;  %v294_v16 = vld [vmem:[#allocation7 + $0x5b8] sm:$0xff] }
  0x96   :  { %2228 = vmatprep.subr.bf16.mxu1 %v2227_v51  ;;  %v269_v51 = vld [vmem:[#allocation7 + $0x4f0] sm:$0xff]  ;;  %v2121_v56 = vpack.c.bf16 %v267_v48, %v263_v47  ;;  %v287_v18 = vld [vmem:[#allocation7 + $0x580] sm:$0xff]  ;;  %v2257_v19 = vpack.c.bf16 %v285_v12, %v281_v10  ;;  %v2259_v24 = vpack.c.bf16 %v294_v16, %v290_v15  ;;  %v296_v25 = vld [vmem:[#allocation7 + $0x5c8] sm:$0xff] }
  0x97   :  { %v293_v23 = vld [vmem:[#allocation7 + $0x5b0] sm:$0xff]  ;;  %v104_v27 = vld [vmem:[#allocation4 + $0x18] sm:$0xff]  ;;  %v299_v35 = vld [vmem:[#allocation7 + $0x5e0] sm:$0xff] }
  0x98   :  { %2102 = vmatpush1.bf16.msra.mxu0 %v2101_v57  ;;  %v2249_v57 = vpack.c.bf16 %v269_v51, %v265_v49  ;;  %v298_v28 = vld [vmem:[#allocation7 + $0x5d8] sm:$0xff]  ;;  %v110_v30 = vmul.f32 %v3053_v8, %v104_v27  ;;  %v297_v36 = vld [vmem:[#allocation7 + $0x5d0] sm:$0xff]  ;;  %v304_v39 = vld [vmem:[#allocation7 + $0x608] sm:$0xff] }
  0x99   :  { %2230 = vmatpush1.bf16.msra.mxu1 %v2229_v58  ;;  %2104 = vmatprep.subr.bf16.mxu0 %v2103_v59  ;;  %v2123_v58 = vpack.c.bf16 %v276_v53, %v272_v52  ;;  %v271_v59 = vld [vmem:[#allocation7 + $0x500] sm:$0xff]  ;;  %v302_v29 = vld [vmem:[#allocation7 + $0x5f8] sm:$0xff]  ;;  %v308_v40 = vld [vmem:[#allocation7 + $0x628] sm:$0xff] }
  0x9a   :  { %2232 = vmatprep.subr.bf16.mxu1 %v2231_v63  ;;  %v277_v63 = vld [vmem:[#allocation7 + $0x530] sm:$0xff]  ;;  %v2125_v4 = vpack.c.bf16 %v275_v60, %v271_v59  ;;  %v2263_v37 = vpack.c.bf16 %v302_v29, %v298_v28  ;;  %v306_v41 = vld [vmem:[#allocation7 + $0x618] sm:$0xff]  ;;  %v307_v47 = vld [vmem:[#allocation7 + $0x620] sm:$0xff] }
  0x9b   :  { %v310_v42 = vld [vmem:[#allocation7 + $0x638] sm:$0xff]  ;;  %v305_v48 = vld [vmem:[#allocation7 + $0x610] sm:$0xff]  ;;  %v312_v51 = vld [vmem:[#allocation7 + $0x648] sm:$0xff] }
  0x9c   :  { %2106 = vmatpush1.bf16.msra.mxu0 %v2105_v5  ;;  %v2253_v5 = vpack.c.bf16 %v277_v63, %v273_v61  ;;  %v2267_v49 = vpack.c.bf16 %v310_v42, %v306_v41  ;;  %v316_v52 = vld [vmem:[#allocation7 + $0x668] sm:$0xff]  ;;  %v314_v53 = vld [vmem:[#allocation7 + $0x658] sm:$0xff]  ;;  %v315_v59 = vld [vmem:[#allocation7 + $0x660] sm:$0xff] }
  0x9d   :  { %2234 = vmatpush1.bf16.msra.mxu1 %v2233_v7  ;;  %2108 = vmatprep.subr.bf16.mxu0 %v2107_v9  ;;  %v279_v7 = vld [vmem:[#allocation7 + $0x540] sm:$0xff]  ;;  %v318_v54 = vld [vmem:[#allocation7 + $0x678] sm:$0xff]  ;;  %v313_v60 = vld [vmem:[#allocation7 + $0x650] sm:$0xff] }
  0x9e   :  { %2236 = vmatprep.subr.bf16.mxu1 %v2235_v13  ;;  %v283_v9 = vld [vmem:[#allocation7 + $0x560] sm:$0xff]  ;;  %v288_v13 = vld [vmem:[#allocation7 + $0x588] sm:$0xff]  ;;  %v2271_v61 = vpack.c.bf16 %v318_v54, %v314_v53  ;;  %v322_v1 = vld [vmem:[#allocation7 + $0x698] sm:$0xff] }
  0x9f   :  { %454 = vmatmul.mubr.f32.vlgmr.msra.gmra.mrb[0].mxu0 %v107_v17  ;;  %v320_v63 = vld [vmem:[#allocation7 + $0x688] sm:$0xff]  ;;  %v326_v2 = vld [vmem:[#allocation7 + $0x6b8] sm:$0xff] }
  0xa0   :  { %2110 = vmatpush1.bf16.msra.mxu0 %v2109_v20  ;;  %596 = vmatmul.mubr.f32.vlgmr.msra.gmra.mrb[0].mxu1 %v107_v17  ;;  %v2129_v17 = vpack.c.bf16 %v283_v9, %v279_v7  ;;  %v2131_v20 = vpack.c.bf16 %v292_v14, %v288_v13  ;;  %v324_v0 = vld [vmem:[#allocation7 + $0x6a8] sm:$0xff]  ;;  %v323_v7 = vld [vmem:[#allocation7 + $0x6a0] sm:$0xff]  ;;  %v321_v9 = vld [vmem:[#allocation7 + $0x690] sm:$0xff]  ;;  %v2275_v10 = vpack.c.bf16 %v326_v2, %v322_v1 }
  0xa1   :  { %2238 = vmatpush1.bf16.msra.mxu1 %v2237_v21  ;;  %2112 = vmatprep.subr.bf16.mxu0 %v2111_v22  ;;  %v291_v21 = vld [vmem:[#allocation7 + $0x5a0] sm:$0xff]  ;;  %v289_v22 = vld [vmem:[#allocation7 + $0x590] sm:$0xff]  ;;  %v328_v12 = vld [vmem:[#allocation7 + $0x6c8] sm:$0xff] }
  0xa2   :  { %2240 = vmatprep.subr.bf16.mxu1 %v2239_v26  ;;  %v300_v26 = vld [vmem:[#allocation7 + $0x5e8] sm:$0xff]  ;;  %v2133_v31 = vpack.c.bf16 %v291_v21, %v287_v18  ;;  %524 = vmatprep.mubr.f32.mxu0 %v110_v30  ;;  %v330_v14 = vld [vmem:[#allocation7 + $0x6d8] sm:$0xff]  ;;  %v329_v21 = vld [vmem:[#allocation7 + $0x6d0] sm:$0xff] }
  0xa3   :  { %666 = vmatprep.mubr.f32.mxu1 %v110_v30  ;;  %v332_v13 = vld [vmem:[#allocation7 + $0x6e8] sm:$0xff]  ;;  %v334_v15 = vld [vmem:[#allocation7 + $0x6f8] sm:$0xff] }
  0xa4   :  { %2114 = vmatpush1.bf16.msra.mxu0 %v2113_v32  ;;  %v2261_v32 = vpack.c.bf16 %v293_v23, %v289_v22  ;;  %v2151_v18 = vpack.c.bf16 %v332_v13, %v328_v12  ;;  %v2279_v22 = vpack.c.bf16 %v334_v15, %v330_v14  ;;  %v333_v23 = vld [vmem:[#allocation7 + $0x6f0] sm:$0xff]  ;;  %v342_v27 = vld [vmem:[#allocation7 + $0x738] sm:$0xff]  ;;  %v826_v12 = vld [vmem:[#allocation9 + $0x4a8] sm:$0xff] }
  0xa5   :  { %2242 = vmatpush1.bf16.msra.mxu1 %v2241_v33  ;;  %2116 = vmatprep.subr.bf16.mxu0 %v2115_v34  ;;  %v2135_v33 = vpack.c.bf16 %v300_v26, %v296_v25  ;;  %v295_v34 = vld [vmem:[#allocation7 + $0x5c0] sm:$0xff]  ;;  %v340_v25 = vld [vmem:[#allocation7 + $0x728] sm:$0xff]  ;;  %v338_v26 = vld [vmem:[#allocation7 + $0x718] sm:$0xff]  ;;  %v2281_v29 = vpack.c.bf16 %v333_v23, %v329_v21 }
  0xa6   :  { %2244 = vmatprep.subr.bf16.mxu1 %v2243_v38  ;;  %v301_v38 = vld [vmem:[#allocation7 + $0x5f0] sm:$0xff]  ;;  %v2137_v43 = vpack.c.bf16 %v299_v35, %v295_v34  ;;  %v2283_v34 = vpack.c.bf16 %v342_v27, %v338_v26  ;;  %v778_v23 = vld [vmem:[#allocation9 + $0x328] sm:$0xff]  ;;  %v832_v26 = vld [vmem:[#allocation9 + $0x4d8] sm:$0xff] }
  0xa7   :  { %v341_v35 = vld [vmem:[#allocation7 + $0x730] sm:$0xff] }
  0xa8   :  { %2118 = vmatpush1.bf16.msra.mxu0 %v2117_v44  ;;  %v2265_v44 = vpack.c.bf16 %v301_v38, %v297_v36  ;;  %v344_v36 = vld [vmem:[#allocation7 + $0x748] sm:$0xff]  ;;  %v346_v38 = vld [vmem:[#allocation7 + $0x758] sm:$0xff]  ;;  %v103_v14 = vld [vmem:[#allocation4 + $0x10] sm:$0xff] }
  0xa9   :  { %2246 = vmatpush1.bf16.msra.mxu1 %v2245_v45  ;;  %2120 = vmatprep.subr.bf16.mxu0 %v2119_v46  ;;  %v2139_v45 = vpack.c.bf16 %v308_v40, %v304_v39  ;;  %v303_v46 = vld [vmem:[#allocation7 + $0x600] sm:$0xff]  ;;  %v350_v39 = vld [vmem:[#allocation7 + $0x778] sm:$0xff] }
  0xaa   :  { %2248 = vmatprep.subr.bf16.mxu1 %v2247_v50  ;;  %v309_v50 = vld [vmem:[#allocation7 + $0x630] sm:$0xff]  ;;  %v2141_v55 = vpack.c.bf16 %v307_v47, %v303_v46  ;;  %v2287_v46 = vpack.c.bf16 %v350_v39, %v346_v38  ;;  %v838_v38 = vld [vmem:[#allocation9 + $0x508] sm:$0xff] }
  0xab   :  { %v349_v47 = vld [vmem:[#allocation7 + $0x770] sm:$0xff] }
  0xac   :  { %2122 = vmatpush1.bf16.msra.mxu0 %v2121_v56  ;;  %v2269_v56 = vpack.c.bf16 %v309_v50, %v305_v48  ;;  %v352_v48 = vld [vmem:[#allocation7 + $0x788] sm:$0xff]  ;;  %v354_v50 = vld [vmem:[#allocation7 + $0x798] sm:$0xff] }
  0xad   :  { %2250 = vmatpush1.bf16.msra.mxu1 %v2249_v57  ;;  %2124 = vmatprep.subr.bf16.mxu0 %v2123_v58  ;;  %v2143_v57 = vpack.c.bf16 %v316_v52, %v312_v51  ;;  %v311_v58 = vld [vmem:[#allocation7 + $0x640] sm:$0xff]  ;;  %v358_v51 = vld [vmem:[#allocation7 + $0x7b8] sm:$0xff] }
  0xae   :  { %2252 = vmatprep.subr.bf16.mxu1 %v2251_v62  ;;  %v317_v62 = vld [vmem:[#allocation7 + $0x670] sm:$0xff]  ;;  %v2145_v3 = vpack.c.bf16 %v315_v59, %v311_v58  ;;  %v2291_v58 = vpack.c.bf16 %v358_v51, %v354_v50 }
  0xaf   :  { %v357_v59 = vld [vmem:[#allocation7 + $0x7b0] sm:$0xff] }
  0xb0   :  { %2126 = vmatpush1.bf16.msra.mxu0 %v2125_v4  ;;  %v2273_v4 = vpack.c.bf16 %v317_v62, %v313_v60  ;;  %v360_v60 = vld [vmem:[#allocation7 + $0x7c8] sm:$0xff]  ;;  %v362_v62 = vld [vmem:[#allocation7 + $0x7d8] sm:$0xff] }
  0xb1   :  { %2254 = vmatpush1.bf16.msra.mxu1 %v2253_v5  ;;  %2128 = vmatprep.subr.bf16.mxu0 %v2127_v6  ;;  %v2147_v5 = vpack.c.bf16 %v324_v0, %v320_v63  ;;  %v319_v6 = vld [vmem:[#allocation7 + $0x680] sm:$0xff]  ;;  %v366_v63 = vld [vmem:[#allocation7 + $0x7f8] sm:$0xff] }
  0xb2   :  { %2256 = vmatprep.subr.bf16.mxu1 %v2255_v11  ;;  %v325_v11 = vld [vmem:[#allocation7 + $0x6b0] sm:$0xff]  ;;  %v2149_v16 = vpack.c.bf16 %v323_v7, %v319_v6  ;;  %v2295_v6 = vpack.c.bf16 %v366_v63, %v362_v62 }
  0xb3   :  { %v365_v7 = vld [vmem:[#allocation7 + $0x7f0] sm:$0xff] }
  0xb4   :  { %2130 = vmatpush1.bf16.msra.mxu0 %v2129_v17  ;;  %v2277_v17 = vpack.c.bf16 %v325_v11, %v321_v9  ;;  %v678_v9 = vld [vmem:[#allocation9 + $0x8] sm:$0xff]  ;;  %v823_v11 = vld [vmem:[#allocation9 + $0x490] sm:$0xff] }
  0xb5   :  { %2258 = vmatpush1.bf16.msra.mxu1 %v2257_v19  ;;  %2132 = vmatprep.subr.bf16.mxu0 %v2131_v20  ;;  %v327_v19 = vld [vmem:[#allocation7 + $0x6c0] sm:$0xff]  ;;  %v2459_v21 = vpack.c.bf16 %v826_v12, %v823_v11 }
  0xb6   :  { %2260 = vmatprep.subr.bf16.mxu1 %v2259_v24  ;;  %v331_v20 = vld [vmem:[#allocation7 + $0x6e0] sm:$0xff]  ;;  %v336_v24 = vld [vmem:[#allocation7 + $0x708] sm:$0xff] }
  0xb7   :  { %v2153_v28 = vpack.c.bf16 %v331_v20, %v327_v19  ;;  %v2155_v30 = vpack.c.bf16 %v340_v25, %v336_v24  ;;  %v684_v19 = vld [vmem:[#allocation9 + $0x38] sm:$0xff]  ;;  %v687_v20 = vld [vmem:[#allocation9 + $0x50] sm:$0xff]  ;;  %v109_v24 = vmul.f32 %v3053_v8, %v103_v14  ;;  %v829_v25 = vld [vmem:[#allocation9 + $0x4c0] sm:$0xff] }
  0xb8   :  { %2134 = vmatpush1.bf16.msra.mxu0 %v2133_v31  ;;  %v335_v31 = vld [vmem:[#allocation7 + $0x700] sm:$0xff]  ;;  %v710_v14 = vld [vmem:[#allocation9 + $0x108] sm:$0xff] }
  0xb9   :  { %2262 = vmatpush1.bf16.msra.mxu1 %v2261_v32  ;;  %2136 = vmatprep.subr.bf16.mxu0 %v2135_v33  ;;  %v339_v32 = vld [vmem:[#allocation7 + $0x720] sm:$0xff]  ;;  %v337_v33 = vld [vmem:[#allocation7 + $0x710] sm:$0xff] }
  0xba   :  { %2264 = vmatprep.subr.bf16.mxu1 %v2263_v37  ;;  %v348_v37 = vld [vmem:[#allocation7 + $0x768] sm:$0xff]  ;;  %v2157_v40 = vpack.c.bf16 %v339_v32, %v335_v31  ;;  %v2285_v41 = vpack.c.bf16 %v341_v35, %v337_v33  ;;  %v693_v33 = vld [vmem:[#allocation9 + $0x80] sm:$0xff] }
  0xbb   :  { %v2159_v42 = vpack.c.bf16 %v348_v37, %v344_v36  ;;  %v690_v31 = vld [vmem:[#allocation9 + $0x68] sm:$0xff]  ;;  %v781_v35 = vld [vmem:[#allocation9 + $0x340] sm:$0xff]  ;;  %v784_v36 = vld [vmem:[#allocation9 + $0x358] sm:$0xff] }
  0xbc   :  { %2138 = vmatpush1.bf16.msra.mxu0 %v2137_v43  ;;  %v343_v43 = vld [vmem:[#allocation7 + $0x740] sm:$0xff]  ;;  %v835_v37 = vld [vmem:[#allocation9 + $0x4f0] sm:$0xff]  ;;  %v2307_v39 = vpack.c.bf16 %v693_v33, %v690_v31 }
  0xbd   :  { %2266 = vmatpush1.bf16.msra.mxu1 %v2265_v44  ;;  %2140 = vmatprep.subr.bf16.mxu0 %v2139_v45  ;;  %v347_v44 = vld [vmem:[#allocation7 + $0x760] sm:$0xff]  ;;  %v345_v45 = vld [vmem:[#allocation7 + $0x750] sm:$0xff] }
  0xbe   :  { %2268 = vmatprep.subr.bf16.mxu1 %v2267_v49  ;;  %v356_v49 = vld [vmem:[#allocation7 + $0x7a8] sm:$0xff]  ;;  %v2161_v52 = vpack.c.bf16 %v347_v44, %v343_v43  ;;  %v2289_v53 = vpack.c.bf16 %v349_v47, %v345_v45  ;;  %v2465_v43 = vpack.c.bf16 %v784_v36, %v781_v35  ;;  %v699_v44 = vld [vmem:[#allocation9 + $0xb0] sm:$0xff]  ;;  %v2467_v45 = vpack.c.bf16 %v838_v38, %v835_v37  ;;  %v729_v36 = vld [vmem:[#allocation9 + $0x1a0] sm:$0xff] }
  0xbf   :  { %v2163_v54 = vpack.c.bf16 %v356_v49, %v352_v48  ;;  %v790_v47 = vld [vmem:[#allocation9 + $0x388] sm:$0xff]  ;;  %v841_v48 = vld [vmem:[#allocation9 + $0x520] sm:$0xff]  ;;  %v844_v49 = vld [vmem:[#allocation9 + $0x538] sm:$0xff] }
  0xc0   :  { %2142 = vmatpush1.bf16.msra.mxu0 %v2141_v55  ;;  %v351_v55 = vld [vmem:[#allocation7 + $0x780] sm:$0xff]  ;;  %v719_v33 = vld [vmem:[#allocation9 + $0x150] sm:$0xff]  ;;  %v726_v35 = vld [vmem:[#allocation9 + $0x188] sm:$0xff] }
  0xc1   :  { %2270 = vmatpush1.bf16.msra.mxu1 %v2269_v56  ;;  %2144 = vmatprep.subr.bf16.mxu0 %v2143_v57  ;;  %v355_v56 = vld [vmem:[#allocation7 + $0x7a0] sm:$0xff]  ;;  %v353_v57 = vld [vmem:[#allocation7 + $0x790] sm:$0xff]  ;;  %v2331_v38 = vpack.c.bf16 %v729_v36, %v726_v35 }
  0xc2   :  { %2272 = vmatprep.subr.bf16.mxu1 %v2271_v61  ;;  %v364_v61 = vld [vmem:[#allocation7 + $0x7e8] sm:$0xff]  ;;  %v2165_v0 = vpack.c.bf16 %v355_v56, %v351_v55  ;;  %v2293_v1 = vpack.c.bf16 %v357_v59, %v353_v57  ;;  %v705_v56 = vld [vmem:[#allocation9 + $0xe0] sm:$0xff]  ;;  %v2471_v57 = vpack.c.bf16 %v844_v49, %v841_v48  ;;  %v796_v59 = vld [vmem:[#allocation9 + $0x3b8] sm:$0xff] }
  0xc3   :  { %v2167_v2 = vpack.c.bf16 %v364_v61, %v360_v60  ;;  %v847_v60 = vld [vmem:[#allocation9 + $0x550] sm:$0xff]  ;;  %v850_v61 = vld [vmem:[#allocation9 + $0x568] sm:$0xff]  ;;  %v367_v35 = vld [vmem:[%s3146_s3] sm:$0xf] }
  0xc4   :  { %2146 = vmatpush1.bf16.msra.mxu0 %v2145_v3  ;;  %v359_v3 = vld [vmem:[#allocation7 + $0x7c0] sm:$0xff] }
  0xc5   :  { %2274 = vmatpush1.bf16.msra.mxu1 %v2273_v4  ;;  %2148 = vmatprep.subr.bf16.mxu0 %v2147_v5  ;;  %v363_v4 = vld [vmem:[#allocation7 + $0x7e0] sm:$0xff]  ;;  %v361_v5 = vld [vmem:[#allocation7 + $0x7d0] sm:$0xff] }
  0xc6   :  { %2276 = vmatprep.subr.bf16.mxu1 %v2275_v10  ;;  %v681_v10 = vld [vmem:[#allocation9 + $0x20] sm:$0xff]  ;;  %v2169_v13 = vpack.c.bf16 %v363_v4, %v359_v3  ;;  %v2297_v15 = vpack.c.bf16 %v365_v7, %v361_v5  ;;  %v711_v4 = vld [vmem:[#allocation9 + $0x110] sm:$0xff]  ;;  %v2475_v5 = vpack.c.bf16 %v850_v61, %v847_v60  ;;  %v802_v7 = vld [vmem:[#allocation9 + $0x3e8] sm:$0xff] }
  0xc8   :  { %2150 = vmatpush1.bf16.msra.mxu0 %v2149_v16  ;;  %v2299_v16 = vpack.c.bf16 %v681_v10, %v678_v9  ;;  %v853_v9 = vld [vmem:[#allocation9 + $0x580] sm:$0xff]  ;;  %v856_v10 = vld [vmem:[#allocation9 + $0x598] sm:$0xff] }
  0xc9   :  { %2278 = vmatpush1.bf16.msra.mxu1 %v2277_v17  ;;  %2152 = vmatprep.subr.bf16.mxu0 %v2151_v18  ;;  %v677_v17 = vld [vmem:[#allocation9] sm:$0xff]  ;;  %v680_v18 = vld [vmem:[#allocation9 + $0x18] sm:$0xff] }
  0xca   :  { %2280 = vmatprep.subr.bf16.mxu1 %v2279_v22  ;;  %v775_v22 = vld [vmem:[#allocation9 + $0x310] sm:$0xff]  ;;  %v2301_v27 = vpack.c.bf16 %v680_v18, %v677_v17  ;;  %v717_v17 = vld [vmem:[#allocation9 + $0x140] sm:$0xff]  ;;  %v2479_v18 = vpack.c.bf16 %v856_v10, %v853_v9 }
  0xcb   :  { %v2461_v32 = vpack.c.bf16 %v778_v23, %v775_v22  ;;  %v862_v22 = vld [vmem:[#allocation9 + $0x5c8] sm:$0xff] }
  0xcc   :  { %2154 = vmatpush1.bf16.msra.mxu0 %v2153_v28  ;;  %v2303_v28 = vpack.c.bf16 %v687_v20, %v684_v19  ;;  %v805_v19 = vld [vmem:[#allocation9 + $0x400] sm:$0xff]  ;;  %v808_v20 = vld [vmem:[#allocation9 + $0x418] sm:$0xff] }
  0xcd   :  { %2282 = vmatpush1.bf16.msra.mxu1 %v2281_v29  ;;  %2156 = vmatprep.subr.bf16.mxu0 %v2155_v30  ;;  %v683_v29 = vld [vmem:[#allocation9 + $0x30] sm:$0xff]  ;;  %v686_v30 = vld [vmem:[#allocation9 + $0x48] sm:$0xff] }
  0xce   :  { %2284 = vmatprep.subr.bf16.mxu1 %v2283_v34  ;;  %v2463_v34 = vpack.c.bf16 %v832_v26, %v829_v25  ;;  %v2305_v8 = vpack.c.bf16 %v686_v30, %v683_v29  ;;  %v713_v25 = vld [vmem:[#allocation9 + $0x120] sm:$0xff]  ;;  %v716_v26 = vld [vmem:[#allocation9 + $0x138] sm:$0xff]  ;;  %v723_v29 = vld [vmem:[#allocation9 + $0x170] sm:$0xff] }
  0xcf   :  { %v2325_v31 = vpack.c.bf16 %v716_v26, %v713_v25  ;;  %v817_v25 = vld [vmem:[#allocation9 + $0x460] sm:$0xff]  ;;  %v820_v26 = vld [vmem:[#allocation9 + $0x478] sm:$0xff] }
  0xd0   :  { %2158 = vmatpush1.bf16.msra.mxu0 %v2157_v40  ;;  %v689_v40 = vld [vmem:[#allocation9 + $0x60] sm:$0xff] }
  0xd1   :  { %2286 = vmatpush1.bf16.msra.mxu1 %v2285_v41  ;;  %2160 = vmatprep.subr.bf16.mxu0 %v2159_v42  ;;  %v692_v41 = vld [vmem:[#allocation9 + $0x78] sm:$0xff] }
  0xd2   :  { %2288 = vmatprep.subr.bf16.mxu1 %v2287_v46  ;;  %v696_v42 = vld [vmem:[#allocation9 + $0x98] sm:$0xff]  ;;  %v787_v46 = vld [vmem:[#allocation9 + $0x370] sm:$0xff]  ;;  %v2309_v50 = vpack.c.bf16 %v692_v41, %v689_v40 }
  0xd3   :  { %v2311_v51 = vpack.c.bf16 %v699_v44, %v696_v42  ;;  %v2469_v55 = vpack.c.bf16 %v790_v47, %v787_v46  ;;  %v732_v40 = vld [vmem:[#allocation9 + $0x1b8] sm:$0xff]  ;;  %v735_v41 = vld [vmem:[#allocation9 + $0x1d0] sm:$0xff]  ;;  %v738_v46 = vld [vmem:[#allocation9 + $0x1e8] sm:$0xff] }
  0xd4   :  { %2162 = vmatpush1.bf16.msra.mxu0 %v2161_v52  ;;  %v695_v52 = vld [vmem:[#allocation9 + $0x90] sm:$0xff]  ;;  %v741_v47 = vld [vmem:[#allocation9 + $0x200] sm:$0xff] }
  0xd5   :  { %2290 = vmatpush1.bf16.msra.mxu1 %v2289_v53  ;;  %2164 = vmatprep.subr.bf16.mxu0 %v2163_v54  ;;  %v698_v53 = vld [vmem:[#allocation9 + $0xa8] sm:$0xff]  ;;  %v731_v44 = vld [vmem:[#allocation9 + $0x1b0] sm:$0xff]  ;;  %v2339_v49 = vpack.c.bf16 %v741_v47, %v738_v46  ;;  %v773_v46 = vld [vmem:[#allocation9 + $0x300] sm:$0xff] }
  0xd6   :  { %2292 = vmatprep.subr.bf16.mxu1 %v2291_v58  ;;  %v702_v54 = vld [vmem:[#allocation9 + $0xc8] sm:$0xff]  ;;  %v793_v58 = vld [vmem:[#allocation9 + $0x3a0] sm:$0xff]  ;;  %v2313_v62 = vpack.c.bf16 %v698_v53, %v695_v52  ;;  %v744_v52 = vld [vmem:[#allocation9 + $0x218] sm:$0xff] }
  0xd7   :  { %v2315_v63 = vpack.c.bf16 %v705_v56, %v702_v54  ;;  %v2473_v3 = vpack.c.bf16 %v796_v59, %v793_v58  ;;  %v747_v53 = vld [vmem:[#allocation9 + $0x230] sm:$0xff]  ;;  %v750_v58 = vld [vmem:[#allocation9 + $0x248] sm:$0xff]  ;;  %v753_v59 = vld [vmem:[#allocation9 + $0x260] sm:$0xff] }
  0xd8   :  { %2166 = vmatpush1.bf16.msra.mxu0 %v2165_v0  ;;  %v701_v0 = vld [vmem:[#allocation9 + $0xc0] sm:$0xff]  ;;  %v743_v56 = vld [vmem:[#allocation9 + $0x210] sm:$0xff]  ;;  %v2347_v61 = vpack.c.bf16 %v753_v59, %v750_v58  ;;  %v776_v47 = vld [vmem:[#allocation9 + $0x318] sm:$0xff] }
  0xd9   :  { %2294 = vmatpush1.bf16.msra.mxu1 %v2293_v1  ;;  %2168 = vmatprep.subr.bf16.mxu0 %v2167_v2  ;;  %v704_v1 = vld [vmem:[#allocation9 + $0xd8] sm:$0xff] }
  0xda   :  { %2296 = vmatprep.subr.bf16.mxu1 %v2295_v6  ;;  %v708_v2 = vld [vmem:[#allocation9 + $0xf8] sm:$0xff]  ;;  %v799_v6 = vld [vmem:[#allocation9 + $0x3d0] sm:$0xff]  ;;  %v2317_v11 = vpack.c.bf16 %v704_v1, %v701_v0 }
  0xdb   :  { %v2319_v12 = vpack.c.bf16 %v711_v4, %v708_v2  ;;  %v756_v0 = vld [vmem:[#allocation9 + $0x278] sm:$0xff]  ;;  %v759_v1 = vld [vmem:[#allocation9 + $0x290] sm:$0xff] }
  0xdc   :  { %2170 = vmatpush1.bf16.msra.mxu0 %v2169_v13  ;;  %v707_v13 = vld [vmem:[#allocation9 + $0xf0] sm:$0xff] }
  0xdd   :  { %2298 = vmatpush1.bf16.msra.mxu1 %v2297_v15  ;;  %2300 = vmatprep.subr.bf16.mxu0 %v2299_v16  ;;  %v714_v15 = vld [vmem:[#allocation9 + $0x128] sm:$0xff]  ;;  %v2477_v16 = vpack.c.bf16 %v802_v7, %v799_v6  ;;  %v2321_v23 = vpack.c.bf16 %v710_v14, %v707_v13  ;;  %v755_v4 = vld [vmem:[#allocation9 + $0x270] sm:$0xff]  ;;  %v765_v7 = vld [vmem:[#allocation9 + $0x2c0] sm:$0xff] }
  0xde   :  { %2460 = vmatprep.subr.bf16.mxu1 %v2459_v21  ;;  %v859_v21 = vld [vmem:[#allocation9 + $0x5b0] sm:$0xff]  ;;  %v762_v6 = vld [vmem:[#allocation9 + $0x2a8] sm:$0xff] }
  0xdf   :  { %525 = vmatmul.mubr.f32.vlgmr.msra.gmra.mrb[0].mxu0 %v109_v24  ;;  %v2483_v30 = vpack.c.bf16 %v862_v22, %v859_v21  ;;  %v2355_v10 = vpack.c.bf16 %v765_v7, %v762_v6  ;;  %v811_v14 = vld [vmem:[#allocation9 + $0x430] sm:$0xff]  ;;  %v770_v21 = vld [vmem:[#allocation9 + $0x2e8] sm:$0xff]  ;;  %v865_v22 = vld [vmem:[#allocation9 + $0x5e0] sm:$0xff] }
  0xe0   :  { %667 = vmatmul.mubr.f32.vlgmr.msra.gmra.mrb[0].mxu1 %v109_v24  ;;  %2302 = vmatpush1.bf16.msra.mxu0 %v2301_v27  ;;  %v2323_v24 = vpack.c.bf16 %v717_v17, %v714_v15  ;;  %v2481_v27 = vpack.c.bf16 %v808_v20, %v805_v19  ;;  %v814_v15 = vld [vmem:[#allocation9 + $0x448] sm:$0xff]  ;;  %v768_v17 = vld [vmem:[#allocation9 + $0x2d8] sm:$0xff]  ;;  %v767_v20 = vld [vmem:[#allocation9 + $0x2d0] sm:$0xff] }
  0xe1   :  { %2304 = vmatprep.subr.bf16.mxu0 %v2303_v28  ;;  %2462 = vmatpush3.bf16.msra.mxu1 %v2461_v32  ;;  %v720_v28 = vld [vmem:[#allocation9 + $0x158] sm:$0xff] }
  0xe2   :  { %2464 = vmatprep.subr.bf16.mxu1 %v2463_v34  ;;  %v2327_v32 = vpack.c.bf16 %v723_v29, %v720_v28  ;;  %v722_v34 = vld [vmem:[#allocation9 + $0x168] sm:$0xff]  ;;  %v2489_v28 = vpack.c.bf16 %v820_v26, %v817_v25 }
  0xe3   :  { %v2329_v37 = vpack.c.bf16 %v722_v34, %v719_v33  ;;  %v774_v29 = vld [vmem:[#allocation9 + $0x308] sm:$0xff] }
  0xe4   :  { %2306 = vmatpush1.bf16.msra.mxu0 %v2305_v8  ;;  %v725_v8 = vld [vmem:[#allocation9 + $0x180] sm:$0xff] }
  0xe5   :  { %2308 = vmatprep.subr.bf16.mxu0 %v2307_v39  ;;  %2466 = vmatpush3.bf16.msra.mxu1 %v2465_v43  ;;  %v728_v39 = vld [vmem:[#allocation9 + $0x198] sm:$0xff]  ;;  %v2335_v43 = vpack.c.bf16 %v735_v41, %v732_v40 }
  0xe6   :  { %2468 = vmatprep.subr.bf16.mxu1 %v2467_v45  ;;  %v2333_v42 = vpack.c.bf16 %v728_v39, %v725_v8  ;;  %v734_v45 = vld [vmem:[#allocation9 + $0x1c8] sm:$0xff] }
  0xe7   :  { %v2337_v48 = vpack.c.bf16 %v734_v45, %v731_v44 }
  0xe8   :  { %2310 = vmatpush1.bf16.msra.mxu0 %v2309_v50  ;;  %v737_v50 = vld [vmem:[#allocation9 + $0x1e0] sm:$0xff] }
  0xe9   :  { %2312 = vmatprep.subr.bf16.mxu0 %v2311_v51  ;;  %2470 = vmatpush3.bf16.msra.mxu1 %v2469_v55  ;;  %v740_v51 = vld [vmem:[#allocation9 + $0x1f8] sm:$0xff]  ;;  %v2343_v55 = vpack.c.bf16 %v747_v53, %v744_v52  ;;  %v783_v52 = vld [vmem:[#allocation9 + $0x350] sm:$0xff] }
  0xea   :  { %2472 = vmatprep.subr.bf16.mxu1 %v2471_v57  ;;  %v2341_v54 = vpack.c.bf16 %v740_v51, %v737_v50  ;;  %v746_v57 = vld [vmem:[#allocation9 + $0x228] sm:$0xff]  ;;  %v780_v51 = vld [vmem:[#allocation9 + $0x338] sm:$0xff] }
  0xeb   :  { %v2345_v60 = vpack.c.bf16 %v746_v57, %v743_v56  ;;  %v2365_v56 = vpack.c.bf16 %v776_v47, %v773_v46  ;;  %v2367_v59 = vpack.c.bf16 %v783_v52, %v780_v51  ;;  %v830_v51 = vld [vmem:[#allocation9 + $0x4c8] sm:$0xff] }
  0xec   :  { %2314 = vmatpush1.bf16.msra.mxu0 %v2313_v62  ;;  %v749_v62 = vld [vmem:[#allocation9 + $0x240] sm:$0xff]  ;;  %v834_v52 = vld [vmem:[#allocation9 + $0x4e8] sm:$0xff] }
  0xed   :  { %2316 = vmatprep.subr.bf16.mxu0 %v2315_v63  ;;  %2474 = vmatpush3.bf16.msra.mxu1 %v2473_v3  ;;  %v752_v63 = vld [vmem:[#allocation9 + $0x258] sm:$0xff]  ;;  %v2351_v3 = vpack.c.bf16 %v759_v1, %v756_v0 }
  0xee   :  { %2476 = vmatprep.subr.bf16.mxu1 %v2475_v5  ;;  %v2349_v2 = vpack.c.bf16 %v752_v63, %v749_v62  ;;  %v758_v5 = vld [vmem:[#allocation9 + $0x288] sm:$0xff]  ;;  %v789_v63 = vld [vmem:[#allocation9 + $0x380] sm:$0xff] }
  0xef   :  { %v2353_v9 = vpack.c.bf16 %v758_v5, %v755_v4  ;;  %v786_v62 = vld [vmem:[#allocation9 + $0x368] sm:$0xff]  ;;  %v792_v4 = vld [vmem:[#allocation9 + $0x398] sm:$0xff]  ;;  %v795_v5 = vld [vmem:[#allocation9 + $0x3b0] sm:$0xff] }
  0xf0   :  { %2318 = vmatpush1.bf16.msra.mxu0 %v2317_v11  ;;  %v761_v11 = vld [vmem:[#allocation9 + $0x2a0] sm:$0xff]  ;;  %v2371_v1 = vpack.c.bf16 %v789_v63, %v786_v62  ;;  %v2375_v7 = vpack.c.bf16 %v795_v5, %v792_v4  ;;  %v843_v62 = vld [vmem:[#allocation9 + $0x530] sm:$0xff] }
  0xf1   :  { %2320 = vmatprep.subr.bf16.mxu0 %v2319_v12  ;;  %2478 = vmatpush3.bf16.msra.mxu1 %v2477_v16  ;;  %v764_v12 = vld [vmem:[#allocation9 + $0x2b8] sm:$0xff]  ;;  %v2485_v16 = vpack.c.bf16 %v814_v15, %v811_v14  ;;  %v797_v15 = vld [vmem:[#allocation9 + $0x3c0] sm:$0xff] }
  0xf2   :  { %2480 = vmatprep.subr.bf16.mxu1 %v2479_v18  ;;  %v2357_v13 = vpack.c.bf16 %v764_v12, %v761_v11  ;;  %v771_v18 = vld [vmem:[#allocation9 + $0x2f0] sm:$0xff]  ;;  %v798_v11 = vld [vmem:[#allocation9 + $0x3c8] sm:$0xff]  ;;  %v801_v12 = vld [vmem:[#allocation9 + $0x3e0] sm:$0xff] }
  0xf3   :  { %v2359_v19 = vpack.c.bf16 %v771_v18, %v768_v17  ;;  %v2379_v14 = vpack.c.bf16 %v801_v12, %v798_v11  ;;  %v804_v17 = vld [vmem:[#allocation9 + $0x3f8] sm:$0xff]  ;;  %v807_v18 = vld [vmem:[#allocation9 + $0x410] sm:$0xff]  ;;  %v849_v4 = vld [vmem:[#allocation9 + $0x560] sm:$0xff] }
  0xf4   :  { %2322 = vmatpush1.bf16.msra.mxu0 %v2321_v23  ;;  %v2361_v23 = vpack.c.bf16 %v770_v21, %v767_v20  ;;  %v2383_v20 = vpack.c.bf16 %v807_v18, %v804_v17  ;;  %v803_v21 = vld [vmem:[#allocation9 + $0x3f0] sm:$0xff]  ;;  %v861_v17 = vld [vmem:[#allocation9 + $0x5c0] sm:$0xff] }
  0xf5   :  { %2324 = vmatprep.subr.bf16.mxu0 %v2323_v24  ;;  %2482 = vmatpush3.bf16.msra.mxu1 %v2481_v27  ;;  %v868_v24 = vld [vmem:[#allocation9 + $0x5f8] sm:$0xff]  ;;  %v855_v11 = vld [vmem:[#allocation9 + $0x590] sm:$0xff] }
  0xf6   :  { %2484 = vmatprep.subr.bf16.mxu1 %v2483_v30  ;;  %v2487_v27 = vpack.c.bf16 %v868_v24, %v865_v22  ;;  %v777_v30 = vld [vmem:[#allocation9 + $0x320] sm:$0xff]  ;;  %v806_v22 = vld [vmem:[#allocation9 + $0x408] sm:$0xff] }
  0xf7   :  { %v813_v24 = vld [vmem:[#allocation9 + $0x440] sm:$0xff]  ;;  %v2385_v25 = vpack.c.bf16 %v806_v22, %v803_v21  ;;  %v860_v21 = vld [vmem:[#allocation9 + $0x5b8] sm:$0xff] }
  0xf8   :  { %2326 = vmatpush1.bf16.msra.mxu0 %v2325_v31  ;;  %v2363_v31 = vpack.c.bf16 %v777_v30, %v774_v29  ;;  %v816_v29 = vld [vmem:[#allocation9 + $0x458] sm:$0xff]  ;;  %v819_v30 = vld [vmem:[#allocation9 + $0x470] sm:$0xff] }
  0xf9   :  { %2328 = vmatprep.subr.bf16.mxu0 %v2327_v32  ;;  %2486 = vmatpush3.bf16.msra.mxu1 %v2485_v16  ;;  %v369_v32 = vlaneseq  ;;  %v800_v16 = vld [vmem:[#allocation9 + $0x3d8] sm:$0xff] }
  0xfa   :  { %2488 = vmatprep.subr.bf16.mxu1 %v2487_v27  ;;  %v809_v27 = vld [vmem:[#allocation9 + $0x420] sm:$0xff]  ;;  %v864_v22 = vld [vmem:[#allocation9 + $0x5d8] sm:$0xff] }
  0xfb   :  { %v370_v33 = vshrl.u32 %v369_v32, 7  ;;  %v2391_v32 = vpack.c.bf16 %v819_v30, %v816_v29  ;;  %v730_v29 = vld [vmem:[#allocation9 + $0x1a8] sm:$0xff] }
  0xfc   :  { %2330 = vmatpush1.bf16.msra.mxu0 %v2329_v37 }
  0xfd   :  { %2332 = vmatprep.subr.bf16.mxu0 %v2331_v38  ;;  %2490 = vmatpush3.bf16.msra.mxu1 %v2489_v28  ;;  %v3059_v34 = vsub.s32 0, %v370_v33  ;;  %v3064_v36 = vsub.s32 2, %v370_v33  ;;  %v3066_v37 = vsub.s32 1, %v370_v33  ;;  %v383_v38 = vsub.s32 3, %v370_v33  ;;  %v812_v28 = vld [vmem:[#allocation9 + $0x438] sm:$0xff]  ;;  %v815_v33 = vld [vmem:[#allocation9 + $0x450] sm:$0xff] }
  0xff   :  { %v372_v8 = vrot.slane %v367_v35, %v3059_v34  ;;  %v380_v39 = vrot.slane %v367_v35, %v3064_v36  ;;  %v376_v40 = vrot.slane %v367_v35, %v3066_v37  ;;  %v384_v41 = vrot.slane %v367_v35, %v383_v38  ;;  %v818_v35 = vld [vmem:[#allocation9 + $0x468] sm:$0xff] }
 0x100   :  { %2334 = vmatpush1.bf16.msra.mxu0 %v2333_v42  ;;  %v822_v38 = vld [vmem:[#allocation9 + $0x488] sm:$0xff] }
 0x101   :  { %2336 = vmatprep.subr.bf16.mxu0 %v2335_v43 }
 0x104   :  { %2338 = vmatpush1.bf16.msra.mxu0 %v2337_v48 }
 0x105   :  { %2340 = vmatprep.subr.bf16.mxu0 %v2339_v49 }
 0x108   :  { %2342 = vmatpush1.bf16.msra.mxu0 %v2341_v54 }
 0x109   :  { %2344 = vmatprep.subr.bf16.mxu0 %v2343_v55 }
 0x10c   :  { %2346 = vmatpush1.bf16.msra.mxu0 %v2345_v60  ;;  %v779_v60 = vld [vmem:[#allocation9 + $0x330] sm:$0xff] }
 0x10d   :  { %2348 = vmatprep.subr.bf16.mxu0 %v2347_v61  ;;  %v782_v61 = vld [vmem:[#allocation9 + $0x348] sm:$0xff] }
 0x10e   :  { %v2369_v0 = vpack.c.bf16 %v782_v61, %v779_v60  ;;  %v836_v60 = vld [vmem:[#allocation9 + $0x4f8] sm:$0xff] }
 0x10f   :  { %v840_v61 = vld [vmem:[#allocation9 + $0x518] sm:$0xff] }
 0x110   :  { %2350 = vmatpush1.bf16.msra.mxu0 %v2349_v2  ;;  %v785_v2 = vld [vmem:[#allocation9 + $0x360] sm:$0xff] }
 0x111   :  { %2352 = vmatprep.subr.bf16.mxu0 %v2351_v3  ;;  %v788_v3 = vld [vmem:[#allocation9 + $0x378] sm:$0xff] }
 0x112   :  { %v2373_v6 = vpack.c.bf16 %v788_v3, %v785_v2  ;;  %v842_v2 = vld [vmem:[#allocation9 + $0x528] sm:$0xff] }
 0x113   :  { %v846_v3 = vld [vmem:[#allocation9 + $0x548] sm:$0xff] }
 0x114   :  { %2354 = vmatpush1.bf16.msra.mxu0 %v2353_v9  ;;  %v791_v9 = vld [vmem:[#allocation9 + $0x390] sm:$0xff] }
 0x115   :  { %2356 = vmatprep.subr.bf16.mxu0 %v2355_v10  ;;  %v794_v10 = vld [vmem:[#allocation9 + $0x3a8] sm:$0xff] }
 0x118   :  { %2358 = vmatpush1.bf16.msra.mxu0 %v2357_v13  ;;  %v2377_v13 = vpack.c.bf16 %v794_v10, %v791_v9  ;;  %v848_v9 = vld [vmem:[#allocation9 + $0x558] sm:$0xff] }
 0x119   :  { %2360 = vmatprep.subr.bf16.mxu0 %v2359_v19  ;;  %v2381_v19 = vpack.c.bf16 %v800_v16, %v797_v15  ;;  %v852_v10 = vld [vmem:[#allocation9 + $0x578] sm:$0xff]  ;;  %v854_v15 = vld [vmem:[#allocation9 + $0x588] sm:$0xff] }
 0x11a   :  { %v858_v16 = vld [vmem:[#allocation9 + $0x5a8] sm:$0xff] }
 0x11c   :  { %2362 = vmatpush1.bf16.msra.mxu0 %v2361_v23  ;;  %v810_v23 = vld [vmem:[#allocation9 + $0x428] sm:$0xff] }
 0x11d   :  { %2364 = vmatprep.subr.bf16.mxu0 %v2363_v31  ;;  %v2387_v26 = vpack.c.bf16 %v813_v24, %v810_v23  ;;  %v2389_v31 = vpack.c.bf16 %v812_v28, %v809_v27  ;;  %v867_v23 = vld [vmem:[#allocation9 + $0x5f0] sm:$0xff]  ;;  %v866_v27 = vld [vmem:[#allocation9 + $0x5e8] sm:$0xff] }
 0x11e   :  { %v727_v28 = vld [vmem:[#allocation9 + $0x190] sm:$0xff] }
 0x1b2   :  { %v526_v42 = vpop.f32.mrb[0].mxu0 }
 0x1b3   :  { %v3071_v43 = vadd.f32 %v526_v42, %v372_v8  ;;  %v668_v44 = vpop.f32.mrb[0].mxu1  ;;  %v528_v45 = vpop.f32.mrb[1].mxu0  ;;  %v825_v8 = vld [vmem:[#allocation9 + $0x4a0] sm:$0xff]  ;;  %v824_v42 = vld [vmem:[#allocation9 + $0x498] sm:$0xff] }
 0x1b4   :  { %v3073_v48 = vadd.f32 %v668_v44, %v380_v39  ;;  %v3075_v49 = vadd.f32 %v528_v45, %v376_v40  ;;  %v670_v50 = vpop.f32.mrb[1].mxu1  ;;  %v2393_v39 = vpack.c.bf16 %v818_v35, %v815_v33  ;;  %v2395_v40 = vpack.c.bf16 %v825_v8, %v822_v38  ;;  %v828_v44 = vld [vmem:[#allocation9 + $0x4b8] sm:$0xff]  ;;  %v831_v45 = vld [vmem:[#allocation9 + $0x4d0] sm:$0xff]  ;;  %v682_v33 = vld [vmem:[#allocation9 + $0x28] sm:$0xff] }
 0x1b5   :  { %v2742_v53 = vadd.f32 %v670_v50, %v384_v41  ;;  %v673_v57 = vmax.f32 %v3071_v43, 0.0  ;;  %v821_v41 = vld [vmem:[#allocation9 + $0x480] sm:$0xff]  ;;  %v2399_v47 = vpack.c.bf16 %v831_v45, %v828_v44  ;;  %v827_v50 = vld [vmem:[#allocation9 + $0x4b0] sm:$0xff]  ;;  %v736_v38 = vld [vmem:[#allocation9 + $0x1d8] sm:$0xff] }
 0x1b6   :  { %v675_v54 = vmax.f32 %v3073_v48, 0.0  ;;  %v674_v55 = vmax.f32 %v3075_v49, 0.0  ;;  %v2397_v46 = vpack.c.bf16 %v824_v42, %v821_v41  ;;  %v733_v35 = vld [vmem:[#allocation9 + $0x1c0] sm:$0xff]  ;;  %v688_v41 = vld [vmem:[#allocation9 + $0x58] sm:$0xff]  ;;  %v739_v42 = vld [vmem:[#allocation9 + $0x1f0] sm:$0xff] }
 0x1b7   :  { %v676_v58 = vmax.f32 %v2742_v53, 0.0  ;;  %v837_v53 = vld [vmem:[#allocation9 + $0x500] sm:$0xff]  ;;  %v742_v44 = vld [vmem:[#allocation9 + $0x208] sm:$0xff]  ;;  %v1230_v43 = vld [vmem:[#allocation10 + $0x1d8] sm:$0xff] }
 0x1b8   :  { %950 = vmatprep.mubr.f32.mxu0 %v674_v55  ;;  %v754_v48 = vld [vmem:[#allocation9 + $0x268] sm:$0xff] }
 0x1b9   :  { %1162 = vmatprep.mubr.f32.mxu1 %v676_v58  ;;  %951 = vmatmul.mubr.f32.vlgmr.msra.gmra.mrb[2].mxu0 %v673_v57 }
 0x1ba   :  { %2366 = vmatpush1.bf16.msra.mxu0 %v2365_v56  ;;  %1163 = vmatmul.mubr.f32.vlgmr.msra.gmra.mrb[2].mxu1 %v675_v54  ;;  %v2401_v56 = vpack.c.bf16 %v830_v51, %v827_v50  ;;  %v694_v50 = vld [vmem:[#allocation9 + $0x88] sm:$0xff]  ;;  %v745_v51 = vld [vmem:[#allocation9 + $0x220] sm:$0xff] }
 0x1bb   :  { %1021 = vmatprep.mubr.f32.mxu0 %v676_v58  ;;  %2368 = vmatprep.subr.bf16.mxu0 %v2367_v59  ;;  %v2403_v58 = vpack.c.bf16 %v837_v53, %v834_v52  ;;  %v833_v59 = vld [vmem:[#allocation9 + $0x4e0] sm:$0xff]  ;;  %v748_v52 = vld [vmem:[#allocation9 + $0x238] sm:$0xff] }
 0x1bc   :  { %v2405_v63 = vpack.c.bf16 %v836_v60, %v833_v59  ;;  %v700_v59 = vld [vmem:[#allocation9 + $0xb8] sm:$0xff]  ;;  %v751_v60 = vld [vmem:[#allocation9 + $0x250] sm:$0xff] }
 0x1bd   :  { %v2443_v49 = vpack.c.bf16 %v754_v48, %v751_v60  ;;  %v1176_v60 = vld [vmem:[#allocation10 + $0x28] sm:$0xff]  ;;  %v1205_v48 = vld [vmem:[#allocation10 + $0x110] sm:$0xff] }
 0x1be   :  { %2370 = vmatpush1.bf16.msra.mxu0 %v2369_v0  ;;  %v2407_v0 = vpack.c.bf16 %v843_v62, %v840_v61  ;;  %v706_v61 = vld [vmem:[#allocation9 + $0xe8] sm:$0xff]  ;;  %v757_v62 = vld [vmem:[#allocation9 + $0x280] sm:$0xff] }
 0x1bf   :  { %2372 = vmatprep.subr.bf16.mxu0 %v2371_v1  ;;  %v839_v1 = vld [vmem:[#allocation9 + $0x510] sm:$0xff] }
 0x1c0   :  { %v2409_v5 = vpack.c.bf16 %v842_v2, %v839_v1  ;;  %v709_v2 = vld [vmem:[#allocation9 + $0x100] sm:$0xff] }
 0x1c2   :  { %2374 = vmatpush1.bf16.msra.mxu0 %v2373_v6  ;;  %v2411_v6 = vpack.c.bf16 %v849_v4, %v846_v3  ;;  %v712_v3 = vld [vmem:[#allocation9 + $0x118] sm:$0xff]  ;;  %v763_v4 = vld [vmem:[#allocation9 + $0x2b0] sm:$0xff] }
 0x1c3   :  { %2376 = vmatprep.subr.bf16.mxu0 %v2375_v7  ;;  %v845_v7 = vld [vmem:[#allocation9 + $0x540] sm:$0xff] }
 0x1c4   :  { %v2413_v12 = vpack.c.bf16 %v848_v9, %v845_v7  ;;  %v715_v9 = vld [vmem:[#allocation9 + $0x130] sm:$0xff] }
 0x1c6   :  { %2378 = vmatpush1.bf16.msra.mxu0 %v2377_v13  ;;  %v2415_v13 = vpack.c.bf16 %v855_v11, %v852_v10  ;;  %v718_v10 = vld [vmem:[#allocation9 + $0x148] sm:$0xff]  ;;  %v769_v11 = vld [vmem:[#allocation9 + $0x2e0] sm:$0xff] }
 0x1c7   :  { %2380 = vmatprep.subr.bf16.mxu0 %v2379_v14  ;;  %v851_v14 = vld [vmem:[#allocation9 + $0x570] sm:$0xff] }
 0x1c8   :  { %v2417_v18 = vpack.c.bf16 %v854_v15, %v851_v14  ;;  %v721_v14 = vld [vmem:[#allocation9 + $0x160] sm:$0xff]  ;;  %v724_v15 = vld [vmem:[#allocation9 + $0x178] sm:$0xff] }
 0x1ca   :  { %2382 = vmatpush1.bf16.msra.mxu0 %v2381_v19  ;;  %v2419_v19 = vpack.c.bf16 %v861_v17, %v858_v16  ;;  %v1172_v17 = vld [vmem:[#allocation10 + $0x8] sm:$0xff] }
 0x1cb   :  { %2384 = vmatprep.subr.bf16.mxu0 %v2383_v20  ;;  %v857_v20 = vld [vmem:[#allocation9 + $0x5a0] sm:$0xff] }
 0x1cc   :  { %v2421_v24 = vpack.c.bf16 %v860_v21, %v857_v20  ;;  %v1174_v21 = vld [vmem:[#allocation10 + $0x18] sm:$0xff] }
 0x1ce   :  { %2386 = vmatpush1.bf16.msra.mxu0 %v2385_v25  ;;  %v2423_v25 = vpack.c.bf16 %v867_v23, %v864_v22  ;;  %v1178_v22 = vld [vmem:[#allocation10 + $0x38] sm:$0xff]  ;;  %v1181_v23 = vld [vmem:[#allocation10 + $0x50] sm:$0xff] }
 0x1cf   :  { %2388 = vmatprep.subr.bf16.mxu0 %v2387_v26  ;;  %v863_v26 = vld [vmem:[#allocation9 + $0x5d0] sm:$0xff] }
 0x1d0   :  { %v2425_v30 = vpack.c.bf16 %v866_v27, %v863_v26  ;;  %v1177_v26 = vld [vmem:[#allocation10 + $0x30] sm:$0xff]  ;;  %v1180_v27 = vld [vmem:[#allocation10 + $0x48] sm:$0xff] }
 0x1d2   :  { %2390 = vmatpush1.bf16.msra.mxu0 %v2389_v31  ;;  %v2427_v31 = vpack.c.bf16 %v730_v29, %v727_v28  ;;  %v1184_v28 = vld [vmem:[#allocation10 + $0x68] sm:$0xff]  ;;  %v2457_v29 = vpack.c.bf16 %v724_v15, %v721_v14  ;;  %v1207_v14 = vld [vmem:[#allocation10 + $0x120] sm:$0xff]  ;;  %v1210_v15 = vld [vmem:[#allocation10 + $0x138] sm:$0xff] }
 0x1d3   :  { %2392 = vmatprep.subr.bf16.mxu0 %v2391_v32  ;;  %v679_v32 = vld [vmem:[#allocation9 + $0x10] sm:$0xff] }
 0x1d4   :  { %v2429_v8 = vpack.c.bf16 %v682_v33, %v679_v32  ;;  %v1183_v33 = vld [vmem:[#allocation10 + $0x60] sm:$0xff] }
 0x1d6   :  { %2394 = vmatpush1.bf16.msra.mxu0 %v2393_v39  ;;  %v2431_v39 = vpack.c.bf16 %v736_v38, %v733_v35  ;;  %v1186_v35 = vld [vmem:[#allocation10 + $0x78] sm:$0xff] }
 0x1d7   :  { %2396 = vmatprep.subr.bf16.mxu0 %v2395_v40  ;;  %v685_v40 = vld [vmem:[#allocation9 + $0x40] sm:$0xff]  ;;  %v1190_v38 = vld [vmem:[#allocation10 + $0x98] sm:$0xff] }
 0x1d8   :  { %v2433_v45 = vpack.c.bf16 %v688_v41, %v685_v40  ;;  %v1189_v41 = vld [vmem:[#allocation10 + $0x90] sm:$0xff] }
 0x1da   :  { %2398 = vmatpush1.bf16.msra.mxu0 %v2397_v46  ;;  %v2435_v46 = vpack.c.bf16 %v742_v44, %v739_v42  ;;  %v1192_v42 = vld [vmem:[#allocation10 + $0xa8] sm:$0xff] }
 0x1db   :  { %2400 = vmatprep.subr.bf16.mxu0 %v2399_v47  ;;  %v691_v47 = vld [vmem:[#allocation9 + $0x70] sm:$0xff]  ;;  %v1196_v44 = vld [vmem:[#allocation10 + $0xc8] sm:$0xff] }
 0x1dc   :  { %v2437_v53 = vpack.c.bf16 %v694_v50, %v691_v47  ;;  %v1224_v47 = vld [vmem:[#allocation10 + $0x1a8] sm:$0xff]  ;;  %v2505_v50 = vpack.c.bf16 %v1192_v42, %v1189_v41  ;;  %v1222_v41 = vld [vmem:[#allocation10 + $0x198] sm:$0xff] }
 0x1de   :  { %2402 = vmatpush1.bf16.msra.mxu0 %v2401_v56  ;;  %v2439_v56 = vpack.c.bf16 %v748_v52, %v745_v51  ;;  %v1195_v51 = vld [vmem:[#allocation10 + $0xc0] sm:$0xff] }
 0x1df   :  { %2404 = vmatprep.subr.bf16.mxu0 %v2403_v58  ;;  %v697_v58 = vld [vmem:[#allocation9 + $0xa0] sm:$0xff] }
 0x1e2   :  { %2406 = vmatpush1.bf16.msra.mxu0 %v2405_v63  ;;  %v760_v63 = vld [vmem:[#allocation9 + $0x298] sm:$0xff] }
 0x1e3   :  { %2408 = vmatprep.subr.bf16.mxu0 %v2407_v0  ;;  %v2447_v1 = vpack.c.bf16 %v760_v63, %v757_v62  ;;  %v1201_v63 = vld [vmem:[#allocation10 + $0xf0] sm:$0xff] }
 0x1e6   :  { %2410 = vmatpush1.bf16.msra.mxu0 %v2409_v5  ;;  %v766_v5 = vld [vmem:[#allocation9 + $0x2c8] sm:$0xff] }
 0x1e7   :  { %2412 = vmatprep.subr.bf16.mxu0 %v2411_v6  ;;  %v2449_v6 = vpack.c.bf16 %v712_v3, %v709_v2  ;;  %v2451_v7 = vpack.c.bf16 %v766_v5, %v763_v4  ;;  %v1204_v3 = vld [vmem:[#allocation10 + $0x108] sm:$0xff] }
 0x1e8   :  { %v1208_v4 = vld [vmem:[#allocation10 + $0x128] sm:$0xff] }
 0x1e9   :  { %v1236_v5 = vld [vmem:[#allocation10 + $0x208] sm:$0xff] }
 0x1ea   :  { %2414 = vmatpush1.bf16.msra.mxu0 %v2413_v12  ;;  %v772_v12 = vld [vmem:[#allocation9 + $0x2f8] sm:$0xff] }
 0x1eb   :  { %2416 = vmatprep.subr.bf16.mxu0 %v2415_v13  ;;  %v2453_v13 = vpack.c.bf16 %v718_v10, %v715_v9  ;;  %v2455_v16 = vpack.c.bf16 %v772_v12, %v769_v11  ;;  %v1185_v9 = vld [vmem:[#allocation10 + $0x70] sm:$0xff]  ;;  %v1188_v10 = vld [vmem:[#allocation10 + $0x88] sm:$0xff]  ;;  %v1239_v11 = vld [vmem:[#allocation10 + $0x220] sm:$0xff] }
 0x1ec   :  { %v1242_v12 = vld [vmem:[#allocation10 + $0x238] sm:$0xff] }
 0x1ee   :  { %2418 = vmatpush1.bf16.msra.mxu0 %v2417_v18  ;;  %v1175_v18 = vld [vmem:[#allocation10 + $0x20] sm:$0xff] }
 0x1ef   :  { %2420 = vmatprep.subr.bf16.mxu0 %v2419_v19  ;;  %v1171_v19 = vld [vmem:[#allocation10] sm:$0xff]  ;;  %v2491_v20 = vpack.c.bf16 %v1175_v18, %v1172_v17  ;;  %v1214_v18 = vld [vmem:[#allocation10 + $0x158] sm:$0xff] }
 0x1f1   :  { %2492 = vmatprep.subr.bf16.mxu1 %v2491_v20  ;;  %v1191_v20 = vld [vmem:[#allocation10 + $0xa0] sm:$0xff] }
 0x1f2   :  { %2422 = vmatpush1.bf16.msra.mxu0 %v2421_v24  ;;  %v2493_v24 = vpack.c.bf16 %v1174_v21, %v1171_v19  ;;  %v2599_v19 = vpack.c.bf16 %v1242_v12, %v1239_v11  ;;  %v1194_v21 = vld [vmem:[#allocation10 + $0xb8] sm:$0xff] }
 0x1f3   :  { %2424 = vmatprep.subr.bf16.mxu0 %v2423_v25  ;;  %v2495_v25 = vpack.c.bf16 %v1181_v23, %v1178_v22  ;;  %v1217_v22 = vld [vmem:[#allocation10 + $0x170] sm:$0xff]  ;;  %v1246_v11 = vld [vmem:[#allocation10 + $0x258] sm:$0xff] }
 0x1f4   :  { %2494 = vmatpush1.bf16.msra.mxu1 %v2493_v24  ;;  %v1245_v23 = vld [vmem:[#allocation10 + $0x250] sm:$0xff]  ;;  %v1248_v24 = vld [vmem:[#allocation10 + $0x268] sm:$0xff]  ;;  %v1250_v12 = vld [vmem:[#allocation10 + $0x278] sm:$0xff] }
 0x1f5   :  { %2496 = vmatprep.subr.bf16.mxu1 %v2495_v25  ;;  %v2517_v25 = vpack.c.bf16 %v1210_v15, %v1207_v14 }
 0x1f6   :  { %2426 = vmatpush1.bf16.msra.mxu0 %v2425_v30  ;;  %v1187_v30 = vld [vmem:[#allocation10 + $0x80] sm:$0xff] }
 0x1f7   :  { %2428 = vmatprep.subr.bf16.mxu0 %v2427_v31  ;;  %v2497_v31 = vpack.c.bf16 %v1180_v27, %v1177_v26  ;;  %v2499_v32 = vpack.c.bf16 %v1187_v30, %v1184_v28  ;;  %v1213_v26 = vld [vmem:[#allocation10 + $0x150] sm:$0xff]  ;;  %v1216_v27 = vld [vmem:[#allocation10 + $0x168] sm:$0xff]  ;;  %v2601_v28 = vpack.c.bf16 %v1194_v21, %v1191_v20 }
 0x1f8   :  { %v1220_v30 = vld [vmem:[#allocation10 + $0x188] sm:$0xff] }
 0x1f9   :  { %1022 = vmatmul.mubr.f32.vlgmr.msra.gmra.mrb[2].mxu0 %v675_v54  ;;  %v2441_v54 = vpack.c.bf16 %v700_v59, %v697_v58  ;;  %2498 = vmatpush1.bf16.msra.mxu1 %v2497_v31  ;;  %v1198_v58 = vld [vmem:[#allocation10 + $0xd8] sm:$0xff]  ;;  %v2603_v31 = vpack.c.bf16 %v1248_v24, %v1245_v23  ;;  %v1209_v24 = vld [vmem:[#allocation10 + $0x130] sm:$0xff] }
 0x1fa   :  { %2430 = vmatpush3.bf16.msra.mxu0 %v2429_v8  ;;  %1092 = vmatprep.mubr.f32.mxu0 %v674_v55  ;;  %v703_v55 = vld [vmem:[#allocation9 + $0xd0] sm:$0xff]  ;;  %v1202_v59 = vld [vmem:[#allocation10 + $0xf8] sm:$0xff]  ;;  %v2509_v62 = vpack.c.bf16 %v1198_v58, %v1195_v51 }
 0x1fb   :  { %2432 = vmatprep.subr.bf16.mxu0 %v2431_v39  ;;  %v2445_v0 = vpack.c.bf16 %v706_v61, %v703_v55  ;;  %v1193_v8 = vld [vmem:[#allocation10 + $0xb0] sm:$0xff]  ;;  %v2501_v39 = vpack.c.bf16 %v1186_v35, %v1183_v33  ;;  %2500 = vmatprep.subr.bf16.mxu1 %v2499_v32  ;;  %v1179_v55 = vld [vmem:[#allocation10 + $0x40] sm:$0xff]  ;;  %v1182_v61 = vld [vmem:[#allocation10 + $0x58] sm:$0xff]  ;;  %v2511_v2 = vpack.c.bf16 %v1205_v48, %v1202_v59 }
 0x1fc   :  { %v2503_v40 = vpack.c.bf16 %v1193_v8, %v1190_v38  ;;  %v1197_v32 = vld [vmem:[#allocation10 + $0xd0] sm:$0xff]  ;;  %v1200_v33 = vld [vmem:[#allocation10 + $0xe8] sm:$0xff]  ;;  %v1223_v35 = vld [vmem:[#allocation10 + $0x1a0] sm:$0xff] }
 0x1fd   :  { %2502 = vmatpush1.bf16.msra.mxu1 %v2501_v39  ;;  %v1251_v38 = vld [vmem:[#allocation10 + $0x280] sm:$0xff]  ;;  %v1254_v8 = vld [vmem:[#allocation10 + $0x298] sm:$0xff]  ;;  %v2521_v39 = vpack.c.bf16 %v1216_v27, %v1213_v26  ;;  %v2605_v42 = vpack.c.bf16 %v1200_v33, %v1197_v32  ;;  %v1229_v51 = vld [vmem:[#allocation10 + $0x1d0] sm:$0xff] }
 0x1fe   :  { %2434 = vmatpush3.bf16.msra.mxu0 %v2433_v45  ;;  %v1199_v45 = vld [vmem:[#allocation10 + $0xe0] sm:$0xff]  ;;  %2504 = vmatprep.subr.bf16.mxu1 %v2503_v40  ;;  %v1228_v48 = vld [vmem:[#allocation10 + $0x1c8] sm:$0xff]  ;;  %v1258_v23 = vld [vmem:[#allocation10 + $0x2b8] sm:$0xff] }
 0x1ff   :  { %2436 = vmatprep.subr.bf16.mxu0 %v2435_v46  ;;  %v1221_v46 = vld [vmem:[#allocation10 + $0x190] sm:$0xff]  ;;  %v1219_v40 = vld [vmem:[#allocation10 + $0x180] sm:$0xff]  ;;  %v1212_v26 = vld [vmem:[#allocation10 + $0x148] sm:$0xff] }
 0x200   :  { %v2587_v52 = vpack.c.bf16 %v1224_v47, %v1221_v46  ;;  %v2607_v46 = vpack.c.bf16 %v1254_v8, %v1251_v38  ;;  %v1203_v47 = vld [vmem:[#allocation10 + $0x100] sm:$0xff]  ;;  %v2613_v27 = vpack.c.bf16 %v1212_v26, %v1209_v24  ;;  %v1266_v32 = vld [vmem:[#allocation10 + $0x2f8] sm:$0xff]  ;;  %v1261_v33 = vld [vmem:[#allocation10 + $0x2d0] sm:$0xff] }
 0x201   :  { %2506 = vmatpush1.bf16.msra.mxu1 %v2505_v50  ;;  %v1206_v50 = vld [vmem:[#allocation10 + $0x118] sm:$0xff]  ;;  %v1288_v24 = vld [vmem:[#allocation10 + $0x3a8] sm:$0xff] }
 0x202   :  { %2438 = vmatpush3.bf16.msra.mxu0 %v2437_v53  ;;  %v1173_v53 = vld [vmem:[#allocation10 + $0x10] sm:$0xff]  ;;  %v2609_v58 = vpack.c.bf16 %v1206_v50, %v1203_v47  ;;  %v1290_v26 = vld [vmem:[#allocation10 + $0x3b8] sm:$0xff] }
 0x203   :  { %2440 = vmatprep.subr.bf16.mxu0 %v2439_v56  ;;  %v2507_v56 = vpack.c.bf16 %v1199_v45, %v1196_v44  ;;  %v2523_v44 = vpack.c.bf16 %v1223_v35, %v1220_v30  ;;  %v1226_v45 = vld [vmem:[#allocation10 + $0x1b8] sm:$0xff]  ;;  %v1263_v30 = vld [vmem:[#allocation10 + $0x2e0] sm:$0xff]  ;;  %v1264_v35 = vld [vmem:[#allocation10 + $0x2e8] sm:$0xff] }
 0x204   :  { %v2527_v59 = vpack.c.bf16 %v1229_v51, %v1226_v45  ;;  %v2615_v38 = vpack.c.bf16 %v1266_v32, %v1263_v30  ;;  %v2553_v8 = vpack.c.bf16 %v1264_v35, %v1261_v33  ;;  %v1294_v33 = vld [vmem:[#allocation10 + $0x3d8] sm:$0xff]  ;;  %v1293_v35 = vld [vmem:[#allocation10 + $0x3d0] sm:$0xff] }
 0x205   :  { %2508 = vmatprep.subr.bf16.mxu1 %v2507_v56  ;;  %v2525_v56 = vpack.c.bf16 %v1222_v41, %v1219_v40  ;;  %v1218_v40 = vld [vmem:[#allocation10 + $0x178] sm:$0xff] }
 0x206   :  { %2442 = vmatpush3.bf16.msra.mxu0 %v2441_v54  ;;  %v2589_v54 = vpack.c.bf16 %v1176_v60, %v1173_v53  ;;  %2510 = vmatpush1.bf16.msra.mxu1 %v2509_v62  ;;  %v1260_v53 = vld [vmem:[#allocation10 + $0x2c8] sm:$0xff]  ;;  %v1225_v60 = vld [vmem:[#allocation10 + $0x1b0] sm:$0xff]  ;;  %v1234_v62 = vld [vmem:[#allocation10 + $0x1f8] sm:$0xff] }
 0x207   :  { %2444 = vmatprep.subr.bf16.mxu0 %v2443_v49  ;;  %v1227_v49 = vld [vmem:[#allocation10 + $0x1c0] sm:$0xff]  ;;  %2512 = vmatprep.subr.bf16.mxu1 %v2511_v2 }
 0x20a   :  { %2446 = vmatpush3.bf16.msra.mxu0 %v2445_v0  ;;  %v2593_v0 = vpack.c.bf16 %v1182_v61, %v1179_v55  ;;  %v1231_v61 = vld [vmem:[#allocation10 + $0x1e0] sm:$0xff] }
 0x20b   :  { %2448 = vmatprep.subr.bf16.mxu0 %v2447_v1  ;;  %v1233_v1 = vld [vmem:[#allocation10 + $0x1f0] sm:$0xff] }
 0x20e   :  { %2450 = vmatpush3.bf16.msra.mxu0 %v2449_v6  ;;  %v1211_v6 = vld [vmem:[#allocation10 + $0x140] sm:$0xff] }
 0x20f   :  { %2452 = vmatprep.subr.bf16.mxu0 %v2451_v7  ;;  %v2595_v7 = vpack.c.bf16 %v1236_v5, %v1233_v1  ;;  %v2515_v17 = vpack.c.bf16 %v1211_v6, %v1208_v4  ;;  %v2533_v1 = vpack.c.bf16 %v1234_v62, %v1231_v61  ;;  %v1240_v4 = vld [vmem:[#allocation10 + $0x228] sm:$0xff]  ;;  %v1247_v6 = vld [vmem:[#allocation10 + $0x260] sm:$0xff]  ;;  %v1277_v61 = vld [vmem:[#allocation10 + $0x350] sm:$0xff] }
 0x210   :  { %v1244_v5 = vld [vmem:[#allocation10 + $0x248] sm:$0xff] }
 0x212   :  { %2454 = vmatpush3.bf16.msra.mxu0 %v2453_v13  ;;  %v2513_v13 = vpack.c.bf16 %v1204_v3, %v1201_v63  ;;  %v1238_v63 = vld [vmem:[#allocation10 + $0x218] sm:$0xff]  ;;  %v1237_v3 = vld [vmem:[#allocation10 + $0x210] sm:$0xff] }
 0x213   :  { %2456 = vmatprep.subr.bf16.mxu0 %v2455_v16  ;;  %v2597_v16 = vpack.c.bf16 %v1188_v10, %v1185_v9  ;;  %v2539_v9 = vpack.c.bf16 %v1247_v6, %v1244_v5  ;;  %v1243_v10 = vld [vmem:[#allocation10 + $0x240] sm:$0xff]  ;;  %v1278_v6 = vld [vmem:[#allocation10 + $0x358] sm:$0xff] }
 0x214   :  { %2514 = vmatpush1.bf16.msra.mxu1 %v2513_v13  ;;  %v1253_v13 = vld [vmem:[#allocation10 + $0x290] sm:$0xff]  ;;  %v2541_v14 = vpack.c.bf16 %v1246_v11, %v1243_v10  ;;  %v1275_v5 = vld [vmem:[#allocation10 + $0x340] sm:$0xff] }
 0x215   :  { %2516 = vmatprep.subr.bf16.mxu1 %v2515_v17  ;;  %v2543_v15 = vpack.c.bf16 %v1253_v13, %v1250_v12  ;;  %v1252_v17 = vld [vmem:[#allocation10 + $0x288] sm:$0xff]  ;;  %v2623_v11 = vpack.c.bf16 %v1278_v6, %v1275_v5  ;;  %v1279_v12 = vld [vmem:[#allocation10 + $0x360] sm:$0xff]  ;;  %v1620_v5 = vld [vmem:[#allocation12 + $0x18] sm:$0xff] }
 0x216   :  { %2458 = vmatpush3.bf16.msra.mxu0 %v2457_v29  ;;  %v2519_v29 = vpack.c.bf16 %v1217_v22, %v1214_v18  ;;  %v1256_v18 = vld [vmem:[#allocation10 + $0x2a8] sm:$0xff]  ;;  %v1255_v22 = vld [vmem:[#allocation10 + $0x2a0] sm:$0xff] }
 0x217   :  { %2588 = vmatprep.subr.bf16.mxu0 %v2587_v52  ;;  %v1257_v52 = vld [vmem:[#allocation10 + $0x2b0] sm:$0xff] }
 0x218   :  { %2518 = vmatpush1.bf16.msra.mxu1 %v2517_v25  ;;  %v2549_v25 = vpack.c.bf16 %v1258_v23, %v1255_v22  ;;  %v1285_v22 = vld [vmem:[#allocation10 + $0x390] sm:$0xff] }
 0x219   :  { %1093 = vmatmul.mubr.f32.vlgmr.msra.gmra.mrb[4].mxu0 %v673_v57  ;;  %v2591_v57 = vpack.c.bf16 %v1230_v43, %v1227_v49  ;;  %2520 = vmatprep.subr.bf16.mxu1 %v2519_v29  ;;  %v1232_v49 = vld [vmem:[#allocation10 + $0x1e8] sm:$0xff]  ;;  %v1235_v43 = vld [vmem:[#allocation10 + $0x200] sm:$0xff]  ;;  %v1265_v29 = vld [vmem:[#allocation10 + $0x2f0] sm:$0xff] }
 0x21a   :  { %2590 = vmatpush3.bf16.msra.mxu0 %v2589_v54  ;;  %v2611_v54 = vpack.c.bf16 %v1260_v53, %v1257_v52  ;;  %v2531_v55 = vpack.c.bf16 %v1235_v43, %v1232_v49  ;;  %v3098_v52 = vld [vmem:[%s3148_s5] sm:$0x7]  ;;  %v1269_v49 = vld [vmem:[#allocation10 + $0x310] sm:$0xff]  ;;  %v1272_v43 = vld [vmem:[#allocation10 + $0x328] sm:$0xff] }
 0x21b   :  { %2592 = vmatprep.subr.bf16.mxu0 %v2591_v57  ;;  %v2529_v57 = vpack.c.bf16 %v1228_v48, %v1225_v60  ;;  %v874_v53 = vrot.slane %v3098_v52, %v3059_v34 }
 0x21c   :  { %2522 = vmatpush1.bf16.msra.mxu1 %v2521_v39  ;;  %v1215_v39 = vld [vmem:[#allocation10 + $0x160] sm:$0xff] }
 0x21d   :  { %2524 = vmatprep.subr.bf16.mxu1 %v2523_v44  ;;  %v2617_v41 = vpack.c.bf16 %v1218_v40, %v1215_v39  ;;  %v1271_v44 = vld [vmem:[#allocation10 + $0x320] sm:$0xff]  ;;  %v1301_v39 = vld [vmem:[#allocation10 + $0x410] sm:$0xff] }
 0x21e   :  { %2594 = vmatpush3.bf16.msra.mxu0 %v2593_v0  ;;  %v1241_v0 = vld [vmem:[#allocation10 + $0x230] sm:$0xff] }
 0x21f   :  { %2596 = vmatprep.subr.bf16.mxu0 %v2595_v7  ;;  %v2535_v2 = vpack.c.bf16 %v1241_v0, %v1238_v63  ;;  %v2537_v7 = vpack.c.bf16 %v1240_v4, %v1237_v3  ;;  %v2620_v0 = vpack.c.bf16 %v1272_v43, %v1269_v49  ;;  %v1276_v4 = vld [vmem:[#allocation10 + $0x348] sm:$0xff]  ;;  %v1305_v49 = vld [vmem:[#allocation10 + $0x430] sm:$0xff] }
 0x220   :  { %2526 = vmatpush1.bf16.msra.mxu1 %v2525_v56  ;;  %v878_v56 = vrot.slane %v3098_v52, %v3066_v37  ;;  %v1308_v43 = vld [vmem:[#allocation10 + $0x448] sm:$0xff] }
 0x221   :  { %2528 = vmatprep.subr.bf16.mxu1 %v2527_v59  ;;  %v1267_v59 = vld [vmem:[#allocation10 + $0x300] sm:$0xff] }
 0x222   :  { %2598 = vmatpush3.bf16.msra.mxu0 %v2597_v16  ;;  %v1249_v16 = vld [vmem:[#allocation10 + $0x270] sm:$0xff] }
 0x223   :  { %2600 = vmatprep.subr.bf16.mxu0 %v2599_v19  ;;  %v1259_v19 = vld [vmem:[#allocation10 + $0x2c0] sm:$0xff]  ;;  %v2545_v20 = vpack.c.bf16 %v1252_v17, %v1249_v16  ;;  %v1284_v16 = vld [vmem:[#allocation10 + $0x388] sm:$0xff]  ;;  %v1286_v17 = vld [vmem:[#allocation10 + $0x398] sm:$0xff] }
 0x224   :  { %2530 = vmatpush1.bf16.msra.mxu1 %v2529_v57  ;;  %v2547_v21 = vpack.c.bf16 %v1259_v19, %v1256_v18  ;;  %v1289_v18 = vld [vmem:[#allocation10 + $0x3b0] sm:$0xff]  ;;  %v2926_v19 = vmov 0.0  }
 0x225   :  { %2532 = vmatprep.subr.bf16.mxu1 %v2531_v55  ;;  %v1274_v55 = vld [vmem:[#allocation10 + $0x338] sm:$0xff]  ;;  %v2567_v23 = vpack.c.bf16 %v1289_v18, %v1286_v17  ;;  %v1622_v17 = vld [vmem:[#allocation12 + $0x28] sm:$0xff] }
 0x226   :  { %2602 = vmatpush3.bf16.msra.mxu0 %v2601_v28  ;;  %v1262_v28 = vld [vmem:[#allocation10 + $0x2d8] sm:$0xff]  ;;  %v2559_v3 = vpack.c.bf16 %v1277_v61, %v1274_v55  ;;  %v1313_v55 = vld [vmem:[#allocation10 + $0x470] sm:$0xff] }
 0x227   :  { %2604 = vmatprep.subr.bf16.mxu0 %v2603_v31  ;;  %v2551_v31 = vpack.c.bf16 %v1265_v29, %v1262_v28  ;;  %v1295_v28 = vld [vmem:[#allocation10 + $0x3e0] sm:$0xff]  ;;  %v2569_v29 = vpack.c.bf16 %v1288_v24, %v1285_v22  ;;  %v1624_v18 = vld [vmem:[#allocation12 + $0x38] sm:$0xff]  ;;  %v1623_v24 = vld [vmem:[#allocation12 + $0x30] sm:$0xff] }
 0x228   :  { %2534 = vmatpush1.bf16.msra.mxu1 %v2533_v1  ;;  %v1273_v1 = vld [vmem:[#allocation10 + $0x330] sm:$0xff]  ;;  %v2647_v22 = vpack.c.bf16 %v1624_v18, %v1622_v17  ;;  %v1657_v17 = vld [vmem:[#allocation12 + $0x140] sm:$0xff] }
 0x229   :  { %2536 = vmatprep.subr.bf16.mxu1 %v2535_v2  ;;  %v2561_v10 = vpack.c.bf16 %v1276_v4, %v1273_v1  ;;  %v1312_v1 = vld [vmem:[#allocation10 + $0x468] sm:$0xff]  ;;  %v1659_v18 = vld [vmem:[#allocation12 + $0x150] sm:$0xff] }
 0x22a   :  { %2606 = vmatpush3.bf16.msra.mxu0 %v2605_v42  ;;  %v1268_v42 = vld [vmem:[#allocation10 + $0x308] sm:$0xff] }
 0x22b   :  { %2608 = vmatprep.subr.bf16.mxu0 %v2607_v46  ;;  %v2555_v45 = vpack.c.bf16 %v1271_v44, %v1268_v42  ;;  %v2925_v46 = vmov 0.0|0.0   ;;  %v1297_v42 = vld [vmem:[#allocation10 + $0x3f0] sm:$0xff]  ;;  %v1618_v4 = vld [vmem:[#allocation12 + $0x8] sm:$0xff] }
 0x22c   :  { %2538 = vmatpush1.bf16.msra.mxu1 %v2537_v7  ;;  %v1280_v7 = vld [vmem:[#allocation10 + $0x368] sm:$0xff] }
 0x22d   :  { %2540 = vmatprep.subr.bf16.mxu1 %v2539_v9  ;;  %v1283_v9 = vld [vmem:[#allocation10 + $0x380] sm:$0xff] }
 0x22e   :  { %2610 = vmatpush3.bf16.msra.mxu0 %v2609_v58  ;;  %v2563_v13 = vpack.c.bf16 %v1283_v9, %v1280_v7  ;;  %v882_v7 = vrot.slane %v3098_v52, %v3064_v36 }
 0x22f   :  { %2612 = vmatprep.subr.bf16.mxu0 %v2611_v54  ;;  %v1270_v54 = vld [vmem:[#allocation10 + $0x318] sm:$0xff] }
 0x230   :  { %2542 = vmatpush1.bf16.msra.mxu1 %v2541_v14  ;;  %v2557_v63 = vpack.c.bf16 %v1270_v54, %v1267_v59  ;;  %v1282_v14 = vld [vmem:[#allocation10 + $0x378] sm:$0xff] }
 0x231   :  { %2544 = vmatprep.subr.bf16.mxu1 %v2543_v15  ;;  %v1281_v15 = vld [vmem:[#allocation10 + $0x370] sm:$0xff]  ;;  %v1306_v54 = vld [vmem:[#allocation10 + $0x438] sm:$0xff] }
 0x232   :  { %2614 = vmatpush3.bf16.msra.mxu0 %v2613_v27  ;;  %v1292_v27 = vld [vmem:[#allocation10 + $0x3c8] sm:$0xff] }
 0x233   :  { %2616 = vmatprep.subr.bf16.mxu0 %v2615_v38  ;;  %v2571_v32 = vpack.c.bf16 %v1295_v28, %v1292_v27  ;;  %v1296_v38 = vld [vmem:[#allocation10 + $0x3e8] sm:$0xff]  ;;  %v1625_v28 = vld [vmem:[#allocation12 + $0x40] sm:$0xff] }
 0x234   :  { %2546 = vmatpush1.bf16.msra.mxu1 %v2545_v20  ;;  %v2565_v20 = vpack.c.bf16 %v1282_v14, %v1279_v12  ;;  %v2643_v12 = vpack.c.bf16 %v1620_v5, %v1618_v4  ;;  %v1649_v4 = vld [vmem:[#allocation12 + $0x100] sm:$0xff]  ;;  %v1651_v5 = vld [vmem:[#allocation12 + $0x110] sm:$0xff] }
 0x235   :  { %2548 = vmatprep.subr.bf16.mxu1 %v2547_v21  ;;  %v2626_v21 = vpack.c.bf16 %v1284_v16, %v1281_v15  ;;  %v1617_v15 = vld [vmem:[#allocation12] sm:$0xff]  ;;  %v1619_v16 = vld [vmem:[#allocation12 + $0x10] sm:$0xff] }
 0x236   :  { %2618 = vmatpush3.bf16.msra.mxu0 %v2617_v41  ;;  %v2632_v41 = vpack.c.bf16 %v1296_v38, %v1293_v35  ;;  %v1631_v35 = vld [vmem:[#allocation12 + $0x70] sm:$0xff]  ;;  %v1634_v38 = vld [vmem:[#allocation12 + $0x88] sm:$0xff] }
 0x237   :  { %2619 = vmatprep.subr.bf16.mxu0 %v2925_v46 }
 0x238   :  { %2550 = vmatpush1.bf16.msra.mxu1 %v2549_v25  ;;  %v1287_v25 = vld [vmem:[#allocation10 + $0x3a0] sm:$0xff] }
 0x239   :  { %2552 = vmatprep.subr.bf16.mxu1 %v2551_v31  ;;  %v2629_v30 = vpack.c.bf16 %v1290_v26, %v1287_v25  ;;  %v1291_v31 = vld [vmem:[#allocation10 + $0x3c0] sm:$0xff]  ;;  %v1626_v25 = vld [vmem:[#allocation12 + $0x48] sm:$0xff]  ;;  %v1628_v26 = vld [vmem:[#allocation12 + $0x58] sm:$0xff] }
 0x23a   :  { %v2573_v40 = vpack.c.bf16 %v1294_v33, %v1291_v31  ;;  %v2651_v27 = vpack.c.bf16 %v1628_v26, %v1626_v25  ;;  %v1632_v31 = vld [vmem:[#allocation12 + $0x78] sm:$0xff]  ;;  %v1629_v33 = vld [vmem:[#allocation12 + $0x60] sm:$0xff]  ;;  %v1666_v25 = vld [vmem:[#allocation12 + $0x188] sm:$0xff] }
 0x23b   :  { %v1668_v26 = vld [vmem:[#allocation12 + $0x198] sm:$0xff] }
 0x23c   :  { %2554 = vmatpush1.bf16.msra.mxu1 %v2553_v8  ;;  %v1298_v8 = vld [vmem:[#allocation10 + $0x3f8] sm:$0xff] }
 0x23d   :  { %2556 = vmatprep.subr.bf16.mxu1 %v2555_v45  ;;  %v2575_v44 = vpack.c.bf16 %v1301_v39, %v1298_v8  ;;  %v1300_v45 = vld [vmem:[#allocation10 + $0x408] sm:$0xff]  ;;  %v1636_v8 = vld [vmem:[#allocation12 + $0x98] sm:$0xff]  ;;  %v2657_v39 = vpack.c.bf16 %v1631_v35, %v1629_v33  ;;  %v1669_v33 = vld [vmem:[#allocation12 + $0x1a0] sm:$0xff] }
 0x23e   :  { %v1671_v35 = vld [vmem:[#allocation12 + $0x1b0] sm:$0xff] }
 0x28d   :  { %v1953_v47 = vpop.f32.mrb[2].mxu1 }
 0x28e   :  { %v1954_v50 = vpop.f32.mrb[3].mxu1 }
 0x28f   :  { %v3093_v51 = vadd.f32 %v1954_v50, %v1953_v47  ;;  %v1299_v47 = vld [vmem:[#allocation10 + $0x400] sm:$0xff]  ;;  %v1302_v50 = vld [vmem:[#allocation10 + $0x418] sm:$0xff] }
 0x290   :  { %v2635_v59 = vpack.c.bf16 %v1302_v50, %v1299_v47 }
 0x2cc   :  { %v1023_v58 = vpop.f32.mrb[2].mxu0 }
 0x2cd   :  { %v2743_v60 = vadd.f32 %v1023_v58, %v874_v53  ;;  %v1025_v48 = vpop.f32.mrb[3].mxu0  ;;  %v1304_v53 = vld [vmem:[#allocation10 + $0x428] sm:$0xff]  ;;  %v2577_v58 = vpack.c.bf16 %v1300_v45, %v1297_v42  ;;  %v1635_v42 = vld [vmem:[#allocation12 + $0x90] sm:$0xff]  ;;  %v1640_v45 = vld [vmem:[#allocation12 + $0xb8] sm:$0xff] }
 0x2ce   :  { %v2744_v57 = vadd.f32 %v1025_v48, %v878_v56  ;;  %v1307_v56 = vld [vmem:[#allocation10 + $0x440] sm:$0xff] }
 0x2cf   :  { %v1168_v2 = vmax.f32 %v2743_v60, 0.0  ;;  %v1303_v60 = vld [vmem:[#allocation10 + $0x420] sm:$0xff]  ;;  %v2579_v48 = vpack.c.bf16 %v1307_v56, %v1304_v53  ;;  %v1639_v56 = vld [vmem:[#allocation12 + $0xb0] sm:$0xff] }
 0x2d0   :  { %v1169_v62 = vmax.f32 %v2744_v57, 0.0  ;;  %v1310_v57 = vld [vmem:[#allocation10 + $0x458] sm:$0xff]  ;;  %v2581_v61 = vpack.c.bf16 %v1306_v54, %v1303_v60  ;;  %v1637_v53 = vld [vmem:[#allocation12 + $0xa0] sm:$0xff] }
 0x2d1   :  { %v1644_v60 = vld [vmem:[#allocation12 + $0xd8] sm:$0xff]  ;;  %v1641_v54 = vld [vmem:[#allocation12 + $0xc0] sm:$0xff] }
 0x2d2   :  { %1396 = vmatprep.mubr.f32.mxu1 %v1169_v62  ;;  %1538 = vmatprep.mubr.f32.mxu0 %v1169_v62  ;;  %v2638_v62 = vpack.c.bf16 %v1308_v43, %v1305_v49  ;;  %v1643_v49 = vld [vmem:[#allocation12 + $0xd0] sm:$0xff] }
 0x2d3   :  { %1397 = vmatmul.mubr.f32.vlgmr.msra.gmra.mrb[4].mxu1 %v1168_v2  ;;  %1539 = vmatmul.mubr.f32.vlgmr.msra.gmra.mrb[6].mxu0 %v1168_v2  ;;  %v1311_v2 = vld [vmem:[#allocation10 + $0x460] sm:$0xff]  ;;  %v2669_v43 = vpack.c.bf16 %v1643_v49, %v1641_v54 }
 0x2d4   :  { %2558 = vmatpush1.bf16.msra.mxu1 %v2557_v63  ;;  %2621 = vmatpush3.bf16.msra.mxu0 %v2620_v0  ;;  %v1309_v63 = vld [vmem:[#allocation10 + $0x450] sm:$0xff]  ;;  %v2583_v0 = vpack.c.bf16 %v1313_v55, %v1310_v57  ;;  %v1646_v57 = vld [vmem:[#allocation12 + $0xe8] sm:$0xff]  ;;  %v1648_v55 = vld [vmem:[#allocation12 + $0xf8] sm:$0xff] }
 0x2d5   :  { %2560 = vmatprep.subr.bf16.mxu1 %v2559_v3  ;;  %2622 = vmatprep.subr.bf16.mxu0 %v2925_v46  ;;  %v1314_v3 = vld [vmem:[#allocation10 + $0x478] sm:$0xff]  ;;  %v2585_v9 = vpack.c.bf16 %v1312_v1, %v1309_v63  ;;  %v1647_v63 = vld [vmem:[#allocation12 + $0xf0] sm:$0xff] }
 0x2d6   :  { %1467 = vmatprep.mubr.f32.mxu1 %v2926_v19  ;;  %2040 = vmatprep.mubr.msk.f32.mxu0 %vm2927_vm0, %v2926_v19  ;;  %v1652_v1 = vld [vmem:[#allocation12 + $0x118] sm:$0xff] }
 0x2d8   :  { %2562 = vmatpush1.bf16.msra.mxu1 %v2561_v10  ;;  %2624 = vmatpush3.bf16.msra.mxu0 %v2623_v11  ;;  %v2641_v10 = vpack.c.bf16 %v1314_v3, %v1311_v2 }
 0x2d9   :  { %2564 = vmatprep.subr.bf16.mxu1 %v2563_v13  ;;  %2625 = vmatprep.subr.bf16.mxu0 %v2925_v46 }
 0x2dc   :  { %2566 = vmatpush1.bf16.msra.mxu1 %v2565_v20  ;;  %2627 = vmatpush3.bf16.msra.mxu0 %v2626_v21  ;;  %v2645_v20 = vpack.c.bf16 %v1619_v16, %v1617_v15 }
 0x2dd   :  { %2568 = vmatprep.subr.bf16.mxu1 %v2567_v23  ;;  %2628 = vmatprep.subr.bf16.mxu0 %v2925_v46  ;;  %v1621_v23 = vld [vmem:[#allocation12 + $0x20] sm:$0xff] }
 0x2e0   :  { %2570 = vmatpush1.bf16.msra.mxu1 %v2569_v29  ;;  %2630 = vmatpush3.bf16.msra.mxu0 %v2629_v30  ;;  %v1627_v29 = vld [vmem:[#allocation12 + $0x50] sm:$0xff]  ;;  %v1630_v30 = vld [vmem:[#allocation12 + $0x68] sm:$0xff] }
 0x2e1   :  { %2572 = vmatprep.subr.bf16.mxu1 %v2571_v32  ;;  %2631 = vmatprep.subr.bf16.mxu0 %v2925_v46  ;;  %v2653_v32 = vpack.c.bf16 %v1627_v29, %v1625_v28  ;;  %v1665_v28 = vld [vmem:[#allocation12 + $0x180] sm:$0xff]  ;;  %v1667_v29 = vld [vmem:[#allocation12 + $0x190] sm:$0xff] }
 0x2e4   :  { %2574 = vmatpush1.bf16.msra.mxu1 %v2573_v40  ;;  %2633 = vmatpush3.bf16.msra.mxu0 %v2632_v41  ;;  %v2659_v40 = vpack.c.bf16 %v1636_v8, %v1634_v38  ;;  %v1633_v41 = vld [vmem:[#allocation12 + $0x80] sm:$0xff]  ;;  %v1674_v38 = vld [vmem:[#allocation12 + $0x1c8] sm:$0xff]  ;;  %v1676_v8 = vld [vmem:[#allocation12 + $0x1d8] sm:$0xff] }
 0x2e5   :  { %2576 = vmatprep.subr.bf16.mxu1 %v2575_v44  ;;  %2634 = vmatprep.subr.bf16.mxu0 %v2925_v46  ;;  %v1638_v44 = vld [vmem:[#allocation12 + $0xa8] sm:$0xff]  ;;  %v2661_v47 = vpack.c.bf16 %v1635_v42, %v1633_v41  ;;  %v1673_v41 = vld [vmem:[#allocation12 + $0x1c0] sm:$0xff]  ;;  %v1675_v42 = vld [vmem:[#allocation12 + $0x1d0] sm:$0xff] }
 0x2e6   :  { %v2663_v50 = vpack.c.bf16 %v1640_v45, %v1638_v44  ;;  %v2701_v44 = vpack.c.bf16 %v1675_v42, %v1673_v41  ;;  %v1678_v45 = vld [vmem:[#allocation12 + $0x1e8] sm:$0xff]  ;;  %v1708_v41 = vld [vmem:[#allocation12 + $0x2d8] sm:$0xff] }
 0x2e8   :  { %2578 = vmatpush1.bf16.msra.mxu1 %v2577_v58  ;;  %2636 = vmatpush3.bf16.msra.mxu0 %v2635_v59  ;;  %v2665_v58 = vpack.c.bf16 %v1639_v56, %v1637_v53  ;;  %v1642_v59 = vld [vmem:[#allocation12 + $0xc8] sm:$0xff]  ;;  %v1677_v53 = vld [vmem:[#allocation12 + $0x1e0] sm:$0xff]  ;;  %v1679_v56 = vld [vmem:[#allocation12 + $0x1f0] sm:$0xff] }
 0x2e9   :  { %2580 = vmatprep.subr.bf16.mxu1 %v2579_v48  ;;  %2637 = vmatprep.subr.bf16.mxu0 %v2925_v46  ;;  %v2667_v48 = vpack.c.bf16 %v1644_v60, %v1642_v59  ;;  %v1682_v59 = vld [vmem:[#allocation12 + $0x208] sm:$0xff]  ;;  %v1684_v60 = vld [vmem:[#allocation12 + $0x218] sm:$0xff] }
 0x2ec   :  { %v1918_v6 = vpop.f32.mrb[4].mxu0  ;;  %2582 = vmatpush1.bf16.msra.mxu1 %v2581_v61  ;;  %2639 = vmatpush3.bf16.msra.mxu0 %v2638_v62  ;;  %v1645_v61 = vld [vmem:[#allocation12 + $0xe0] sm:$0xff]  ;;  %v2671_v62 = vpack.c.bf16 %v1648_v55, %v1646_v57 }
 0x2ed   :  { %v1919_v11 = vpop.f32.mrb[5].mxu0  ;;  %2584 = vmatprep.subr.bf16.mxu1 %v2583_v0  ;;  %2640 = vmatprep.subr.bf16.mxu0 %v2925_v46  ;;  %v2649_v46 = vpack.c.bf16 %v1623_v24, %v1621_v23  ;;  %v1650_v0 = vld [vmem:[#allocation12 + $0x108] sm:$0xff]  ;;  %v2673_v2 = vpack.c.bf16 %v1647_v63, %v1645_v61  ;;  %v1661_v23 = vld [vmem:[#allocation12 + $0x160] sm:$0xff]  ;;  %v1663_v24 = vld [vmem:[#allocation12 + $0x170] sm:$0xff] }
 0x2ee   :  { %v1920_v13 = vadd.f32 %v1919_v11, %v1918_v6  ;;  %v2675_v3 = vpack.c.bf16 %v1652_v1, %v1650_v0  ;;  %v1654_v6 = vld [vmem:[#allocation12 + $0x128] sm:$0xff]  ;;  %v1653_v11 = vld [vmem:[#allocation12 + $0x120] sm:$0xff] }
 0x2ef   :  { %v1315_v57 = vld [vmem:[%s3150_s7] sm:$0x7] }
 0x2f0   :  { %v1095_v14 = vadd.f32 %v1920_v13, %v882_v7  ;;  %2586 = vmatpush1.bf16.msra.mxu1 %v2585_v9  ;;  %2642 = vmatpush3.bf16.msra.mxu0 %v2641_v10  ;;  %v1656_v7 = vld [vmem:[#allocation12 + $0x138] sm:$0xff]  ;;  %v2677_v9 = vpack.c.bf16 %v1651_v5, %v1649_v4  ;;  %v1658_v13 = vld [vmem:[#allocation12 + $0x148] sm:$0xff]  ;;  %v1328_v55 = vrot.slane %v1315_v57, %v3064_v36 }
 0x2f1   :  { %2644 = vmatprep.subr.bf16.mxu1 %v2643_v12  ;;  %v2679_v10 = vpack.c.bf16 %v1656_v7, %v1654_v6  ;;  %v1655_v12 = vld [vmem:[#allocation12 + $0x130] sm:$0xff]  ;;  %v1320_v61 = vrot.slane %v1315_v57, %v3059_v34  ;;  %v1681_v6 = vld [vmem:[#allocation12 + $0x200] sm:$0xff] }
 0x2f2   :  { %v1165_v52 = vadd.f32 %v3093_v51, %v1095_v14  ;;  %v2655_v51 = vpack.c.bf16 %v1632_v31, %v1630_v30  ;;  %v1660_v14 = vld [vmem:[#allocation12 + $0x158] sm:$0xff]  ;;  %v2681_v15 = vpack.c.bf16 %v1655_v12, %v1653_v11  ;;  %v1670_v30 = vld [vmem:[#allocation12 + $0x1a8] sm:$0xff]  ;;  %v1683_v7 = vld [vmem:[#allocation12 + $0x210] sm:$0xff] }
 0x2f3   :  { %v2683_v16 = vpack.c.bf16 %v1660_v14, %v1658_v13  ;;  %v1672_v31 = vld [vmem:[#allocation12 + $0x1b8] sm:$0xff]  ;;  %v2709_v13 = vpack.c.bf16 %v1683_v7, %v1681_v6 }
 0x2f4   :  { %v1170_v21 = vmax.f32 %v1165_v52, 0.0  ;;  %v1662_v52 = vld [vmem:[#allocation12 + $0x168] sm:$0xff]  ;;  %v1688_v11 = vld [vmem:[#allocation12 + $0x238] sm:$0xff] }
 0x2f6   :  { %1468 = vmatmul.mubr.f32.vlgmr.msra.gmra.mrb[4].mxu1 %v1170_v21  ;;  %2041 = vmatmul.mubr.f32.vlgmr.msra.gmra.mrb[8].mxu0 %v1170_v21  ;;  %v2685_v21 = vpack.c.bf16 %v1659_v18, %v1657_v17  ;;  %v1690_v17 = vld [vmem:[#allocation12 + $0x248] sm:$0xff]  ;;  %v1692_v18 = vld [vmem:[#allocation12 + $0x258] sm:$0xff] }
 0x2f7   :  { %2646 = vmatpush1.bf16.msra.mxu1 %v2645_v20  ;;  %v1664_v20 = vld [vmem:[#allocation12 + $0x178] sm:$0xff] }
 0x2f8   :  { %2648 = vmatprep.subr.bf16.mxu1 %v2647_v22  ;;  %v2687_v22 = vpack.c.bf16 %v1664_v20, %v1662_v52  ;;  %v2715_v20 = vpack.c.bf16 %v1692_v18, %v1690_v17 }
 0x2fb   :  { %2650 = vmatpush1.bf16.msra.mxu1 %v2649_v46  ;;  %v2689_v46 = vpack.c.bf16 %v1663_v24, %v1661_v23  ;;  %v1694_v23 = vld [vmem:[#allocation12 + $0x268] sm:$0xff]  ;;  %v1696_v24 = vld [vmem:[#allocation12 + $0x278] sm:$0xff] }
 0x2fc   :  { %2652 = vmatprep.subr.bf16.mxu1 %v2651_v27  ;;  %v2691_v27 = vpack.c.bf16 %v1668_v26, %v1666_v25  ;;  %v2719_v26 = vpack.c.bf16 %v1696_v24, %v1694_v23 }
 0x2ff   :  { %2654 = vmatpush1.bf16.msra.mxu1 %v2653_v32  ;;  %v2693_v32 = vpack.c.bf16 %v1667_v29, %v1665_v28  ;;  %v1698_v28 = vld [vmem:[#allocation12 + $0x288] sm:$0xff]  ;;  %v1700_v29 = vld [vmem:[#allocation12 + $0x298] sm:$0xff] }
 0x300   :  { %2656 = vmatprep.subr.bf16.mxu1 %v2655_v51  ;;  %v2695_v51 = vpack.c.bf16 %v1672_v31, %v1670_v30  ;;  %v2723_v31 = vpack.c.bf16 %v1700_v29, %v1698_v28 }
 0x303   :  { %2658 = vmatpush1.bf16.msra.mxu1 %v2657_v39  ;;  %v2697_v39 = vpack.c.bf16 %v1671_v35, %v1669_v33  ;;  %v1704_v33 = vld [vmem:[#allocation12 + $0x2b8] sm:$0xff] }
 0x304   :  { %2660 = vmatprep.subr.bf16.mxu1 %v2659_v40  ;;  %v2699_v40 = vpack.c.bf16 %v1676_v8, %v1674_v38  ;;  %v1701_v8 = vld [vmem:[#allocation12 + $0x2a0] sm:$0xff] }
 0x307   :  { %2662 = vmatpush1.bf16.msra.mxu1 %v2661_v47  ;;  %v1680_v47 = vld [vmem:[#allocation12 + $0x1f8] sm:$0xff] }
 0x308   :  { %2664 = vmatprep.subr.bf16.mxu1 %v2663_v50  ;;  %v2703_v50 = vpack.c.bf16 %v1680_v47, %v1678_v45  ;;  %v1705_v45 = vld [vmem:[#allocation12 + $0x2c0] sm:$0xff]  ;;  %v1707_v47 = vld [vmem:[#allocation12 + $0x2d0] sm:$0xff] }
 0x30b   :  { %2666 = vmatpush1.bf16.msra.mxu1 %v2665_v58  ;;  %v2705_v58 = vpack.c.bf16 %v1679_v56, %v1677_v53  ;;  %v1712_v53 = vld [vmem:[#allocation12 + $0x2f8] sm:$0xff]  ;;  %v2733_v56 = vpack.c.bf16 %v1707_v47, %v1705_v45 }
 0x30c   :  { %2668 = vmatprep.subr.bf16.mxu1 %v2667_v48  ;;  %v2707_v48 = vpack.c.bf16 %v1684_v60, %v1682_v59  ;;  %v1709_v59 = vld [vmem:[#allocation12 + $0x2e0] sm:$0xff]  ;;  %v1711_v60 = vld [vmem:[#allocation12 + $0x2f0] sm:$0xff] }
 0x30f   :  { %2670 = vmatpush1.bf16.msra.mxu1 %v2669_v43 }
 0x310   :  { %2672 = vmatprep.subr.bf16.mxu1 %v2671_v62  ;;  %v1324_v62 = vrot.slane %v1315_v57, %v3066_v37 }
 0x313   :  { %2674 = vmatpush1.bf16.msra.mxu1 %v2673_v2 }
 0x314   :  { %2676 = vmatprep.subr.bf16.mxu1 %v2675_v3 }
 0x317   :  { %2678 = vmatpush1.bf16.msra.mxu1 %v2677_v9 }
 0x318   :  { %2680 = vmatprep.subr.bf16.mxu1 %v2679_v10  ;;  %v1686_v10 = vld [vmem:[#allocation12 + $0x228] sm:$0xff] }
 0x319   :  { %v2711_v14 = vpack.c.bf16 %v1688_v11, %v1686_v10 }
 0x31b   :  { %2682 = vmatpush1.bf16.msra.mxu1 %v2681_v15  ;;  %v1685_v15 = vld [vmem:[#allocation12 + $0x220] sm:$0xff] }
 0x31c   :  { %2684 = vmatprep.subr.bf16.mxu1 %v2683_v16  ;;  %v1687_v16 = vld [vmem:[#allocation12 + $0x230] sm:$0xff] }
 0x31d   :  { %v2713_v52 = vpack.c.bf16 %v1687_v16, %v1685_v15 }
 0x31f   :  { %2686 = vmatpush1.bf16.msra.mxu1 %v2685_v21  ;;  %v1689_v21 = vld [vmem:[#allocation12 + $0x240] sm:$0xff] }
 0x320   :  { %2688 = vmatprep.subr.bf16.mxu1 %v2687_v22  ;;  %v1691_v22 = vld [vmem:[#allocation12 + $0x250] sm:$0xff] }
 0x321   :  { %v2717_v25 = vpack.c.bf16 %v1691_v22, %v1689_v21 }
 0x323   :  { %2690 = vmatpush1.bf16.msra.mxu1 %v2689_v46  ;;  %v1693_v46 = vld [vmem:[#allocation12 + $0x260] sm:$0xff] }
 0x324   :  { %2692 = vmatprep.subr.bf16.mxu1 %v2691_v27  ;;  %v1695_v27 = vld [vmem:[#allocation12 + $0x270] sm:$0xff] }
 0x325   :  { %v2721_v30 = vpack.c.bf16 %v1695_v27, %v1693_v46 }
 0x327   :  { %2694 = vmatpush1.bf16.msra.mxu1 %v2693_v32  ;;  %v1697_v32 = vld [vmem:[#allocation12 + $0x280] sm:$0xff] }
 0x328   :  { %2696 = vmatprep.subr.bf16.mxu1 %v2695_v51  ;;  %v1702_v51 = vld [vmem:[#allocation12 + $0x2a8] sm:$0xff] }
 0x329   :  { %v2727_v38 = vpack.c.bf16 %v1704_v33, %v1702_v51 }
 0x32b   :  { %2698 = vmatpush1.bf16.msra.mxu1 %v2697_v39  ;;  %v1703_v39 = vld [vmem:[#allocation12 + $0x2b0] sm:$0xff] }
 0x32c   :  { %2700 = vmatprep.subr.bf16.mxu1 %v2699_v40  ;;  %v1706_v40 = vld [vmem:[#allocation12 + $0x2c8] sm:$0xff]  ;;  %v2729_v42 = vpack.c.bf16 %v1703_v39, %v1701_v8 }
 0x32f   :  { %2702 = vmatpush1.bf16.msra.mxu1 %v2701_v44  ;;  %v2731_v44 = vpack.c.bf16 %v1708_v41, %v1706_v40 }
 0x330   :  { %2704 = vmatprep.subr.bf16.mxu1 %v2703_v50  ;;  %v1710_v50 = vld [vmem:[#allocation12 + $0x2e8] sm:$0xff] }
 0x333   :  { %2706 = vmatpush1.bf16.msra.mxu1 %v2705_v58  ;;  %v2735_v58 = vpack.c.bf16 %v1712_v53, %v1710_v50 }
 0x334   :  { %2708 = vmatprep.subr.bf16.mxu1 %v2707_v48  ;;  %v2737_v48 = vpack.c.bf16 %v1711_v60, %v1709_v59 }
 0x3a6   :  { %v1988_v54 = vpop.f32.mrb[6].mxu0 }
 0x3a7   :  { %v1989_v49 = vpop.f32.mrb[7].mxu0 }
 0x3a8   :  { %v1990_v43 = vadd.f32 %v1989_v49, %v1988_v54  ;;  %v1713_v49 = vld [vmem:[%s3152_s9] sm:$0x3] }
 0x3a9   :  { %v1722_v57 = vrot.slane %v1713_v49, %v3066_v37 }
 0x3aa   :  { %v1541_v63 = vadd.f32 %v1990_v43, %v1328_v55  ;;  %v1718_v43 = vrot.slane %v1713_v49, %v3059_v34 }
 0x3c9   :  { %v1469_v0 = vpop.f32.mrb[4].mxu1  ;;  %v1610_v1 = vpop.f32.mrb[8].mxu0 }
 0x3ca   :  { %v2745_v2 = vadd.f32 %v1469_v0, %v1320_v61  ;;  %v3122_v3 = vadd.f32 %v1610_v1, %v1541_v63  ;;  %v1471_v4 = vpop.f32.mrb[5].mxu1  ;;  %v2042_v5 = vpop.f32.mrb[9].mxu0 }
 0x3cb   :  { %v2746_v9 = vadd.f32 %v1471_v4, %v1324_v62 }
 0x3cc   :  { %v1614_v36 = vmax.f32 %v2745_v2, 0.0  ;;  %v1616_v54 = vmax.f32 %v3122_v3, 0.0 }
 0x3cd   :  { %v1615_v12 = vmax.f32 %v2746_v9, 0.0 }
 0x3cf   :  { %1789 = vmatprep.mubr.f32.mxu1 %v1615_v12 }
 0x3d0   :  { %1790 = vmatmul.mubr.f32.vlgmr.msra.gmra.mrb[6].mxu1 %v1614_v36 }
 0x3d1   :  { %2710 = vmatpush1.bf16.msra.mxu1 %v2709_v13  ;;  %1860 = vmatprep.mubr.f32.mxu1 %v2926_v19  ;;  %v1699_v19 = vld [vmem:[#allocation12 + $0x290] sm:$0xff] }
 0x3d2   :  { %2712 = vmatprep.subr.bf16.mxu1 %v2711_v14  ;;  %v2725_v35 = vpack.c.bf16 %v1699_v19, %v1697_v32 }
 0x3d5   :  { %2714 = vmatpush1.bf16.msra.mxu1 %v2713_v52 }
 0x3d6   :  { %2716 = vmatprep.subr.bf16.mxu1 %v2715_v20 }
 0x3d9   :  { %2718 = vmatpush1.bf16.msra.mxu1 %v2717_v25 }
 0x3da   :  { %2720 = vmatprep.subr.bf16.mxu1 %v2719_v26 }
 0x3dd   :  { %2722 = vmatpush1.bf16.msra.mxu1 %v2721_v30 }
 0x3de   :  { %2724 = vmatprep.subr.bf16.mxu1 %v2723_v31 }
 0x3e1   :  { %2726 = vmatpush1.bf16.msra.mxu1 %v2725_v35 }
 0x3e2   :  { %2728 = vmatprep.subr.bf16.mxu1 %v2727_v38 }
 0x3e5   :  { %2730 = vmatpush1.bf16.msra.mxu1 %v2729_v42 }
 0x3e6   :  { %2732 = vmatprep.subr.bf16.mxu1 %v2731_v44 }
 0x3e9   :  { %2734 = vmatpush1.bf16.msra.mxu1 %v2733_v56 }
 0x3ea   :  { %2736 = vmatprep.subr.bf16.mxu1 %v2735_v58 }
 0x3ed   :  { %2738 = vmatpush1.bf16.msra.mxu1 %v2737_v48 }
 0x3f0   :  { %1861 = vmatmul.mubr.f32.vlgmr.msra.gmra.mrb[6].mxu1 %v1616_v54 }
 0x4c3   :  { %v1862_v55 = vpop.f32.mrb[6].mxu1 }
 0x4c4   :  { %v2747_v61 = vadd.f32 %v1862_v55, %v1718_v43  ;;  %v1864_v62 = vpop.f32.mrb[7].mxu1 }
 0x4c5   :  { %v2748_v63 = vadd.f32 %v1864_v62, %v1722_v57 }
 0x4c6   :  { %1867 = vst [vmem:[#allocation13] sm:$0xff] %v2747_v61 }
 0x4c7   :  { %1868 = vst [vmem:[#allocation13 + $0x8] sm:$0xff] %v2748_v63 }
 0x4c8   :  { %2895 = shalt.err (!%p2892_p2)
}
 0x4c9   :  { %s2896_s1 = scalar_lea.hbm %s3153_s10, 256 }
 0x4ca   :  { %p2897_p3 = scmp.ne.s32.totalorder %s3153_s10, %s2896_s1  ;;  %p2900_p4 = scmp.lt.u32.totalorder %s2896_s1, %s3153_s10 }
 0x4cc   :  { %p2902_p5 = pnand %p2900_p4, %p2897_p3 }
 0x4ce   :  { %2905 = shalt.err (!%p2902_p5)
}
 0x4cf   :  { %1878 = dma.vmem_to_hbm [thread:$0]  %s1876_s21, 256, %s3153_s10, [#allocation6]  }
 0x4d0   :  { %2912 = dma.done.wait [#allocation6], 256  }
 0x4d1   :  { %2913 = vsyncadd [#allocation6], 4294967040 }
 0x4d2   :  { %1882 = vsyncpa [#allocation5], 1 }
 0x4d3   :  { %1883 = vsyncpa [#allocation8], 1 }
 0x4d4   :  { %1884 = vsyncpa [#allocation11], 1 }
 0x4d5   :  { %1885 = vsyncpa [#allocation6], 1 }

</bundles_post_ra>
